<compile_context>
chip_gen: v5e
topology: v5e:2x2
jax: 0.10.0
libtpu: 0.0.40
codegen_flags: <defaults>
</compile_context>

<pallas_src>
import jax
import jax.numpy as jnp
import numpy as np
from jax import lax
from jax.experimental import pallas as pl
from jax.experimental.pallas import tpu as pltpu

# --- small, ConvQ-consistent configuration ---
NUM_ENTITIES = 64
NUM_RELATIONS = 16
EMB_DIM = 32          # embedding_dim D
KSIZE = 3
C_OUT = 16            # num_of_output_channels
BATCH = 8
EPS = 1e-5            # PyTorch BatchNorm default eps
HW = 8 * EMB_DIM      # flattened (H=8 stacked components, W=D) = 256
FLAT = C_OUT * HW     # fc1 input features = 4096


# ----------------------------------------------------------------------------
# Fused kernel: conv3x3(+BN2d)+ReLU -> fc1(+BN1d)+ReLU -> Hamilton product with
#               pre-BN'd relations -> single packed score matmul vs pre-BN'd
#               entity table -> sigmoid.   One grid step, everything in VMEM.
# ----------------------------------------------------------------------------
def convq_fused_kernel(patches_ref,    # (9, B, 8*D)  f32  im2col windows
                       head_ref,       # (4, B, D)    f32  raw head embeddings
                       relbn_ref,      # (4, B, D)    f32  BN'd rel embeddings
                       w_exp_ref,      # (9, FLAT)    f32  folded conv w, lane-expanded
                       bias_exp_ref,   # (1, FLAT)    f32  folded conv bias, lane-expanded
                       wf_ref,         # (FLAT, 4D)   bf16 folded fc1 weight
                       bf_ref,         # (1, 4D)      f32  folded fc1 bias
                       ent_ref,        # (E, 4D)      f32  BN'd packed entity table
                       out_ref):       # (B, E)       f32
    B = head_ref.shape[1]
    n_tap = w_exp_ref.shape[0]
    flat_dim = w_exp_ref.shape[1]
    c_out = flat_dim // patches_ref.shape[2]

    # ---- 3x3 conv (C_in=1) + folded BN2d + ReLU, vectorized over channels ----
    # acc[b, c*HW + hw] = sum_t w9[c, t] * patch[t, b, hw]
    acc = jnp.zeros((B, flat_dim), jnp.float32)
    for t in range(n_tap):                                   # 9 taps, unrolled
        pt = patches_ref[t]                                  # (B, HW)
        tiled = jnp.concatenate([pt] * c_out, axis=1)        # (B, FLAT) lane-tile over channels
        acc = acc + w_exp_ref[pl.ds(t, 1), :] * tiled
    flat = jnp.maximum(acc + bias_exp_ref[...], 0.0)         # (B, FLAT), matches torch view(B,-1)

    # ---- fc1 (bf16 weight, f32 accumulation) + folded BN1d + ReLU ----
    hid = jnp.dot(flat.astype(jnp.bfloat16), wf_ref[...],
                  preferred_element_type=jnp.float32)        # (B, 4D)
    hid = jnp.maximum(hid + bf_ref[...], 0.0)

    # ---- quaternion Hamilton product: head (raw) x BN(rel), f32 elementwise ----
    hr, hi, hj, hk = head_ref[0], head_ref[1], head_ref[2], head_ref[3]
    rr, ri, rj, rk = relbn_ref[0], relbn_ref[1], relbn_ref[2], relbn_ref[3]
    r_val = hr * rr - hi * ri - hj * rj - hk * rk
    i_val = hr * ri + hi * rr + hj * rk - hk * rj
    j_val = hr * rj - hi * rk + hj * rr + hk * ri
    k_val = hr * rk + hi * rj - hj * ri + hk * rr
    qcat = jnp.concatenate([r_val, i_val, j_val, k_val], axis=1)   # (B, 4D)

    # ---- single packed score matmul over K = 4D, then sigmoid ----
    lhs = hid * qcat                                         # torch.chunk layout matches
    s = lax.dot_general(lhs, ent_ref[...], (((1,), (1,)), ((), ())),
                        preferred_element_type=jnp.float32)  # (B, E)
    out_ref[...] = 1.0 / (1.0 + jnp.exp(-s))


def convq_pallas_call(patches, head4, rel4_bn, prep):
    B = head4.shape[1]
    E = prep["ent_packed"].shape[0]
    vmem = pl.BlockSpec(memory_space=pltpu.MemorySpace.VMEM)   # whole array in VMEM
    return pl.pallas_call(
        convq_fused_kernel,
        out_shape=jax.ShapeDtypeStruct((B, E), jnp.float32),
        in_specs=[vmem] * 8,
        out_specs=vmem,
    )(patches, head4, rel4_bn, prep["w_exp"], prep["bias_exp"],
      prep["wf_bf16"], prep["fc_bias"], prep["ent_packed"])


# ----------------------------------------------------------------------------
# Parameter init (deterministic, synthetic — no checkpoint loading)
# ----------------------------------------------------------------------------
def init_params(key):
    keys = iter(jax.random.split(key, 24))

    def xavier(k, shape):
        std = np.sqrt(2.0 / (shape[0] + shape[1]))
        return jax.random.normal(k, shape, jnp.float32) * std

    def bn(k, n):
        k1, k2, k3, k4 = jax.random.split(k, 4)
        gamma = jax.random.uniform(k1, (n,), jnp.float32, 0.5, 1.5)
        beta = jax.random.normal(k2, (n,), jnp.float32) * 0.1
        mean = jax.random.normal(k3, (n,), jnp.float32) * 0.1
        var = jax.random.uniform(k4, (n,), jnp.float32, 0.5, 1.5)
        return gamma, beta, mean, var

    p = {}
    p["ent"] = jnp.stack([xavier(next(keys), (NUM_ENTITIES, EMB_DIM)) for _ in range(4)])   # (4,E,D)
    p["rel"] = jnp.stack([xavier(next(keys), (NUM_RELATIONS, EMB_DIM)) for _ in range(4)])  # (4,R,D)
    p["conv_w"] = jax.random.normal(next(keys), (C_OUT, 1, KSIZE, KSIZE), jnp.float32) * 0.1
    p["conv_b"] = jax.random.normal(next(keys), (C_OUT,), jnp.float32) * 0.1
    p["fc_w"] = jax.random.normal(next(keys), (FLAT, EMB_DIM * 4), jnp.float32) / np.sqrt(FLAT)
    p["fc_b"] = jax.random.normal(next(keys), (EMB_DIM * 4,), jnp.float32) * 0.1
    p["bn_ent"] = [bn(next(keys), EMB_DIM) for _ in range(4)]
    p["bn_rel"] = [bn(next(keys), EMB_DIM) for _ in range(4)]
    p["bn_conv1"] = bn(next(keys), C_OUT)
    p["bn_conv2"] = bn(next(keys), EMB_DIM * 4)
    return p


def _bn_fold(gamma, beta, mean, var):
    sc = gamma / jnp.sqrt(var + EPS)
    sh = beta - mean * sc
    return sc, sh


def prepare_constants(params):
    """Fold all eval-mode BatchNorms into weights / tables ONCE (outside the
    per-call jitted forward) and pre-layout constants for the fused kernel."""
    # conv + BN2d -> lane-expanded weight (9, FLAT) and bias (1, FLAT)
    sc1, sh1 = _bn_fold(*params["bn_conv1"])
    w9 = params["conv_w"].reshape(C_OUT, KSIZE * KSIZE) * sc1[:, None]          # (16, 9)
    b_fold = params["conv_b"] * sc1 + sh1                                       # (16,)
    w_exp = jnp.repeat(w9.T[:, :, None], HW, axis=2).reshape(KSIZE * KSIZE, FLAT)
    bias_exp = jnp.repeat(b_fold[:, None], HW, axis=1).reshape(1, FLAT)
    # fc1 + BN1d (bf16 weight -> half the dominant HBM DMA; f32 bias)
    sc2, sh2 = _bn_fold(*params["bn_conv2"])
    wf_bf16 = (params["fc_w"] * sc2[None, :]).astype(jnp.bfloat16)              # (FLAT, 4D)
    fc_bias = (params["fc_b"] * sc2 + sh2)[None, :].astype(jnp.float32)         # (1, 4D)
    # relation table with BN pre-applied (R is small; folded once, gathered per call)
    rel_cols = []
    for q in range(4):
        g, b, m, v = params["bn_rel"][q]
        rel_cols.append((params["rel"][q] - m) / jnp.sqrt(v + EPS) * g + b)
    rel_bn = jnp.stack(rel_cols)                                                # (4, R, D)
    # entity tables with BN applied, packed (E, 4D) for one K=4D contraction
    ent_cols = []
    for q in range(4):
        g, b, m, v = params["bn_ent"][q]
        ent_cols.append((params["ent"][q] - m) / jnp.sqrt(v + EPS) * g + b)
    ent_packed = jnp.concatenate(ent_cols, axis=1)                              # (E, 4D)
    return {
        "ent": params["ent"], "rel": params["rel"], "rel_bn": rel_bn,
        "w_exp": w_exp, "bias_exp": bias_exp,
        "wf_bf16": wf_bf16, "fc_bias": fc_bias,
        "ent_packed": ent_packed,
    }


# ----------------------------------------------------------------------------
# Forward (Pallas path) — ConvQ.forward_head_batch, eval mode, norm_flag=False
# ----------------------------------------------------------------------------
def convq_forward(prep, h_idx, r_idx):
    B = h_idx.shape[0]
    D = EMB_DIM
    head4 = prep["ent"][:, h_idx, :]       # (4, B, D)  embedding lookup (glue)
    rel4_raw = prep["rel"][:, r_idx, :]    # (4, B, D)  raw rel -> conv input
    rel4_bn = prep["rel_bn"][:, r_idx, :]  # (4, B, D)  BN'd rel -> Hamilton product

    # residual_convolution input: 8 quaternion components stacked along "H"
    x = jnp.transpose(jnp.concatenate([head4, rel4_raw], axis=0), (1, 0, 2))   # (B, 8, D)
    xpad = jnp.pad(x, ((0, 0), (1, 1), (1, 1)))                                # (B, 10, D+2)
    # im2col: 9 shifted 3x3-tap windows, spatial (h, w) flattened lane-major
    wins = [xpad[:, dh:dh + 8, dw:dw + D]
            for dh in range(KSIZE) for dw in range(KSIZE)]                     # each (B, 8, D)
    patches = jnp.stack(wins, axis=0).reshape(KSIZE * KSIZE, B, HW)            # (9, B, 256)

    return convq_pallas_call(patches, head4, rel4_bn, prep)                    # (B, E)


# ----------------------------------------------------------------------------
# Pure-JAX reference (independent implementation, same params, eval mode)
# ----------------------------------------------------------------------------
def convq_reference(params, h_idx, r_idx):
    B = h_idx.shape[0]
    head4 = params["ent"][:, h_idx, :]
    rel4 = params["rel"][:, r_idx, :]

    x = jnp.transpose(jnp.concatenate([head4, rel4], axis=0), (1, 0, 2))[:, None, :, :]  # (B,1,8,D)
    y = lax.conv_general_dilated(x, params["conv_w"], (1, 1), ((1, 1), (1, 1)),
                                 dimension_numbers=("NCHW", "OIHW", "NCHW"))
    y = y + params["conv_b"][None, :, None, None]
    g, b, m, v = params["bn_conv1"]
    y = (y - m[None, :, None, None]) / jnp.sqrt(v + EPS)[None, :, None, None] \
        * g[None, :, None, None] + b[None, :, None, None]
    y = jnp.maximum(y, 0.0)

    z = y.reshape(B, -1) @ params["fc_w"] + params["fc_b"][None, :]
    g2, b2, m2, v2 = params["bn_conv2"]
    z = (z - m2) / jnp.sqrt(v2 + EPS) * g2 + b2
    z = jnp.maximum(z, 0.0)
    cr, ci, cj, ck = jnp.split(z, 4, axis=1)

    def bn_apply(a, bn):
        gg, bb, mm, vv = bn
        return (a - mm) / jnp.sqrt(vv + EPS) * gg + bb

    hr, hi, hj, hk = head4
    rr = bn_apply(rel4[0], params["bn_rel"][0])
    ri = bn_apply(rel4[1], params["bn_rel"][1])
    rj = bn_apply(rel4[2], params["bn_rel"][2])
    rk = bn_apply(rel4[3], params["bn_rel"][3])

    r_val = hr * rr - hi * ri - hj * rj - hk * rk
    i_val = hr * ri + hi * rr + hj * rk - hk * rj
    j_val = hr * rj - hi * rk + hj * rr + hk * ri
    k_val = hr * rk + hi * rj - hj * ri + hk * rr

    Er = bn_apply(params["ent"][0], params["bn_ent"][0])
    Ei = bn_apply(params["ent"][1], params["bn_ent"][1])
    Ej = bn_apply(params["ent"][2], params["bn_ent"][2])
    Ek = bn_apply(params["ent"][3], params["bn_ent"][3])

    score = (cr * r_val) @ Er.T + (ci * i_val) @ Ei.T + (cj * j_val) @ Ej.T + (ck * k_val) @ Ek.T
    return jax.nn.sigmoid(score)


if __name__ == "__main__":
    key = jax.random.PRNGKey(0)
    pkey, hkey, rkey = jax.random.split(key, 3)
    params = init_params(pkey)
    prep = prepare_constants(params)        # BN folding done once, outside the jitted forward
    h_idx = jax.random.randint(hkey, (BATCH,), 0, NUM_ENTITIES, dtype=jnp.int32)
    r_idx = jax.random.randint(rkey, (BATCH,), 0, NUM_RELATIONS, dtype=jnp.int32)

    fwd = jax.jit(convq_forward)
    out = jax.block_until_ready(fwd(prep, h_idx, r_idx))

    ref = jax.block_until_ready(convq_reference(params, h_idx, r_idx))
    assert out.shape == (BATCH, NUM_ENTITIES)
    assert bool(jnp.all(jnp.isfinite(out)))
    err = float(jnp.max(jnp.abs(out - ref)))
    assert err < 5e-2, f"mismatch vs pure-JAX reference: {err}"

    print("KERNEL_OK")
</pallas_src>

<mosaic_0001>
module attributes {stable_mosaic.version = 11 : i64} {
  func.func @convq_fused_kernel(%arg0: memref<9x8x256xf32, #tpu.memory_space<vmem>>, %arg1: memref<4x8x32xf32, #tpu.memory_space<vmem>>, %arg2: memref<4x8x32xf32, #tpu.memory_space<vmem>>, %arg3: memref<9x4096xf32, #tpu.memory_space<vmem>>, %arg4: memref<1x4096xf32, #tpu.memory_space<vmem>>, %arg5: memref<4096x128xbf16, #tpu.memory_space<vmem>>, %arg6: memref<1x128xf32, #tpu.memory_space<vmem>>, %arg7: memref<64x128xf32, #tpu.memory_space<vmem>>, %arg8: memref<8x64xf32, #tpu.memory_space<vmem>>) attributes {dimension_semantics = [], scalar_prefetch = 0 : i64, scratch_operands = 0 : i64, tpu.core_type = #tpu.core_type<tc>} {
    %cst = arith.constant 0.000000e+00 : f32
    %0 = vector.broadcast %cst : f32 to vector<8x4096xf32>
    %c0 = arith.constant 0 : index
    %c0_0 = arith.constant 0 : index
    %c0_1 = arith.constant 0 : index
    %1 = vector.load %arg0[%c0, %c0_0, %c0_1] : memref<9x8x256xf32, #tpu.memory_space<vmem>>, vector<1x8x256xf32>
    %2 = vector.shape_cast %1 : vector<1x8x256xf32> to vector<8x256xf32>
    %3 = tpu.concatenate %2, %2, %2, %2, %2, %2, %2, %2, %2, %2, %2, %2, %2, %2, %2, %2 in 1 : vector<8x256xf32>, vector<8x256xf32>, vector<8x256xf32>, vector<8x256xf32>, vector<8x256xf32>, vector<8x256xf32>, vector<8x256xf32>, vector<8x256xf32>, vector<8x256xf32>, vector<8x256xf32>, vector<8x256xf32>, vector<8x256xf32>, vector<8x256xf32>, vector<8x256xf32>, vector<8x256xf32>, vector<8x256xf32> -> vector<8x4096xf32>
    %c0_2 = arith.constant 0 : index
    %c0_3 = arith.constant 0 : index
    %4 = vector.load %arg3[%c0_2, %c0_3] : memref<9x4096xf32, #tpu.memory_space<vmem>>, vector<1x4096xf32>
    %5 = vector.broadcast %4 : vector<1x4096xf32> to vector<8x4096xf32>
    %6 = arith.mulf %5, %3 : vector<8x4096xf32>
    %7 = arith.addf %0, %6 : vector<8x4096xf32>
    %c1 = arith.constant 1 : index
    %c0_4 = arith.constant 0 : index
    %c0_5 = arith.constant 0 : index
    %8 = vector.load %arg0[%c1, %c0_4, %c0_5] : memref<9x8x256xf32, #tpu.memory_space<vmem>>, vector<1x8x256xf32>
    %9 = vector.shape_cast %8 : vector<1x8x256xf32> to vector<8x256xf32>
    %10 = tpu.concatenate %9, %9, %9, %9, %9, %9, %9, %9, %9, %9, %9, %9, %9, %9, %9, %9 in 1 : vector<8x256xf32>, vector<8x256xf32>, vector<8x256xf32>, vector<8x256xf32>, vector<8x256xf32>, vector<8x256xf32>, vector<8x256xf32>, vector<8x256xf32>, vector<8x256xf32>, vector<8x256xf32>, vector<8x256xf32>, vector<8x256xf32>, vector<8x256xf32>, vector<8x256xf32>, vector<8x256xf32>, vector<8x256xf32> -> vector<8x4096xf32>
    %c1_6 = arith.constant 1 : index
    %c0_7 = arith.constant 0 : index
    %11 = vector.load %arg3[%c1_6, %c0_7] : memref<9x4096xf32, #tpu.memory_space<vmem>>, vector<1x4096xf32>
    %12 = vector.broadcast %11 : vector<1x4096xf32> to vector<8x4096xf32>
    %13 = arith.mulf %12, %10 : vector<8x4096xf32>
    %14 = arith.addf %7, %13 : vector<8x4096xf32>
    %c2 = arith.constant 2 : index
    %c0_8 = arith.constant 0 : index
    %c0_9 = arith.constant 0 : index
    %15 = vector.load %arg0[%c2, %c0_8, %c0_9] : memref<9x8x256xf32, #tpu.memory_space<vmem>>, vector<1x8x256xf32>
    %16 = vector.shape_cast %15 : vector<1x8x256xf32> to vector<8x256xf32>
    %17 = tpu.concatenate %16, %16, %16, %16, %16, %16, %16, %16, %16, %16, %16, %16, %16, %16, %16, %16 in 1 : vector<8x256xf32>, vector<8x256xf32>, vector<8x256xf32>, vector<8x256xf32>, vector<8x256xf32>, vector<8x256xf32>, vector<8x256xf32>, vector<8x256xf32>, vector<8x256xf32>, vector<8x256xf32>, vector<8x256xf32>, vector<8x256xf32>, vector<8x256xf32>, vector<8x256xf32>, vector<8x256xf32>, vector<8x256xf32> -> vector<8x4096xf32>
    %c2_10 = arith.constant 2 : index
    %c0_11 = arith.constant 0 : index
    %18 = vector.load %arg3[%c2_10, %c0_11] : memref<9x4096xf32, #tpu.memory_space<vmem>>, vector<1x4096xf32>
    %19 = vector.broadcast %18 : vector<1x4096xf32> to vector<8x4096xf32>
    %20 = arith.mulf %19, %17 : vector<8x4096xf32>
    %21 = arith.addf %14, %20 : vector<8x4096xf32>
    %c3 = arith.constant 3 : index
    %c0_12 = arith.constant 0 : index
    %c0_13 = arith.constant 0 : index
    %22 = vector.load %arg0[%c3, %c0_12, %c0_13] : memref<9x8x256xf32, #tpu.memory_space<vmem>>, vector<1x8x256xf32>
    %23 = vector.shape_cast %22 : vector<1x8x256xf32> to vector<8x256xf32>
    %24 = tpu.concatenate %23, %23, %23, %23, %23, %23, %23, %23, %23, %23, %23, %23, %23, %23, %23, %23 in 1 : vector<8x256xf32>, vector<8x256xf32>, vector<8x256xf32>, vector<8x256xf32>, vector<8x256xf32>, vector<8x256xf32>, vector<8x256xf32>, vector<8x256xf32>, vector<8x256xf32>, vector<8x256xf32>, vector<8x256xf32>, vector<8x256xf32>, vector<8x256xf32>, vector<8x256xf32>, vector<8x256xf32>, vector<8x256xf32> -> vector<8x4096xf32>
    %c3_14 = arith.constant 3 : index
    %c0_15 = arith.constant 0 : index
    %25 = vector.load %arg3[%c3_14, %c0_15] : memref<9x4096xf32, #tpu.memory_space<vmem>>, vector<1x4096xf32>
    %26 = vector.broadcast %25 : vector<1x4096xf32> to vector<8x4096xf32>
    %27 = arith.mulf %26, %24 : vector<8x4096xf32>
    %28 = arith.addf %21, %27 : vector<8x4096xf32>
    %c4 = arith.constant 4 : index
    %c0_16 = arith.constant 0 : index
    %c0_17 = arith.constant 0 : index
    %29 = vector.load %arg0[%c4, %c0_16, %c0_17] : memref<9x8x256xf32, #tpu.memory_space<vmem>>, vector<1x8x256xf32>
    %30 = vector.shape_cast %29 : vector<1x8x256xf32> to vector<8x256xf32>
    %31 = tpu.concatenate %30, %30, %30, %30, %30, %30, %30, %30, %30, %30, %30, %30, %30, %30, %30, %30 in 1 : vector<8x256xf32>, vector<8x256xf32>, vector<8x256xf32>, vector<8x256xf32>, vector<8x256xf32>, vector<8x256xf32>, vector<8x256xf32>, vector<8x256xf32>, vector<8x256xf32>, vector<8x256xf32>, vector<8x256xf32>, vector<8x256xf32>, vector<8x256xf32>, vector<8x256xf32>, vector<8x256xf32>, vector<8x256xf32> -> vector<8x4096xf32>
    %c4_18 = arith.constant 4 : index
    %c0_19 = arith.constant 0 : index
    %32 = vector.load %arg3[%c4_18, %c0_19] : memref<9x4096xf32, #tpu.memory_space<vmem>>, vector<1x4096xf32>
    %33 = vector.broadcast %32 : vector<1x4096xf32> to vector<8x4096xf32>
    %34 = arith.mulf %33, %31 : vector<8x4096xf32>
    %35 = arith.addf %28, %34 : vector<8x4096xf32>
    %c5 = arith.constant 5 : index
    %c0_20 = arith.constant 0 : index
    %c0_21 = arith.constant 0 : index
    %36 = vector.load %arg0[%c5, %c0_20, %c0_21] : memref<9x8x256xf32, #tpu.memory_space<vmem>>, vector<1x8x256xf32>
    %37 = vector.shape_cast %36 : vector<1x8x256xf32> to vector<8x256xf32>
    %38 = tpu.concatenate %37, %37, %37, %37, %37, %37, %37, %37, %37, %37, %37, %37, %37, %37, %37, %37 in 1 : vector<8x256xf32>, vector<8x256xf32>, vector<8x256xf32>, vector<8x256xf32>, vector<8x256xf32>, vector<8x256xf32>, vector<8x256xf32>, vector<8x256xf32>, vector<8x256xf32>, vector<8x256xf32>, vector<8x256xf32>, vector<8x256xf32>, vector<8x256xf32>, vector<8x256xf32>, vector<8x256xf32>, vector<8x256xf32> -> vector<8x4096xf32>
    %c5_22 = arith.constant 5 : index
    %c0_23 = arith.constant 0 : index
    %39 = vector.load %arg3[%c5_22, %c0_23] : memref<9x4096xf32, #tpu.memory_space<vmem>>, vector<1x4096xf32>
    %40 = vector.broadcast %39 : vector<1x4096xf32> to vector<8x4096xf32>
    %41 = arith.mulf %40, %38 : vector<8x4096xf32>
    %42 = arith.addf %35, %41 : vector<8x4096xf32>
    %c6 = arith.constant 6 : index
    %c0_24 = arith.constant 0 : index
    %c0_25 = arith.constant 0 : index
    %43 = vector.load %arg0[%c6, %c0_24, %c0_25] : memref<9x8x256xf32, #tpu.memory_space<vmem>>, vector<1x8x256xf32>
    %44 = vector.shape_cast %43 : vector<1x8x256xf32> to vector<8x256xf32>
    %45 = tpu.concatenate %44, %44, %44, %44, %44, %44, %44, %44, %44, %44, %44, %44, %44, %44, %44, %44 in 1 : vector<8x256xf32>, vector<8x256xf32>, vector<8x256xf32>, vector<8x256xf32>, vector<8x256xf32>, vector<8x256xf32>, vector<8x256xf32>, vector<8x256xf32>, vector<8x256xf32>, vector<8x256xf32>, vector<8x256xf32>, vector<8x256xf32>, vector<8x256xf32>, vector<8x256xf32>, vector<8x256xf32>, vector<8x256xf32> -> vector<8x4096xf32>
    %c6_26 = arith.constant 6 : index
    %c0_27 = arith.constant 0 : index
    %46 = vector.load %arg3[%c6_26, %c0_27] : memref<9x4096xf32, #tpu.memory_space<vmem>>, vector<1x4096xf32>
    %47 = vector.broadcast %46 : vector<1x4096xf32> to vector<8x4096xf32>
    %48 = arith.mulf %47, %45 : vector<8x4096xf32>
    %49 = arith.addf %42, %48 : vector<8x4096xf32>
    %c7 = arith.constant 7 : index
    %c0_28 = arith.constant 0 : index
    %c0_29 = arith.constant 0 : index
    %50 = vector.load %arg0[%c7, %c0_28, %c0_29] : memref<9x8x256xf32, #tpu.memory_space<vmem>>, vector<1x8x256xf32>
    %51 = vector.shape_cast %50 : vector<1x8x256xf32> to vector<8x256xf32>
    %52 = tpu.concatenate %51, %51, %51, %51, %51, %51, %51, %51, %51, %51, %51, %51, %51, %51, %51, %51 in 1 : vector<8x256xf32>, vector<8x256xf32>, vector<8x256xf32>, vector<8x256xf32>, vector<8x256xf32>, vector<8x256xf32>, vector<8x256xf32>, vector<8x256xf32>, vector<8x256xf32>, vector<8x256xf32>, vector<8x256xf32>, vector<8x256xf32>, vector<8x256xf32>, vector<8x256xf32>, vector<8x256xf32>, vector<8x256xf32> -> vector<8x4096xf32>
    %c7_30 = arith.constant 7 : index
    %c0_31 = arith.constant 0 : index
    %53 = vector.load %arg3[%c7_30, %c0_31] : memref<9x4096xf32, #tpu.memory_space<vmem>>, vector<1x4096xf32>
    %54 = vector.broadcast %53 : vector<1x4096xf32> to vector<8x4096xf32>
    %55 = arith.mulf %54, %52 : vector<8x4096xf32>
    %56 = arith.addf %49, %55 : vector<8x4096xf32>
    %c8 = arith.constant 8 : index
    %c0_32 = arith.constant 0 : index
    %c0_33 = arith.constant 0 : index
    %57 = vector.load %arg0[%c8, %c0_32, %c0_33] : memref<9x8x256xf32, #tpu.memory_space<vmem>>, vector<1x8x256xf32>
    %58 = vector.shape_cast %57 : vector<1x8x256xf32> to vector<8x256xf32>
    %59 = tpu.concatenate %58, %58, %58, %58, %58, %58, %58, %58, %58, %58, %58, %58, %58, %58, %58, %58 in 1 : vector<8x256xf32>, vector<8x256xf32>, vector<8x256xf32>, vector<8x256xf32>, vector<8x256xf32>, vector<8x256xf32>, vector<8x256xf32>, vector<8x256xf32>, vector<8x256xf32>, vector<8x256xf32>, vector<8x256xf32>, vector<8x256xf32>, vector<8x256xf32>, vector<8x256xf32>, vector<8x256xf32>, vector<8x256xf32> -> vector<8x4096xf32>
    %c8_34 = arith.constant 8 : index
    %c0_35 = arith.constant 0 : index
    %60 = vector.load %arg3[%c8_34, %c0_35] : memref<9x4096xf32, #tpu.memory_space<vmem>>, vector<1x4096xf32>
    %61 = vector.broadcast %60 : vector<1x4096xf32> to vector<8x4096xf32>
    %62 = arith.mulf %61, %59 : vector<8x4096xf32>
    %63 = arith.addf %56, %62 : vector<8x4096xf32>
    %c0_36 = arith.constant 0 : index
    %c0_37 = arith.constant 0 : index
    %64 = vector.load %arg4[%c0_36, %c0_37] : memref<1x4096xf32, #tpu.memory_space<vmem>>, vector<1x4096xf32>
    %65 = vector.broadcast %64 : vector<1x4096xf32> to vector<8x4096xf32>
    %66 = arith.addf %63, %65 : vector<8x4096xf32>
    %cst_38 = arith.constant 0.000000e+00 : f32
    %67 = vector.broadcast %cst_38 : f32 to vector<8x4096xf32>
    %68 = arith.maximumf %66, %67 : vector<8x4096xf32>
    %69 = arith.truncf %68 : vector<8x4096xf32> to vector<8x4096xbf16>
    %c0_39 = arith.constant 0 : index
    %c0_40 = arith.constant 0 : index
    %70 = vector.load %arg5[%c0_39, %c0_40] : memref<4096x128xbf16, #tpu.memory_space<vmem>>, vector<4096x128xbf16>
    %cst_41 = arith.constant dense<0.000000e+00> : vector<8x128xf32>
    %71 = tpu.matmul %69, %70, %cst_41 {dimension_numbers = #tpu.dot_dimension_numbers<[1], [0], [0], [1], [0, 0, 1, 1], [], []>} : vector<8x4096xbf16>, vector<4096x128xbf16>, vector<8x128xf32> -> vector<8x128xf32>
    %c0_42 = arith.constant 0 : index
    %c0_43 = arith.constant 0 : index
    %72 = vector.load %arg6[%c0_42, %c0_43] : memref<1x128xf32, #tpu.memory_space<vmem>>, vector<1x128xf32>
    %73 = vector.broadcast %72 : vector<1x128xf32> to vector<8x128xf32>
    %74 = arith.addf %71, %73 : vector<8x128xf32>
    %cst_44 = arith.constant 0.000000e+00 : f32
    %75 = vector.broadcast %cst_44 : f32 to vector<8x128xf32>
    %76 = arith.maximumf %74, %75 : vector<8x128xf32>
    %c0_45 = arith.constant 0 : index
    %c0_46 = arith.constant 0 : index
    %c0_47 = arith.constant 0 : index
    %77 = vector.load %arg1[%c0_45, %c0_46, %c0_47] : memref<4x8x32xf32, #tpu.memory_space<vmem>>, vector<1x8x32xf32>
    %78 = vector.shape_cast %77 : vector<1x8x32xf32> to vector<8x32xf32>
    %c1_48 = arith.constant 1 : index
    %c0_49 = arith.constant 0 : index
    %c0_50 = arith.constant 0 : index
    %79 = vector.load %arg1[%c1_48, %c0_49, %c0_50] : memref<4x8x32xf32, #tpu.memory_space<vmem>>, vector<1x8x32xf32>
    %80 = vector.shape_cast %79 : vector<1x8x32xf32> to vector<8x32xf32>
    %c2_51 = arith.constant 2 : index
    %c0_52 = arith.constant 0 : index
    %c0_53 = arith.constant 0 : index
    %81 = vector.load %arg1[%c2_51, %c0_52, %c0_53] : memref<4x8x32xf32, #tpu.memory_space<vmem>>, vector<1x8x32xf32>
    %82 = vector.shape_cast %81 : vector<1x8x32xf32> to vector<8x32xf32>
    %c3_54 = arith.constant 3 : index
    %c0_55 = arith.constant 0 : index
    %c0_56 = arith.constant 0 : index
    %83 = vector.load %arg1[%c3_54, %c0_55, %c0_56] : memref<4x8x32xf32, #tpu.memory_space<vmem>>, vector<1x8x32xf32>
    %84 = vector.shape_cast %83 : vector<1x8x32xf32> to vector<8x32xf32>
    %c0_57 = arith.constant 0 : index
    %c0_58 = arith.constant 0 : index
    %c0_59 = arith.constant 0 : index
    %85 = vector.load %arg2[%c0_57, %c0_58, %c0_59] : memref<4x8x32xf32, #tpu.memory_space<vmem>>, vector<1x8x32xf32>
    %86 = vector.shape_cast %85 : vector<1x8x32xf32> to vector<8x32xf32>
    %c1_60 = arith.constant 1 : index
    %c0_61 = arith.constant 0 : index
    %c0_62 = arith.constant 0 : index
    %87 = vector.load %arg2[%c1_60, %c0_61, %c0_62] : memref<4x8x32xf32, #tpu.memory_space<vmem>>, vector<1x8x32xf32>
    %88 = vector.shape_cast %87 : vector<1x8x32xf32> to vector<8x32xf32>
    %c2_63 = arith.constant 2 : index
    %c0_64 = arith.constant 0 : index
    %c0_65 = arith.constant 0 : index
    %89 = vector.load %arg2[%c2_63, %c0_64, %c0_65] : memref<4x8x32xf32, #tpu.memory_space<vmem>>, vector<1x8x32xf32>
    %90 = vector.shape_cast %89 : vector<1x8x32xf32> to vector<8x32xf32>
    %c3_66 = arith.constant 3 : index
    %c0_67 = arith.constant 0 : index
    %c0_68 = arith.constant 0 : index
    %91 = vector.load %arg2[%c3_66, %c0_67, %c0_68] : memref<4x8x32xf32, #tpu.memory_space<vmem>>, vector<1x8x32xf32>
    %92 = vector.shape_cast %91 : vector<1x8x32xf32> to vector<8x32xf32>
    %93 = arith.mulf %78, %86 : vector<8x32xf32>
    %94 = arith.mulf %80, %88 : vector<8x32xf32>
    %95 = arith.subf %93, %94 : vector<8x32xf32>
    %96 = arith.mulf %82, %90 : vector<8x32xf32>
    %97 = arith.subf %95, %96 : vector<8x32xf32>
    %98 = arith.mulf %84, %92 : vector<8x32xf32>
    %99 = arith.subf %97, %98 : vector<8x32xf32>
    %100 = arith.mulf %78, %88 : vector<8x32xf32>
    %101 = arith.mulf %80, %86 : vector<8x32xf32>
    %102 = arith.addf %100, %101 : vector<8x32xf32>
    %103 = arith.mulf %82, %92 : vector<8x32xf32>
    %104 = arith.addf %102, %103 : vector<8x32xf32>
    %105 = arith.mulf %84, %90 : vector<8x32xf32>
    %106 = arith.subf %104, %105 : vector<8x32xf32>
    %107 = arith.mulf %78, %90 : vector<8x32xf32>
    %108 = arith.mulf %80, %92 : vector<8x32xf32>
    %109 = arith.subf %107, %108 : vector<8x32xf32>
    %110 = arith.mulf %82, %86 : vector<8x32xf32>
    %111 = arith.addf %109, %110 : vector<8x32xf32>
    %112 = arith.mulf %84, %88 : vector<8x32xf32>
    %113 = arith.addf %111, %112 : vector<8x32xf32>
    %114 = arith.mulf %78, %92 : vector<8x32xf32>
    %115 = arith.mulf %80, %90 : vector<8x32xf32>
    %116 = arith.addf %114, %115 : vector<8x32xf32>
    %117 = arith.mulf %82, %88 : vector<8x32xf32>
    %118 = arith.subf %116, %117 : vector<8x32xf32>
    %119 = arith.mulf %84, %86 : vector<8x32xf32>
    %120 = arith.addf %118, %119 : vector<8x32xf32>
    %121 = tpu.concatenate %99, %106, %113, %120 in 1 : vector<8x32xf32>, vector<8x32xf32>, vector<8x32xf32>, vector<8x32xf32> -> vector<8x128xf32>
    %122 = arith.mulf %76, %121 : vector<8x128xf32>
    %c0_69 = arith.constant 0 : index
    %c0_70 = arith.constant 0 : index
    %123 = vector.load %arg7[%c0_69, %c0_70] : memref<64x128xf32, #tpu.memory_space<vmem>>, vector<64x128xf32>
    %cst_71 = arith.constant dense<0.000000e+00> : vector<8x64xf32>
    %124 = tpu.matmul %122, %123, %cst_71 {dimension_numbers = #tpu.dot_dimension_numbers<[1], [1], [0], [0], [0, 0, 1, 0], [], []>} : vector<8x128xf32>, vector<64x128xf32>, vector<8x64xf32> -> vector<8x64xf32>
    %cst_72 = arith.constant 0.000000e+00 : f32
    %125 = vector.broadcast %cst_72 : f32 to vector<8x64xf32>
    %126 = arith.subf %125, %124 : vector<8x64xf32>
    %127 = math.exp %126 : vector<8x64xf32>
    %cst_73 = arith.constant 1.000000e+00 : f32
    %128 = vector.broadcast %cst_73 : f32 to vector<8x64xf32>
    %129 = arith.addf %128, %127 : vector<8x64xf32>
    %cst_74 = arith.constant 1.000000e+00 : f32
    %130 = vector.broadcast %cst_74 : f32 to vector<8x64xf32>
    %131 = arith.divf %130, %129 : vector<8x64xf32>
    %c0_75 = arith.constant 0 : index
    %c0_76 = arith.constant 0 : index
    %132 = vector.load %arg8[%c0_75, %c0_76] : memref<8x64xf32, #tpu.memory_space<vmem>>, vector<8x64xf32>
    tpu.vector_store %arg8[%c0_75, %c0_76], %131 {strides = array<i32>} : memref<8x64xf32, #tpu.memory_space<vmem>>, vector<8x64xf32>,
    return
  }
}

</mosaic_0001>

<bundles_post_ra>
// kernel: convq_forward.1
= control target key start
LH: loop header
LB: loop body
LE: loop exit
PB: predicated region body
PF: predicated region fallthrough
CT: control target
= control target key end

     0   :  { %s7801_s0 = inlined_call_operand.vmem [shape: f32[9,8,256], index: 0, kind: input, shape index: {}]   ;;  %s7802_s1 = inlined_call_operand.vmem [shape: f32[4,8,32], index: 1, kind: input, shape index: {}]   ;;  %s7803_s2 = inlined_call_operand.vmem [shape: f32[4,8,32], index: 2, kind: input, shape index: {}]   ;;  %s7804_s3 = inlined_call_operand.vmem [shape: f32[9,4096], index: 3, kind: input, shape index: {}]   ;;  %s7805_s4 = inlined_call_operand.vmem [shape: f32[1,4096], index: 4, kind: input, shape index: {}]   ;;  %s7806_s5 = inlined_call_operand.vmem [shape: bf16[4096,128], index: 5, kind: input, shape index: {}]   ;;  %s7807_s6 = inlined_call_operand.vmem [shape: f32[1,128], index: 6, kind: input, shape index: {}]   ;;  %s7808_s7 = inlined_call_operand.vmem [shape: f32[64,128], index: 7, kind: input, shape index: {}]   ;;  %s7809_s8 = inlined_call_operand.hbm [shape: f32[8,64], index: 8, kind: output, shape index: {}]  }
   0x1   :  { %v5272_v0 = vld [vmem:[%s7806_s5 + $0x38] sm:$0xff]  ;;  %v5271_v4 = vld [vmem:[%s7806_s5 + $0x30] sm:$0xff]  ;;  %v5270_v8 = vld [vmem:[%s7806_s5 + $0x28] sm:$0xff] }
   0x2   :  { %v5280_v1 = vld [vmem:[%s7806_s5 + $0x78] sm:$0xff]  ;;  %3607 = vmatpush.bf16.msra.mxu0 %v5272_v0  ;;  %v5279_v5 = vld [vmem:[%s7806_s5 + $0x70] sm:$0xff]  ;;  %v5278_v9 = vld [vmem:[%s7806_s5 + $0x68] sm:$0xff] }
   0x3   :  { %v5288_v2 = vld [vmem:[%s7806_s5 + $0xb8] sm:$0xff]  ;;  %3620 = vmatpush.bf16.msra.mxu1 %v5280_v1  ;;  %v5287_v6 = vld [vmem:[%s7806_s5 + $0xb0] sm:$0xff]  ;;  %v5286_v10 = vld [vmem:[%s7806_s5 + $0xa8] sm:$0xff] }
   0x4   :  { %v5296_v3 = vld [vmem:[%s7806_s5 + $0xf8] sm:$0xff]  ;;  %3633 = vmatpush.bf16.msra.mxu2 %v5288_v2  ;;  %v5295_v7 = vld [vmem:[%s7806_s5 + $0xf0] sm:$0xff]  ;;  %v5294_v11 = vld [vmem:[%s7806_s5 + $0xe8] sm:$0xff] }
   0x5   :  { %3646 = vmatpush.bf16.msra.mxu3 %v5296_v3  ;;  %v5269_v12 = vld [vmem:[%s7806_s5 + $0x20] sm:$0xff]  ;;  %v5268_v16 = vld [vmem:[%s7806_s5 + $0x18] sm:$0xff]  ;;  %v5267_v20 = vld [vmem:[%s7806_s5 + $0x10] sm:$0xff] }
   0x6   :  { %3608 = vmatpush.bf16.msra.mxu0 %v5271_v4  ;;  %v5277_v13 = vld [vmem:[%s7806_s5 + $0x60] sm:$0xff]  ;;  %v5276_v17 = vld [vmem:[%s7806_s5 + $0x58] sm:$0xff]  ;;  %v5275_v21 = vld [vmem:[%s7806_s5 + $0x50] sm:$0xff] }
   0x7   :  { %3621 = vmatpush.bf16.msra.mxu1 %v5279_v5  ;;  %v5285_v14 = vld [vmem:[%s7806_s5 + $0xa0] sm:$0xff]  ;;  %v5284_v18 = vld [vmem:[%s7806_s5 + $0x98] sm:$0xff]  ;;  %v5283_v24 = vld [vmem:[%s7806_s5 + $0x90] sm:$0xff] }
   0x8   :  { %3634 = vmatpush.bf16.msra.mxu2 %v5287_v6  ;;  %v5293_v15 = vld [vmem:[%s7806_s5 + $0xe0] sm:$0xff]  ;;  %v5292_v19 = vld [vmem:[%s7806_s5 + $0xd8] sm:$0xff]  ;;  %v5291_v25 = vld [vmem:[%s7806_s5 + $0xd0] sm:$0xff] }
   0x9   :  { %3647 = vmatpush.bf16.msra.mxu3 %v5295_v7  ;;  %v32_v22 = vld [vmem:[%s7804_s3] ss:$8 sm:$0xf]  ;;  %v4157_v29 = vld [vmem:[%s7804_s3 + $0x1] ss:$8 sm:$0xf] }
   0xa   :  { %3609 = vmatpush.bf16.msra.mxu0 %v5270_v8  ;;  %v33_v23 = vld [vmem:[%s7804_s3] ss:$8 sm:$0xf0]  ;;  %v4158_v35 = vld [vmem:[%s7804_s3 + $0x1] ss:$8 sm:$0xf0] }
   0xb   :  { %3622 = vmatpush.bf16.msra.mxu1 %v5278_v9  ;;  %v5719_v26 = vor.u32 %v33_v23, %v32_v22  ;;  %v5266_v27 = vld [vmem:[%s7806_s5 + $0x8] sm:$0xff]  ;;  %v5739_v32 = vld [vmem:[%s7801_s0] sm:$0xff]  ;;  %v5745_v34 = vld [vmem:[%s7801_s0 + $0x10] sm:$0xff]  ;;  %v5750_v36 = vor.u32 %v4158_v35, %v4157_v29 }
   0xc   :  { %3635 = vmatpush.bf16.msra.mxu2 %v5286_v10  ;;  %v5274_v28 = vld [vmem:[%s7806_s5 + $0x48] sm:$0xff]  ;;  %v5265_v42 = vld [vmem:[%s7806_s5] sm:$0xff]  ;;  %v5794_v52 = vld [vmem:[%s7801_s0 + $0x30] sm:$0xff] }
   0xd   :  { %3648 = vmatpush.bf16.msra.mxu3 %v5294_v11  ;;  %v5282_v30 = vld [vmem:[%s7806_s5 + $0x88] sm:$0xff]  ;;  %v53_v33 = vperm.slane %v5719_v26, 2  ;;  %v5273_v43 = vld [vmem:[%s7806_s5 + $0x40] sm:$0xff]  ;;  %v204_v45 = vperm.slane %v5750_v36, 2  ;;  %v5304_v54 = vld [vmem:[%s7806_s5 + $0x138] sm:$0xff]  ;;  %v51_v61 = vperm.slane %v5719_v26, 0 }
   0xe   :  { %3610 = vmatpush.bf16.msra.mxu0 %v5269_v12  ;;  %v5290_v31 = vld [vmem:[%s7806_s5 + $0xc8] sm:$0xff]  ;;  %v5777_v46 = vld [vmem:[%s7801_s0 + $0x20] sm:$0xff]  ;;  %v5312_v55 = vld [vmem:[%s7806_s5 + $0x178] sm:$0xff]  ;;  %v202_v22 = vperm.slane %v5750_v36, 0 }
   0xf   :  { %3623 = vmatpush.bf16.msra.mxu1 %v5277_v13  ;;  %v4167_v37 = vld [vmem:[%s7804_s3 + $0x2] ss:$8 sm:$0xf]  ;;  %v4177_v40 = vld [vmem:[%s7804_s3 + $0x3] ss:$8 sm:$0xf]  ;;  %v117_v44 = vmul.f32 %v53_v33, %v5739_v32  ;;  %v268_v56 = vmul.f32 %v5745_v34, %v204_v45 }
  0x10   :  { %3636 = vmatpush.bf16.msra.mxu2 %v5285_v14  ;;  %v4168_v38 = vld [vmem:[%s7804_s3 + $0x2] ss:$8 sm:$0xf0]  ;;  %v4178_v41 = vld [vmem:[%s7804_s3 + $0x3] ss:$8 sm:$0xf0] }
  0x11   :  { %3649 = vmatpush.bf16.msra.mxu3 %v5293_v15  ;;  %v5758_v39 = vor.u32 %v4168_v38, %v4167_v37  ;;  %v5779_v47 = vor.u32 %v4178_v41, %v4177_v40  ;;  %v4187_v48 = vld [vmem:[%s7804_s3 + $0x4] ss:$8 sm:$0xf]  ;;  %v4197_v60 = vld [vmem:[%s7804_s3 + $0x5] ss:$8 sm:$0xf]  ;;  %v300_v3 = vadd.f32 %v268_v56, %v117_v44  ;;  %v266_v38 = vmul.f32 %v5745_v34, %v202_v22 }
  0x12   :  { %3611 = vmatpush.bf16.msra.mxu0 %v5268_v16  ;;  %v5281_v49 = vld [vmem:[%s7806_s5 + $0x80] sm:$0xff]  ;;  %v5320_v62 = vld [vmem:[%s7806_s5 + $0x1b8] sm:$0xff]  ;;  %v5836_v6 = vld [vmem:[%s7801_s0 + $0x50] sm:$0xff] }
  0x13   :  { %3624 = vmatpush.bf16.msra.mxu1 %v5276_v17  ;;  %v5289_v50 = vld [vmem:[%s7806_s5 + $0xc0] sm:$0xff]  ;;  %v355_v51 = vperm.slane %v5758_v39, 2  ;;  %v506_v57 = vperm.slane %v5779_v47, 2  ;;  %v5328_v2 = vld [vmem:[%s7806_s5 + $0x1f8] sm:$0xff]  ;;  %v5303_v23 = vld [vmem:[%s7806_s5 + $0x130] sm:$0xff]  ;;  %v353_v40 = vperm.slane %v5758_v39, 0 }
  0x14   :  { %3637 = vmatpush.bf16.msra.mxu2 %v5284_v18  ;;  %v4188_v53 = vld [vmem:[%s7804_s3 + $0x4] ss:$8 sm:$0xf0]  ;;  %v4198_v0 = vld [vmem:[%s7804_s3 + $0x5] ss:$8 sm:$0xf0] }
  0x15   :  { %3650 = vmatpush.bf16.msra.mxu3 %v5292_v19  ;;  %v5810_v58 = vld [vmem:[%s7801_s0 + $0x40] sm:$0xff]  ;;  %v5812_v59 = vor.u32 %v4188_v53, %v4187_v48  ;;  %v419_v63 = vmul.f32 %v5777_v46, %v355_v51  ;;  %v570_v4 = vmul.f32 %v5794_v52, %v506_v57  ;;  %v5838_v7 = vor.u32 %v4198_v0, %v4197_v60  ;;  %v5893_v33 = vld [vmem:[%s7801_s0 + $0x70] sm:$0xff] }
  0x16   :  { %3612 = vmatpush.bf16.msra.mxu0 %v5267_v20  ;;  %v4207_v1 = vld [vmem:[%s7804_s3 + $0x6] ss:$8 sm:$0xf]  ;;  %v4217_v10 = vld [vmem:[%s7804_s3 + $0x7] ss:$8 sm:$0xf] }
  0x17   :  { %3625 = vmatpush.bf16.msra.mxu1 %v5275_v21  ;;  %v657_v5 = vperm.slane %v5812_v59, 2  ;;  %v4208_v8 = vld [vmem:[%s7804_s3 + $0x6] ss:$8 sm:$0xf0]  ;;  %v451_v12 = vadd.f32 %v419_v63, %v300_v3  ;;  %v808_v14 = vperm.slane %v5838_v7, 2  ;;  %v115_v21 = vmul.f32 %v51_v61, %v5739_v32 }
  0x18   :  { %3638 = vmatpush.bf16.msra.mxu2 %v5283_v24  ;;  %v5843_v9 = vor.u32 %v4208_v8, %v4207_v1  ;;  %v4218_v11 = vld [vmem:[%s7804_s3 + $0x7] ss:$8 sm:$0xf0]  ;;  %v4227_v16 = vld [vmem:[%s7804_s3 + $0x100] ss:$8 sm:$0xf] }
  0x19   :  { %3651 = vmatpush.bf16.msra.mxu3 %v5291_v25  ;;  %v721_v13 = vmul.f32 %v5810_v58, %v657_v5  ;;  %v5853_v15 = vor.u32 %v4218_v11, %v4217_v10  ;;  %v5861_v17 = vld [vmem:[%s7805_s4] sm:$0xff]  ;;  %v5311_v24 = vld [vmem:[%s7806_s5 + $0x170] sm:$0xff]  ;;  %v504_v41 = vperm.slane %v5779_v47, 0  ;;  %v655_v45 = vperm.slane %v5812_v59, 0 }
  0x1a   :  { %3613 = vmatpush.bf16.msra.mxu0 %v5266_v27  ;;  %v5866_v18 = vld [vmem:[%s7801_s0 + $0x60] sm:$0xff]  ;;  %v959_v19 = vperm.slane %v5843_v9, 2  ;;  %v5319_v25 = vld [vmem:[%s7806_s5 + $0x1b0] sm:$0xff]  ;;  %v602_v27 = vadd.f32 %v570_v4, %v451_v12  ;;  %v1397_v37 = vperm.slane %v5861_v17, 2  ;;  %v298_v48 = vadd.f32 %v266_v38, %v115_v21 }
  0x1b   :  { %3626 = vmatpush.bf16.msra.mxu1 %v5274_v28  ;;  %v4228_v20 = vld [vmem:[%s7804_s3 + $0x100] ss:$8 sm:$0xf0]  ;;  %v872_v28 = vmul.f32 %v5836_v6, %v808_v14  ;;  %v1110_v29 = vperm.slane %v5853_v15, 2  ;;  %v806_v51 = vperm.slane %v5838_v7, 0 }
  0x1c   :  { %3639 = vmatpush.bf16.msra.mxu2 %v5282_v30  ;;  %v5885_v30 = vor.u32 %v4228_v20, %v4227_v16  ;;  %v5898_v35 = vld [vmem:[%s7801_s0 + $0x80] sm:$0xff] }
  0x1d   :  { %3652 = vmatpush.bf16.msra.mxu3 %v5290_v31  ;;  %v5327_v31 = vld [vmem:[%s7806_s5 + $0x1f0] sm:$0xff] }
  0x1e   :  { %3614 = vmatpush.bf16.msra.mxu0 %v5265_v42  ;;  %v753_v42 = vadd.f32 %v721_v13, %v602_v27  ;;  %v1261_v44 = vperm.slane %v5885_v30, 2 }
  0x1f   :  { %3627 = vmatpush.bf16.msra.mxu1 %v5273_v43  ;;  %v1023_v43 = vmul.f32 %v5866_v18, %v959_v19 }
  0x20   :  { %3640 = vmatpush.bf16.msra.mxu2 %v5281_v49  ;;  %v417_v49 = vmul.f32 %v5777_v46, %v353_v40 }
  0x21   :  { %3653 = vmatpush.bf16.msra.mxu3 %v5289_v50  ;;  %v568_v50 = vmul.f32 %v5794_v52, %v504_v41 }
  0x22   :  { %3659 = vmatpush.bf16.msrb.mxu0 %v5304_v54 }
  0x23   :  { %3672 = vmatpush.bf16.msrb.mxu1 %v5312_v55 }
  0x24   :  { %3685 = vmatpush.bf16.msrb.mxu2 %v5320_v62 }
  0x25   :  { %3698 = vmatpush.bf16.msrb.mxu3 %v5328_v2 }
  0x26   :  { %13 = vsyncpa [#allocation3], 0  ;;  %3660 = vmatpush.bf16.msrb.mxu0 %v5303_v23  ;;  %v5302_v53 = vld [vmem:[%s7806_s5 + $0x128] sm:$0xff]  ;;  %v904_v55 = vadd.f32 %v872_v28, %v753_v42  ;;  %v1174_v56 = vmul.f32 %v5893_v33, %v1110_v29  ;;  %v1325_v57 = vmul.f32 %v5898_v35, %v1261_v44  ;;  %v957_v60 = vperm.slane %v5843_v9, 0  ;;  %v5939_v11 = vld [vmem:[%s7801_s0 + $0x18] sm:$0xff]  ;;  %s5594_s26 = smov 64  }
  0x27   :  { %3673 = vmatpush.bf16.msrb.mxu1 %v5311_v24  ;;  %v5310_v54 = vld [vmem:[%s7806_s5 + $0x168] sm:$0xff]  ;;  %v449_v63 = vadd.f32 %v417_v49, %v298_v48  ;;  %v719_v0 = vmul.f32 %v5810_v58, %v655_v45  ;;  %v870_v1 = vmul.f32 %v5836_v6, %v806_v51  ;;  %v1108_v2 = vperm.slane %v5853_v15, 0  ;;  %v5301_v12 = vld [vmem:[%s7806_s5 + $0x120] sm:$0xff]  ;;  %v5963_v27 = vld [vmem:[%s7801_s0 + $0x38] sm:$0xff]  ;;  %s4140_s20 = sshll.u32 %s7809_s8, 4  ;;  %s4141_s20 = int_to_ptr.hbm [resolvable:$true] %s4140_s20 }
  0x28   :  { %3686 = vmatpush.bf16.msrb.mxu2 %v5319_v25  ;;  %v5318_v61 = vld [vmem:[%s7806_s5 + $0x1a8] sm:$0xff]  ;;  %v1055_v4 = vadd.f32 %v1023_v43, %v904_v55  ;;  %v1021_v5 = vmul.f32 %v5866_v18, %v957_v60  ;;  %v1259_v8 = vperm.slane %v5885_v30, 0  ;;  %v54_v10 = vperm.slane %v5719_v26, 3  ;;  %v5309_v13 = vld [vmem:[%s7806_s5 + $0x160] sm:$0xff]  ;;  %v5979_v42 = vld [vmem:[%s7801_s0 + $0x58] sm:$0xff] }
  0x29   :  { %3699 = vmatpush.bf16.msrb.mxu3 %v5327_v31  ;;  %v5326_v62 = vld [vmem:[%s7806_s5 + $0x1e8] sm:$0xff]  ;;  %v600_v14 = vadd.f32 %v568_v50, %v449_v63  ;;  %v1172_v16 = vmul.f32 %v5893_v33, %v1108_v2  ;;  %v1395_v19 = vperm.slane %v5861_v17, 0  ;;  %v205_v20 = vperm.slane %v5750_v36, 3  ;;  %v5317_v22 = vld [vmem:[%s7806_s5 + $0x1a0] sm:$0xff]  ;;  %v5308_v60 = vld [vmem:[%s7806_s5 + $0x158] sm:$0xff] }
  0x2a   :  { %v5931_v3 = vld [vmem:[%s7801_s0 + $0x8] sm:$0xff]  ;;  %3661 = vmatpush.bf16.msrb.mxu0 %v5302_v53  ;;  %v1206_v23 = vadd.f32 %v1174_v56, %v1055_v4  ;;  %v356_v25 = vperm.slane %v5758_v39, 3  ;;  %v507_v28 = vperm.slane %v5779_v47, 3  ;;  %v5325_v31 = vld [vmem:[%s7806_s5 + $0x1e0] sm:$0xff]  ;;  %v658_v41 = vperm.slane %v5812_v59, 3  ;;  %v5995_v56 = vld [vmem:[%s7801_s0 + $0x78] sm:$0xff] }
  0x2b   :  { %v5953_v21 = vld [vmem:[%s7801_s0 + $0x28] sm:$0xff]  ;;  %3674 = vmatpush.bf16.msrb.mxu1 %v5310_v54  ;;  %v118_v24 = vmul.f32 %v54_v10, %v5931_v3  ;;  %v751_v38 = vadd.f32 %v719_v0, %v600_v14  ;;  %v269_v40 = vmul.f32 %v5939_v11, %v205_v20  ;;  %v809_v43 = vperm.slane %v5838_v7, 3  ;;  %v5324_v2 = vld [vmem:[%s7806_s5 + $0x1d8] sm:$0xff] }
  0x2c   :  { %v5969_v29 = vld [vmem:[%s7801_s0 + $0x48] sm:$0xff]  ;;  %3687 = vmatpush.bf16.msrb.mxu2 %v5318_v61  ;;  %v1357_v45 = vadd.f32 %v1325_v57, %v1206_v23  ;;  %v1323_v48 = vmul.f32 %v5898_v35, %v1259_v8  ;;  %v420_v49 = vmul.f32 %v5953_v21, %v356_v25  ;;  %v960_v50 = vperm.slane %v5843_v9, 3  ;;  %v5300_v57 = vld [vmem:[%s7806_s5 + $0x118] sm:$0xff] }
  0x2d   :  { %3700 = vmatpush.bf16.msrb.mxu3 %v5326_v62  ;;  %v5985_v44 = vld [vmem:[%s7801_s0 + $0x68] sm:$0xff]  ;;  %v902_v51 = vadd.f32 %v870_v1, %v751_v38  ;;  %v301_v53 = vadd.f32 %v269_v40, %v118_v24  ;;  %v571_v54 = vmul.f32 %v5963_v27, %v507_v28  ;;  %v722_v55 = vmul.f32 %v5969_v29, %v658_v41  ;;  %v5316_v1 = vld [vmem:[%s7806_s5 + $0x198] sm:$0xff]  ;;  %v5299_v28 = vld [vmem:[%s7806_s5 + $0x110] sm:$0xff] }
  0x2e   :  { %3662 = vmatpush.bf16.msrb.mxu0 %v5301_v12  ;;  %v1461_v61 = vadd.f32 %v1397_v37, %v1357_v45  ;;  %v873_v62 = vmul.f32 %v5979_v42, %v809_v43  ;;  %v1024_v63 = vmul.f32 %v5985_v44, %v960_v50  ;;  %v1111_v0 = vperm.slane %v5853_v15, 3  ;;  %v6022_v24 = vld [vmem:[%s7801_s0 + $0x88] sm:$0xff]  ;;  %v5315_v43 = vld [vmem:[%s7806_s5 + $0x190] sm:$0xff] }
  0x2f   :  { %3675 = vmatpush.bf16.msrb.mxu1 %v5309_v13  ;;  %v1053_v4 = vadd.f32 %v1021_v5, %v902_v51  ;;  %v452_v8 = vadd.f32 %v420_v49, %v301_v53  ;;  %v1262_v37 = vperm.slane %v5885_v30, 3  ;;  %v52_v10 = vperm.slane %v5719_v26, 1  ;;  %v5323_v45 = vld [vmem:[%s7806_s5 + $0x1d0] sm:$0xff] }
  0x30   :  { %3688 = vmatpush.bf16.msrb.mxu2 %v5317_v22  ;;  %v1493_v12 = vmax.f32 %v1461_v61, 0.0  ;;  %v1175_v13 = vmul.f32 %v5995_v56, %v1111_v0  ;;  %v1398_v14 = vperm.slane %v5861_v17, 3  ;;  %v203_v20 = vperm.slane %v5750_v36, 1 }
  0x31   :  { %3701 = vmatpush.bf16.msrb.mxu3 %v5325_v31  ;;  %v1204_v22 = vadd.f32 %v1172_v16, %v1053_v4  ;;  %v603_v23 = vadd.f32 %v571_v54, %v452_v8  ;;  %v116_v5 = vmul.f32 %v52_v10, %v5931_v3  ;;  %v354_v25 = vperm.slane %v5758_v39, 1  ;;  %v5307_v16 = vld [vmem:[%s7806_s5 + $0x150] sm:$0xff]  ;;  %v5306_v4 = vld [vmem:[%s7806_s5 + $0x148] sm:$0xff] }
  0x32   :  { %3663 = vmatpush.bf16.msrb.mxu0 %v5300_v57  ;;  %v1525_v31 = vpack.c.bf16 %v1493_v12, %v1493_v12  ;;  %v267_v38 = vmul.f32 %v5939_v11, %v203_v20  ;;  %v505_v40 = vperm.slane %v5779_v47, 1  ;;  %v656_v41 = vperm.slane %v5812_v59, 1  ;;  %v5314_v20 = vld [vmem:[%s7806_s5 + $0x188] sm:$0xff] }
  0x33   :  { %3676 = vmatpush.bf16.msrb.mxu1 %v5308_v60  ;;  %v1355_v49 = vadd.f32 %v1323_v48, %v1204_v22  ;;  %v754_v50 = vadd.f32 %v722_v55, %v603_v23  ;;  %v418_v51 = vmul.f32 %v5953_v21, %v354_v25  ;;  %v807_v53 = vperm.slane %v5838_v7, 1  ;;  %v5298_v55 = vld [vmem:[%s7806_s5 + $0x108] sm:$0xff] }
  0x34   :  { %3689 = vmatpush.bf16.msrb.mxu2 %v5316_v1  ;;  %v1326_v54 = vmul.f32 %v6022_v24, %v1262_v37  ;;  %v299_v57 = vadd.f32 %v267_v38, %v116_v5  ;;  %v569_v60 = vmul.f32 %v5963_v27, %v505_v40  ;;  %v958_v61 = vperm.slane %v5843_v9, 1  ;;  %v5322_v5 = vld [vmem:[%s7806_s5 + $0x1c8] sm:$0xff] }
  0x35   :  { %3702 = vmatpush.bf16.msrb.mxu3 %v5324_v2  ;;  %3641 = vmatmul.bf16.vlgmr.msra.gmra.mxu2 %v1525_v31  ;;  %v1459_v0 = vadd.f32 %v1395_v19, %v1355_v49  ;;  %v905_v1 = vadd.f32 %v873_v62, %v754_v50  ;;  %v720_v2 = vmul.f32 %v5969_v29, %v656_v41  ;;  %v1109_v48 = vperm.slane %v5853_v15, 1  ;;  %v5305_v49 = vld [vmem:[%s7806_s5 + $0x140] sm:$0xff] }
  0x36   :  { %3664 = vmatpush.bf16.msrb.mxu0 %v5299_v28  ;;  %v450_v8 = vadd.f32 %v418_v51, %v299_v57  ;;  %v871_v37 = vmul.f32 %v5979_v42, %v807_v53  ;;  %v1022_v19 = vmul.f32 %v5985_v44, %v958_v61  ;;  %v1260_v62 = vperm.slane %v5885_v30, 1  ;;  %v5336_v61 = vld [vmem:[%s7806_s5 + $0x238] sm:$0xff] }
  0x37   :  { %3677 = vmatpush.bf16.msrb.mxu1 %v5307_v16  ;;  %v1491_v10 = vmax.f32 %v1459_v0, 0.0  ;;  %v1056_v12 = vadd.f32 %v1024_v63, %v905_v1  ;;  %v1396_v22 = vperm.slane %v5861_v17, 1  ;;  %v57_v23 = vperm.slane %v5719_v26, 6 }
  0x38   :  { %3690 = vmatpush.bf16.msrb.mxu2 %v5315_v43  ;;  %v601_v25 = vadd.f32 %v569_v60, %v450_v8  ;;  %v1173_v28 = vmul.f32 %v5995_v56, %v1109_v48  ;;  %v208_v16 = vperm.slane %v5750_v36, 6  ;;  %v359_v31 = vperm.slane %v5758_v39, 6  ;;  %v5313_v60 = vld [vmem:[%s7806_s5 + $0x180] sm:$0xff]  ;;  %v5352_v48 = vld [vmem:[%s7806_s5 + $0x2b8] sm:$0xff] }
  0x39   :  { %3703 = vmatpush.bf16.msrb.mxu3 %v5323_v45  ;;  %v1523_v63 = vpack.c.bf16 %v1491_v10, %v1491_v10  ;;  %v1207_v38 = vadd.f32 %v1175_v13, %v1056_v12  ;;  %v121_v40 = vmul.f32 %v57_v23, %v5739_v32  ;;  %v510_v41 = vperm.slane %v5779_v47, 6  ;;  %v5297_v45 = vld [vmem:[%s7806_s5 + $0x100] sm:$0xff] }
  0x3a   :  { %3665 = vmatpush.bf16.msrb.mxu0 %v5298_v55  ;;  %v752_v43 = vadd.f32 %v720_v2, %v601_v25  ;;  %v272_v50 = vmul.f32 %v5745_v34, %v208_v16  ;;  %v423_v51 = vmul.f32 %v5777_v46, %v359_v31  ;;  %v661_v13 = vperm.slane %v5812_v59, 6 }
  0x3b   :  { %3678 = vmatpush.bf16.msrb.mxu1 %v5306_v4  ;;  %3615 = vmatmul.bf16.vlgmr.msra.gmra.mxu0 %v1523_v63  ;;  %v1358_v53 = vadd.f32 %v1326_v54, %v1207_v38  ;;  %v1324_v57 = vmul.f32 %v6022_v24, %v1260_v62  ;;  %v812_v0 = vperm.slane %v5838_v7, 6  ;;  %v963_v1 = vperm.slane %v5843_v9, 6  ;;  %v5321_v54 = vld [vmem:[%s7806_s5 + $0x1c0] sm:$0xff] }
  0x3c   :  { %3691 = vmatpush.bf16.msrb.mxu2 %v5314_v20  ;;  %v903_v2 = vadd.f32 %v871_v37, %v752_v43  ;;  %v304_v55 = vadd.f32 %v272_v50, %v121_v40  ;;  %v574_v4 = vmul.f32 %v5794_v52, %v510_v41  ;;  %v1114_v8 = vperm.slane %v5853_v15, 6  ;;  %v5360_v40 = vld [vmem:[%s7806_s5 + $0x2f8] sm:$0xff]  ;;  %v5351_v41 = vld [vmem:[%s7806_s5 + $0x2b0] sm:$0xff] }
  0x3d   :  { %3704 = vmatpush.bf16.msrb.mxu3 %v5322_v5  ;;  %v1462_v62 = vadd.f32 %v1398_v14, %v1358_v53  ;;  %v725_v10 = vmul.f32 %v5810_v58, %v661_v13  ;;  %v876_v37 = vmul.f32 %v5836_v6, %v812_v0  ;;  %v1027_v12 = vmul.f32 %v5866_v18, %v963_v1  ;;  %v5335_v14 = vld [vmem:[%s7806_s5 + $0x230] sm:$0xff]  ;;  %v5334_v1 = vld [vmem:[%s7806_s5 + $0x228] sm:$0xff] }
  0x3e   :  { %v1054_v20 = vadd.f32 %v1022_v19, %v903_v2  ;;  %3666 = vmatpush.bf16.msrb.mxu0 %v5297_v45  ;;  %v455_v23 = vadd.f32 %v423_v51, %v304_v55  ;;  %v1178_v5 = vmul.f32 %v5893_v33, %v1114_v8  ;;  %v1265_v25 = vperm.slane %v5885_v30, 6 }
  0x3f   :  { %3679 = vmatpush.bf16.msrb.mxu1 %v5305_v49  ;;  %v1494_v16 = vmax.f32 %v1462_v62, 0.0  ;;  %v1401_v31 = vperm.slane %v5861_v17, 6  ;;  %v55_v63 = vperm.slane %v5719_v26, 4  ;;  %v206_v19 = vperm.slane %v5750_v36, 4  ;;  %v5350_v62 = vld [vmem:[%s7806_s5 + $0x2a8] sm:$0xff] }
  0x40   :  { %3692 = vmatpush.bf16.msrb.mxu2 %v5313_v60  ;;  %v1205_v38 = vadd.f32 %v1173_v28, %v1054_v20  ;;  %v606_v43 = vadd.f32 %v574_v4, %v455_v23  ;;  %v357_v45 = vperm.slane %v5758_v39, 4  ;;  %v508_v49 = vperm.slane %v5779_v47, 4  ;;  %v5359_v4 = vld [vmem:[%s7806_s5 + $0x2f0] sm:$0xff] }
  0x41   :  { %3705 = vmatpush.bf16.msrb.mxu3 %v5321_v54  ;;  %v1526_v50 = vpack.c.bf16 %v1494_v16, %v1494_v16  ;;  %v119_v51 = vmul.f32 %v55_v63, %v5739_v32  ;;  %v270_v28 = vmul.f32 %v5745_v34, %v206_v19  ;;  %v659_v13 = vperm.slane %v5812_v59, 4 }
  0x42   :  { %3711 = vmatpush.bf16.msra.mxu0 %v5336_v61  ;;  %v1356_v53 = vadd.f32 %v1324_v57, %v1205_v38  ;;  %v757_v60 = vadd.f32 %v725_v10, %v606_v43  ;;  %v1329_v61 = vmul.f32 %v5898_v35, %v1265_v25  ;;  %v421_v0 = vmul.f32 %v5777_v46, %v357_v45  ;;  %v5344_v38 = vld [vmem:[%s7806_s5 + $0x278] sm:$0xff] }
  0x43   :  { %3654 = vmatmul.bf16.vlgmr.msra.gmra.mxu3 %v1526_v50  ;;  %v302_v2 = vadd.f32 %v270_v28, %v119_v51  ;;  %v572_v54 = vmul.f32 %v5794_v52, %v508_v49  ;;  %v961_v55 = vperm.slane %v5843_v9, 4  ;;  %v723_v10 = vmul.f32 %v5810_v58, %v659_v13  ;;  %v5358_v51 = vld [vmem:[%s7806_s5 + $0x2e8] sm:$0xff] }
  0x44   :  { %3737 = vmatpush.bf16.msra.mxu2 %v5352_v48  ;;  %v810_v48 = vperm.slane %v5838_v7, 4  ;;  %v1460_v57 = vadd.f32 %v1396_v22, %v1356_v53  ;;  %v908_v8 = vadd.f32 %v876_v37, %v757_v60  ;;  %v1112_v20 = vperm.slane %v5853_v15, 4  ;;  %v5349_v53 = vld [vmem:[%s7806_s5 + $0x2a0] sm:$0xff] }
  0x45   :  { %3750 = vmatpush.bf16.msra.mxu3 %v5360_v40  ;;  %v453_v23 = vadd.f32 %v421_v0, %v302_v2  ;;  %v1025_v22 = vmul.f32 %v5866_v18, %v961_v55  ;;  %v1263_v16 = vperm.slane %v5885_v30, 4  ;;  %v1399_v37 = vperm.slane %v5861_v17, 4 }
  0x46   :  { %3712 = vmatpush.bf16.msra.mxu0 %v5335_v14  ;;  %v874_v25 = vmul.f32 %v5836_v6, %v810_v48  ;;  %v1492_v14 = vmax.f32 %v1460_v57, 0.0  ;;  %v1059_v63 = vadd.f32 %v1027_v12, %v908_v8  ;;  %v1176_v19 = vmul.f32 %v5893_v33, %v1112_v20  ;;  %v5333_v12 = vld [vmem:[%s7806_s5 + $0x220] sm:$0xff]  ;;  %v5343_v57 = vld [vmem:[%s7806_s5 + $0x270] sm:$0xff] }
  0x47   :  { %v604_v40 = vadd.f32 %v572_v54, %v453_v23  ;;  %v209_v43 = vperm.slane %v5750_v36, 7  ;;  %v360_v45 = vperm.slane %v5758_v39, 7  ;;  %v511_v28 = vperm.slane %v5779_v47, 7 }
  0x48   :  { %3738 = vmatpush.bf16.msra.mxu2 %v5351_v41  ;;  %v58_v41 = vperm.slane %v5719_v26, 7  ;;  %v1524_v49 = vpack.c.bf16 %v1492_v14, %v1492_v14  ;;  %v1210_v50 = vadd.f32 %v1178_v5, %v1059_v63  ;;  %v662_v13 = vperm.slane %v5812_v59, 7  ;;  %v5357_v14 = vld [vmem:[%s7806_s5 + $0x2e0] sm:$0xff]  ;;  %v5348_v63 = vld [vmem:[%s7806_s5 + $0x298] sm:$0xff] }
  0x49   :  { %3751 = vmatpush.bf16.msra.mxu3 %v5359_v4  ;;  %v755_v60 = vadd.f32 %v723_v10, %v604_v40  ;;  %v424_v5 = vmul.f32 %v5953_v21, %v360_v45  ;;  %v1327_v54 = vmul.f32 %v5898_v35, %v1263_v16  ;;  %v575_v48 = vmul.f32 %v5963_v27, %v511_v28 }
  0x4a   :  { %3713 = vmatpush.bf16.msra.mxu0 %v5334_v1  ;;  %v122_v0 = vmul.f32 %v58_v41, %v5931_v3  ;;  %v273_v1 = vmul.f32 %v5939_v11, %v209_v43  ;;  %3628 = vmatmul.bf16.vlgmr.msra.gmra.mxu1 %v1524_v49  ;;  %v1361_v2 = vadd.f32 %v1329_v61, %v1210_v50  ;;  %v813_v55 = vperm.slane %v5838_v7, 7  ;;  %v5332_v61 = vld [vmem:[%s7806_s5 + $0x218] sm:$0xff]  ;;  %v5342_v50 = vld [vmem:[%s7806_s5 + $0x268] sm:$0xff] }
  0x4b   :  { %3724 = vmatpush.bf16.msra.mxu1 %v5344_v38  ;;  %v906_v4 = vadd.f32 %v874_v25, %v755_v60  ;;  %v1115_v10 = vperm.slane %v5853_v15, 7  ;;  %v726_v23 = vmul.f32 %v5969_v29, %v662_v13  ;;  %v1266_v25 = vperm.slane %v5885_v30, 7 }
  0x4c   :  { %3739 = vmatpush.bf16.msra.mxu2 %v5350_v62  ;;  %v305_v8 = vadd.f32 %v273_v1, %v122_v0  ;;  %v964_v62 = vperm.slane %v5843_v9, 7  ;;  %v1465_v20 = vadd.f32 %v1401_v31, %v1361_v2  ;;  %v877_v16 = vmul.f32 %v5979_v42, %v813_v55  ;;  %v4159_v55 = vld [vmem:[%s7804_s3 + $0x41] ss:$8 sm:$0xf] }
  0x4d   :  { %3752 = vmatpush.bf16.msra.mxu3 %v5358_v51  ;;  %v1057_v38 = vadd.f32 %v1025_v22, %v906_v4  ;;  %v6189_v41 = vmul.f32 %v5995_v56, %v1115_v10  ;;  %v6192_v45 = vmul.f32 %v6022_v24, %v1266_v25  ;;  %v207_v49 = vperm.slane %v5750_v36, 5  ;;  %v4170_v4 = vld [vmem:[%s7804_s3 + $0x42] ss:$8 sm:$0xf0] }
  0x4e   :  { %3714 = vmatpush.bf16.msra.mxu0 %v5333_v12  ;;  %v456_v40 = vadd.f32 %v424_v5, %v305_v8  ;;  %v1028_v31 = vmul.f32 %v5985_v44, %v964_v62  ;;  %v1497_v43 = vmax.f32 %v1465_v20, 0.0  ;;  %v56_v12 = vperm.slane %v5719_v26, 5  ;;  %v4179_v20 = vld [vmem:[%s7804_s3 + $0x43] ss:$8 sm:$0xf] }
  0x4f   :  { %3725 = vmatpush.bf16.msra.mxu1 %v5343_v57  ;;  %v1208_v22 = vadd.f32 %v1176_v19, %v1057_v38  ;;  %v358_v28 = vperm.slane %v5758_v39, 5  ;;  %v509_v13 = vperm.slane %v5779_v47, 5  ;;  %v271_v36 = vmul.f32 %v5939_v11, %v207_v49  ;;  %v5356_v39 = vld [vmem:[%s7806_s5 + $0x2d8] sm:$0xff]  ;;  %v5347_v47 = vld [vmem:[%s7806_s5 + $0x290] sm:$0xff] }
  0x50   :  { %3740 = vmatpush.bf16.msra.mxu2 %v5349_v53  ;;  %v607_v51 = vadd.f32 %v575_v48, %v456_v40  ;;  %v5331_v53 = vld [vmem:[%s7806_s5 + $0x210] sm:$0xff]  ;;  %v1529_v60 = vpack.c.bf16 %v1497_v43, %v1497_v43  ;;  %v120_v26 = vmul.f32 %v56_v12, %v5931_v3  ;;  %v660_v0 = vperm.slane %v5812_v59, 5 }
  0x51   :  { %3753 = vmatpush.bf16.msra.mxu3 %v5357_v14  ;;  %v1359_v19 = vadd.f32 %v1327_v54, %v1208_v22  ;;  %v422_v5 = vmul.f32 %v5953_v21, %v358_v28  ;;  %v573_v2 = vmul.f32 %v5963_v27, %v509_v13  ;;  %v4149_v59 = vld [vmem:[%s7804_s3 + $0x40] ss:$8 sm:$0xf]  ;;  %v4160_v54 = vld [vmem:[%s7804_s3 + $0x41] ss:$8 sm:$0xf0] }
  0x52   :  { %3715 = vmatpush.bf16.msra.mxu0 %v5332_v61  ;;  %v758_v1 = vadd.f32 %v726_v23, %v607_v51  ;;  %v4150_v48 = vld [vmem:[%s7804_s3 + $0x40] ss:$8 sm:$0xf0]  ;;  %v4169_v57 = vld [vmem:[%s7804_s3 + $0x42] ss:$8 sm:$0xf]  ;;  %3693 = vmatmul.bf16.vlgmr.msrb.gmra.mxu2 %v1529_v60  ;;  %v303_v8 = vadd.f32 %v271_v36, %v120_v26  ;;  %v724_v62 = vmul.f32 %v5969_v29, %v660_v0 }
  0x53   :  { %v811_v10 = vperm.slane %v5838_v7, 5  ;;  %v962_v61 = vperm.slane %v5843_v9, 5  ;;  %v4180_v23 = vld [vmem:[%s7804_s3 + $0x43] ss:$8 sm:$0xf0]  ;;  %3726 = vmatpush.bf16.msra.mxu1 %v5342_v50  ;;  %v1463_v25 = vadd.f32 %v1399_v37, %v1359_v19  ;;  %v1264_v38 = vperm.slane %v5885_v30, 5 }
  0x54   :  { %3741 = vmatpush.bf16.msra.mxu2 %v5348_v63  ;;  %v909_v14 = vadd.f32 %v877_v16, %v758_v1  ;;  %v1113_v63 = vperm.slane %v5853_v15, 5  ;;  %v5341_v7 = vld [vmem:[%s7806_s5 + $0x260] sm:$0xff]  ;;  %v5330_v9 = vld [vmem:[%s7806_s5 + $0x208] sm:$0xff]  ;;  %v454_v40 = vadd.f32 %v422_v5, %v303_v8  ;;  %v5355_v15 = vld [vmem:[%s7806_s5 + $0x2d0] sm:$0xff]  ;;  %v6280_v60 = vor.u32 %v4160_v54, %v4159_v55 }
  0x55   :  { %v875_v43 = vmul.f32 %v5979_v42, %v811_v10  ;;  %v1026_v12 = vmul.f32 %v5985_v44, %v962_v61  ;;  %3754 = vmatpush.bf16.msra.mxu3 %v5356_v39  ;;  %v5346_v30 = vld [vmem:[%s7806_s5 + $0x288] sm:$0xff]  ;;  %v1495_v16 = vmax.f32 %v1463_v25, 0.0  ;;  %v6267_v22 = vmul.f32 %v6022_v24, %v1264_v38  ;;  %v5340_v51 = vld [vmem:[%s7806_s5 + $0x258] sm:$0xff]  ;;  %v5329_v1 = vld [vmem:[%s7806_s5 + $0x200] sm:$0xff] }
  0x56   :  { %3716 = vmatpush.bf16.msra.mxu0 %v5331_v53  ;;  %v4189_v37 = vld [vmem:[%s7804_s3 + $0x44] ss:$8 sm:$0xf]  ;;  %v1060_v49 = vadd.f32 %v1028_v31, %v909_v14  ;;  %v6264_v50 = vmul.f32 %v5995_v56, %v1113_v63  ;;  %v605_v13 = vadd.f32 %v573_v2, %v454_v40  ;;  %v6278_v31 = vor.u32 %v4150_v48, %v4149_v59  ;;  %v4199_v36 = vld [vmem:[%s7804_s3 + $0x45] ss:$8 sm:$0xf] }
  0x57   :  { %v4190_v28 = vld [vmem:[%s7804_s3 + $0x44] ss:$8 sm:$0xf0]  ;;  %v6282_v26 = vor.u32 %v4170_v4, %v4169_v57  ;;  %v4200_v0 = vld [vmem:[%s7804_s3 + $0x45] ss:$8 sm:$0xf0]  ;;  %v1527_v39 = vpack.c.bf16 %v1495_v16, %v1495_v16  ;;  %3727 = vmatpush.bf16.msra.mxu1 %v5341_v7  ;;  %v6298_v2 = vor.u32 %v4180_v23, %v4179_v20 }
  0x58   :  { %3742 = vmatpush.bf16.msra.mxu2 %v5347_v47  ;;  %v5354_v53 = vld [vmem:[%s7806_s5 + $0x2c8] sm:$0xff]  ;;  %v1211_v47 = vadd.f32 %v6189_v41, %v1060_v49  ;;  %v1402_v19 = vperm.slane %v5861_v17, 7  ;;  %v5345_v5 = vld [vmem:[%s7806_s5 + $0x280] sm:$0xff]  ;;  %v756_v48 = vadd.f32 %v724_v62, %v605_v13  ;;  %v59_v41 = vperm.slane %v6278_v31, 0  ;;  %v5368_v8 = vld [vmem:[%s7806_s5 + $0x338] sm:$0xff] }
  0x59   :  { %v4209_v59 = vld [vmem:[%s7804_s3 + $0x46] ss:$8 sm:$0xf]  ;;  %3755 = vmatpush.bf16.msra.mxu3 %v5355_v15  ;;  %v210_v55 = vperm.slane %v6280_v60, 0  ;;  %v361_v54 = vperm.slane %v6282_v26, 0  ;;  %3667 = vmatmul.bf16.vlgmr.msrb.gmra.mxu0 %v1527_v39  ;;  %v512_v10 = vperm.slane %v6298_v2, 0  ;;  %v6317_v61 = vor.u32 %v4190_v28, %v4189_v37 }
  0x5a   :  { %3717 = vmatpush.bf16.msra.mxu0 %v5330_v9  ;;  %v4210_v57 = vld [vmem:[%s7804_s3 + $0x46] ss:$8 sm:$0xf0]  ;;  %v1362_v4 = vadd.f32 %v6192_v45, %v1211_v47  ;;  %v6319_v20 = vor.u32 %v4200_v0, %v4199_v36  ;;  %v4219_v23 = vld [vmem:[%s7804_s3 + $0x47] ss:$8 sm:$0xf]  ;;  %v907_v25 = vadd.f32 %v875_v43, %v756_v48  ;;  %v123_v45 = vmul.f32 %v59_v41, %v5739_v32 }
  0x5b   :  { %v5384_v62 = vld [vmem:[%s7806_s5 + $0x3b8] sm:$0xff]  ;;  %v274_v14 = vmul.f32 %v5745_v34, %v210_v55  ;;  %v425_v63 = vmul.f32 %v5777_v46, %v361_v54  ;;  %3728 = vmatpush.bf16.msra.mxu1 %v5340_v51  ;;  %v5339_v40 = vld [vmem:[%s7806_s5 + $0x250] sm:$0xff]  ;;  %v576_v43 = vmul.f32 %v5794_v52, %v512_v10  ;;  %v663_v15 = vperm.slane %v6317_v61, 0  ;;  %v5353_v49 = vld [vmem:[%s7806_s5 + $0x2c0] sm:$0xff] }
  0x5c   :  { %3743 = vmatpush.bf16.msra.mxu2 %v5346_v30  ;;  %v4220_v38 = vld [vmem:[%s7804_s3 + $0x47] ss:$8 sm:$0xf0]  ;;  %v4229_v7 = vld [vmem:[%s7804_s3 + $0x140] ss:$8 sm:$0xf]  ;;  %v1466_v9 = vadd.f32 %v1402_v19, %v1362_v4  ;;  %v1058_v16 = vadd.f32 %v1026_v12, %v907_v25  ;;  %v6345_v28 = vor.u32 %v4210_v57, %v4209_v59 }
  0x5d   :  { %v814_v30 = vperm.slane %v6319_v20, 0  ;;  %v4230_v37 = vld [vmem:[%s7804_s3 + $0x140] ss:$8 sm:$0xf0]  ;;  %3756 = vmatpush.bf16.msra.mxu3 %v5354_v53  ;;  %v306_v51 = vadd.f32 %v274_v14, %v123_v45  ;;  %v61_v36 = vperm.slane %v6278_v31, 2  ;;  %v1400_v39 = vperm.slane %v5861_v17, 5 }
  0x5e   :  { %3718 = vmatpush.bf16.msra.mxu0 %v5329_v1  ;;  %v6350_v13 = vld [vmem:[%s7805_s4 + $0x8] sm:$0xff]  ;;  %v1498_v0 = vmax.f32 %v1466_v9, 0.0  ;;  %v727_v12 = vmul.f32 %v5810_v58, %v663_v15  ;;  %v6355_v53 = vor.u32 %v4220_v38, %v4219_v23  ;;  %v1209_v47 = vadd.f32 %v6264_v50, %v1058_v16  ;;  %v5392_v19 = vld [vmem:[%s7806_s5 + $0x3f8] sm:$0xff] }
  0x5f   :  { %v457_v1 = vadd.f32 %v425_v63, %v306_v51  ;;  %v6362_v59 = vor.u32 %v4230_v37, %v4229_v7  ;;  %3729 = vmatpush.bf16.msra.mxu1 %v5339_v40  ;;  %v5338_v17 = vld [vmem:[%s7806_s5 + $0x248] sm:$0xff]  ;;  %v1403_v41 = vperm.slane %v6350_v13, 0  ;;  %v125_v55 = vmul.f32 %v61_v36, %v5739_v32  ;;  %v5337_v63 = vld [vmem:[%s7806_s5 + $0x240] sm:$0xff]  ;;  %v5376_v37 = vld [vmem:[%s7806_s5 + $0x378] sm:$0xff] }
  0x60   :  { %3744 = vmatpush.bf16.msra.mxu2 %v5345_v5  ;;  %v965_v5 = vperm.slane %v6345_v28, 0  ;;  %v1530_v48 = vpack.c.bf16 %v1498_v0, %v1498_v0  ;;  %v212_v50 = vperm.slane %v6280_v60, 2  ;;  %v1360_v54 = vadd.f32 %v6267_v22, %v1209_v47 }
  0x61   :  { %3757 = vmatpush.bf16.msra.mxu3 %v5353_v49  ;;  %v608_v57 = vadd.f32 %v576_v43, %v457_v1  ;;  %v878_v4 = vmul.f32 %v5836_v6, %v814_v30  ;;  %v363_v23 = vperm.slane %v6282_v26, 2  ;;  %v514_v25 = vperm.slane %v6298_v2, 2 }
  0x62   :  { %3763 = vmatpush.bf16.msrb.mxu0 %v5368_v8  ;;  %v1116_v8 = vperm.slane %v6355_v53, 0  ;;  %3706 = vmatmul.bf16.vlgmr.msrb.gmra.mxu3 %v1530_v48  ;;  %v276_v10 = vmul.f32 %v5745_v34, %v212_v50  ;;  %v1464_v32 = vadd.f32 %v1400_v39, %v1360_v54  ;;  %v1029_v22 = vmul.f32 %v5866_v18, %v965_v5 }
  0x63   :  { %v759_v45 = vadd.f32 %v727_v12, %v608_v57  ;;  %v665_v14 = vperm.slane %v6317_v61, 2  ;;  %3730 = vmatpush.bf16.msra.mxu1 %v5338_v17  ;;  %v427_v7 = vmul.f32 %v5777_v46, %v363_v23  ;;  %v578_v34 = vmul.f32 %v5794_v52, %v514_v25 }
  0x64   :  { %3789 = vmatpush.bf16.msrb.mxu2 %v5384_v62  ;;  %v1267_v62 = vperm.slane %v6362_v59, 0  ;;  %v308_v38 = vadd.f32 %v276_v10, %v125_v55  ;;  %v816_v9 = vperm.slane %v6319_v20, 2  ;;  %v1496_v40 = vmax.f32 %v1464_v32, 0.0  ;;  %v5391_v55 = vld [vmem:[%s7806_s5 + $0x3f0] sm:$0xff] }
  0x65   :  { %3802 = vmatpush.bf16.msrb.mxu3 %v5392_v19  ;;  %v910_v43 = vadd.f32 %v878_v4, %v759_v45  ;;  %v1180_v15 = vmul.f32 %v5893_v33, %v1116_v8  ;;  %v967_v30 = vperm.slane %v6345_v28, 2  ;;  %v729_v51 = vmul.f32 %v5810_v58, %v665_v14  ;;  %v5367_v58 = vld [vmem:[%s7806_s5 + $0x330] sm:$0xff]  ;;  %v5382_v45 = vld [vmem:[%s7806_s5 + $0x3a8] sm:$0xff] }
  0x66   :  { %v1331_v16 = vmul.f32 %v5898_v35, %v1267_v62  ;;  %v459_v49 = vadd.f32 %v427_v7, %v308_v38  ;;  %v880_v46 = vmul.f32 %v5836_v6, %v816_v9  ;;  %v1528_v52 = vpack.c.bf16 %v1496_v40, %v1496_v40  ;;  %v5383_v6 = vld [vmem:[%s7806_s5 + $0x3b0] sm:$0xff]  ;;  %3764 = vmatpush.bf16.msrb.mxu0 %v5367_v58  ;;  %v5366_v62 = vld [vmem:[%s7806_s5 + $0x328] sm:$0xff] }
  0x67   :  { %v1061_v36 = vadd.f32 %v1029_v22, %v910_v43  ;;  %v1118_v0 = vperm.slane %v6355_v53, 2  ;;  %v1269_v39 = vperm.slane %v6362_v59, 2  ;;  %3731 = vmatpush.bf16.msra.mxu1 %v5337_v63  ;;  %v1031_v47 = vmul.f32 %v5866_v18, %v967_v30  ;;  %v5375_v8 = vld [vmem:[%s7806_s5 + $0x370] sm:$0xff] }
  0x68   :  { %v610_v12 = vadd.f32 %v578_v34, %v459_v49  ;;  %v1405_v19 = vperm.slane %v6350_v13, 2  ;;  %v60_v1 = vperm.slane %v6278_v31, 1  ;;  %3680 = vmatmul.bf16.vlgmr.msrb.gmra.mxu1 %v1528_v52  ;;  %v211_v48 = vperm.slane %v6280_v60, 1  ;;  %3790 = vmatpush.bf16.msrb.mxu2 %v5383_v6  ;;  %v5381_v52 = vld [vmem:[%s7806_s5 + $0x3a0] sm:$0xff] }
  0x69   :  { %v1212_v5 = vadd.f32 %v1180_v15, %v1061_v36  ;;  %v362_v17 = vperm.slane %v6282_v26, 1  ;;  %v513_v18 = vperm.slane %v6298_v2, 1  ;;  %v664_v57 = vperm.slane %v6317_v61, 1  ;;  %3803 = vmatpush.bf16.msrb.mxu3 %v5391_v55  ;;  %v5373_v55 = vld [vmem:[%s7806_s5 + $0x360] sm:$0xff] }
  0x6a   :  { %v761_v50 = vadd.f32 %v729_v51, %v610_v12  ;;  %v124_v54 = vmul.f32 %v60_v1, %v5931_v3  ;;  %v815_v4 = vperm.slane %v6319_v20, 1  ;;  %v1182_v23 = vmul.f32 %v5893_v33, %v1118_v0  ;;  %v5390_v33 = vld [vmem:[%s7806_s5 + $0x3e8] sm:$0xff]  ;;  %3765 = vmatpush.bf16.msrb.mxu0 %v5366_v62 }
  0x6b   :  { %3776 = vmatpush.bf16.msrb.mxu1 %v5376_v37  ;;  %v1363_v10 = vadd.f32 %v1331_v16, %v1212_v5  ;;  %v275_v25 = vmul.f32 %v5939_v11, %v211_v48  ;;  %v426_v32 = vmul.f32 %v5953_v21, %v362_v17  ;;  %v1333_v14 = vmul.f32 %v5898_v35, %v1269_v39  ;;  %v5374_v37 = vld [vmem:[%s7806_s5 + $0x368] sm:$0xff] }
  0x6c   :  { %v912_v22 = vadd.f32 %v880_v46, %v761_v50  ;;  %v577_v63 = vmul.f32 %v5963_v27, %v513_v18  ;;  %v966_v38 = vperm.slane %v6345_v28, 1  ;;  %v728_v9 = vmul.f32 %v5969_v29, %v664_v57  ;;  %3791 = vmatpush.bf16.msrb.mxu2 %v5382_v45  ;;  %v5364_v50 = vld [vmem:[%s7806_s5 + $0x318] sm:$0xff] }
  0x6d   :  { %v1467_v7 = vadd.f32 %v1403_v41, %v1363_v10  ;;  %v307_v34 = vadd.f32 %v275_v25, %v124_v54  ;;  %v879_v40 = vmul.f32 %v5979_v42, %v815_v4  ;;  %v1117_v35 = vperm.slane %v6355_v53, 1  ;;  %v5365_v41 = vld [vmem:[%s7806_s5 + $0x320] sm:$0xff]  ;;  %3804 = vmatpush.bf16.msrb.mxu3 %v5390_v33  ;;  %v5380_v4 = vld [vmem:[%s7806_s5 + $0x398] sm:$0xff] }
  0x6e   :  { %v1063_v43 = vadd.f32 %v1031_v47, %v912_v22  ;;  %v1268_v15 = vperm.slane %v6362_v59, 1  ;;  %v62_v30 = vperm.slane %v6278_v31, 3  ;;  %v1030_v51 = vmul.f32 %v5985_v44, %v966_v38  ;;  %v5389_v47 = vld [vmem:[%s7806_s5 + $0x3e0] sm:$0xff]  ;;  %3766 = vmatpush.bf16.msrb.mxu0 %v5365_v41  ;;  %v5388_v25 = vld [vmem:[%s7806_s5 + $0x3d8] sm:$0xff] }
  0x6f   :  { %3777 = vmatpush.bf16.msrb.mxu1 %v5375_v8  ;;  %v1499_v16 = vmax.f32 %v1467_v7, 0.0  ;;  %v458_v49 = vadd.f32 %v426_v32, %v307_v34  ;;  %v1404_v46 = vperm.slane %v6350_v13, 1  ;;  %v213_v39 = vperm.slane %v6280_v60, 3 }
  0x70   :  { %v1214_v36 = vadd.f32 %v1182_v23, %v1063_v43  ;;  %v126_v0 = vmul.f32 %v62_v30, %v5931_v3  ;;  %v364_v12 = vperm.slane %v6282_v26, 3  ;;  %v515_v6 = vperm.slane %v6298_v2, 3  ;;  %3792 = vmatpush.bf16.msrb.mxu2 %v5381_v52 }
  0x71   :  { %v1531_v1 = vpack.c.bf16 %v1499_v16, %v1499_v16  ;;  %v609_v58 = vadd.f32 %v577_v63, %v458_v49  ;;  %v666_v5 = vperm.slane %v6317_v61, 3  ;;  %v277_v17 = vmul.f32 %v5939_v11, %v213_v39  ;;  %3805 = vmatpush.bf16.msrb.mxu3 %v5389_v47  ;;  %v6509_v16 = vld [vmem:[%s7801_s0 + $0x10] sm:$0xff] }
  0x72   :  { %v1365_v48 = vadd.f32 %v1333_v14, %v1214_v36  ;;  %v428_v3 = vmul.f32 %v5953_v21, %v364_v12  ;;  %v817_v18 = vperm.slane %v6319_v20, 3  ;;  %v1181_v57 = vmul.f32 %v5995_v56, %v1117_v35  ;;  %3767 = vmatpush.bf16.msrb.mxu0 %v5364_v50  ;;  %v5387_v35 = vld [vmem:[%s7806_s5 + $0x3d0] sm:$0xff]  ;;  %v5386_v50 = vld [vmem:[%s7806_s5 + $0x3c8] sm:$0xff] }
  0x73   :  { %3778 = vmatpush.bf16.msrb.mxu1 %v5374_v37  ;;  %3719 = vmatmul.bf16.vlgmr.msra.gmra.mxu0 %v1531_v1  ;;  %v760_v54 = vadd.f32 %v728_v9, %v609_v58  ;;  %v1332_v11 = vmul.f32 %v6022_v24, %v1268_v15  ;;  %v968_v21 = vperm.slane %v6345_v28, 3  ;;  %v309_v62 = vadd.f32 %v277_v17, %v126_v0  ;;  %v6502_v15 = vld [vmem:[%s7801_s0] sm:$0xff]  ;;  %v5371_v12 = vld [vmem:[%s7806_s5 + $0x350] sm:$0xff] }
  0x74   :  { %v1469_v8 = vadd.f32 %v1405_v19, %v1365_v48  ;;  %v579_v10 = vmul.f32 %v5963_v27, %v515_v6  ;;  %v730_v23 = vmul.f32 %v5969_v29, %v666_v5  ;;  %v881_v45 = vmul.f32 %v5979_v42, %v817_v18  ;;  %v5372_v27 = vld [vmem:[%s7806_s5 + $0x358] sm:$0xff]  ;;  %3793 = vmatpush.bf16.msrb.mxu2 %v5380_v4  ;;  %v5363_v42 = vld [vmem:[%s7806_s5 + $0x310] sm:$0xff]  ;;  %v5362_v6 = vld [vmem:[%s7806_s5 + $0x308] sm:$0xff] }
  0x75   :  { %v911_v32 = vadd.f32 %v879_v40, %v760_v54  ;;  %v1032_v22 = vmul.f32 %v5985_v44, %v968_v21  ;;  %v1119_v14 = vperm.slane %v6355_v53, 3  ;;  %v460_v38 = vadd.f32 %v428_v3, %v309_v62  ;;  %v5379_v44 = vld [vmem:[%s7806_s5 + $0x390] sm:$0xff]  ;;  %3806 = vmatpush.bf16.msrb.mxu3 %v5388_v25  ;;  %v6545_v54 = vld [vmem:[%s7801_s0 + $0x40] sm:$0xff]  ;;  %v5370_v25 = vld [vmem:[%s7806_s5 + $0x348] sm:$0xff] }
  0x76   :  { %v1501_v63 = vmax.f32 %v1469_v8, 0.0  ;;  %v1270_v19 = vperm.slane %v6362_v59, 3  ;;  %v63_v29 = vperm.slane %v6278_v31, 4  ;;  %v1406_v7 = vperm.slane %v6350_v13, 3  ;;  %3768 = vmatpush.bf16.msrb.mxu0 %v5363_v42  ;;  %v6534_v48 = vld [vmem:[%s7801_s0 + $0x30] sm:$0xff]  ;;  %v6559_v8 = vld [vmem:[%s7801_s0 + $0x60] sm:$0xff] }
  0x77   :  { %3779 = vmatpush.bf16.msrb.mxu1 %v5373_v55  ;;  %v1062_v33 = vadd.f32 %v1030_v51, %v911_v32  ;;  %v214_v34 = vperm.slane %v6280_v60, 4  ;;  %v365_v9 = vperm.slane %v6282_v26, 4  ;;  %v611_v43 = vadd.f32 %v579_v10, %v460_v38  ;;  %v6515_v51 = vld [vmem:[%s7801_s0 + $0x20] sm:$0xff] }
  0x78   :  { %v1533_v40 = vpack.c.bf16 %v1501_v63, %v1501_v63  ;;  %v127_v30 = vmul.f32 %v6502_v15, %v63_v29  ;;  %v516_v37 = vperm.slane %v6298_v2, 4  ;;  %v667_v36 = vperm.slane %v6317_v61, 4  ;;  %3794 = vmatpush.bf16.msrb.mxu2 %v5379_v44  ;;  %v5385_v42 = vld [vmem:[%s7806_s5 + $0x3c0] sm:$0xff] }
  0x79   :  { %v1213_v41 = vadd.f32 %v1181_v57, %v1062_v33  ;;  %v278_v49 = vmul.f32 %v6509_v16, %v214_v34  ;;  %v429_v52 = vmul.f32 %v6515_v51, %v365_v9  ;;  %v762_v0 = vadd.f32 %v730_v23, %v611_v43  ;;  %3807 = vmatpush.bf16.msrb.mxu3 %v5387_v35  ;;  %v5377_v33 = vld [vmem:[%s7806_s5 + $0x380] sm:$0xff]  ;;  %v5400_v43 = vld [vmem:[%s7806_s5 + $0x438] sm:$0xff] }
  0x7a   :  { %3745 = vmatmul.bf16.vlgmr.msra.gmra.mxu2 %v1533_v40  ;;  %v1183_v39 = vmul.f32 %v5995_v56, %v1119_v14  ;;  %v818_v47 = vperm.slane %v6319_v20, 4  ;;  %v969_v1 = vperm.slane %v6345_v28, 4  ;;  %v5378_v56 = vld [vmem:[%s7806_s5 + $0x388] sm:$0xff]  ;;  %v580_v17 = vmul.f32 %v6534_v48, %v516_v37  ;;  %3769 = vmatpush.bf16.msrb.mxu0 %v5362_v6  ;;  %v5416_v35 = vld [vmem:[%s7806_s5 + $0x4b8] sm:$0xff] }
  0x7b   :  { %3780 = vmatpush.bf16.msrb.mxu1 %v5372_v27  ;;  %v1364_v58 = vadd.f32 %v1332_v11, %v1213_v41  ;;  %v310_v5 = vadd.f32 %v278_v49, %v127_v30  ;;  %v1120_v3 = vperm.slane %v6355_v53, 4  ;;  %v913_v18 = vadd.f32 %v881_v45, %v762_v0  ;;  %v6551_v11 = vld [vmem:[%s7801_s0 + $0x50] sm:$0xff] }
  0x7c   :  { %v1334_v55 = vmul.f32 %v6022_v24, %v1270_v19  ;;  %v731_v57 = vmul.f32 %v6545_v54, %v667_v36  ;;  %v882_v21 = vmul.f32 %v6551_v11, %v818_v47  ;;  %v1033_v62 = vmul.f32 %v6559_v8, %v969_v1  ;;  %3795 = vmatpush.bf16.msrb.mxu2 %v5378_v56  ;;  %v6607_v1 = vld [vmem:[%s7801_s0 + $0x80] sm:$0xff] }
  0x7d   :  { %v1468_v24 = vadd.f32 %v1404_v46, %v1364_v58  ;;  %v461_v4 = vadd.f32 %v429_v52, %v310_v5  ;;  %v1271_v10 = vperm.slane %v6362_v59, 4  ;;  %v1064_v23 = vadd.f32 %v1032_v22, %v913_v18  ;;  %v6569_v46 = vld [vmem:[%s7801_s0 + $0x70] sm:$0xff]  ;;  %v5361_v22 = vld [vmem:[%s7806_s5 + $0x300] sm:$0xff]  ;;  %3808 = vmatpush.bf16.msrb.mxu3 %v5386_v50 }
  0x7e   :  { %v1184_v32 = vmul.f32 %v6569_v46, %v1120_v3  ;;  %v65_v45 = vperm.slane %v6278_v31, 6  ;;  %v216_v14 = vperm.slane %v6280_v60, 6  ;;  %v367_v19 = vperm.slane %v6282_v26, 6  ;;  %v5369_v52 = vld [vmem:[%s7806_s5 + $0x340] sm:$0xff]  ;;  %3770 = vmatpush.bf16.msrb.mxu0 %v5361_v22 }
  0x7f   :  { %3781 = vmatpush.bf16.msrb.mxu1 %v5371_v12  ;;  %v1500_v63 = vmax.f32 %v1468_v24, 0.0  ;;  %v612_v38 = vadd.f32 %v580_v17, %v461_v4  ;;  %v518_v27 = vperm.slane %v6298_v2, 6  ;;  %v1215_v29 = vadd.f32 %v1183_v39, %v1064_v23  ;;  %v5408_v12 = vld [vmem:[%s7806_s5 + $0x478] sm:$0xff]  ;;  %v5399_v23 = vld [vmem:[%s7806_s5 + $0x430] sm:$0xff] }
  0x80   :  { %v129_v44 = vmul.f32 %v6502_v15, %v65_v45  ;;  %v280_v34 = vmul.f32 %v6509_v16, %v216_v14  ;;  %v669_v9 = vperm.slane %v6317_v61, 6  ;;  %v1407_v37 = vperm.slane %v6350_v13, 4  ;;  %3796 = vmatpush.bf16.msrb.mxu2 %v5377_v33  ;;  %v6633_v14 = vld [vmem:[%s7801_s0 + $0x8] sm:$0xff] }
  0x81   :  { %v1532_v40 = vpack.c.bf16 %v1500_v63, %v1500_v63  ;;  %v763_v30 = vadd.f32 %v731_v57, %v612_v38  ;;  %v431_v41 = vmul.f32 %v6515_v51, %v367_v19  ;;  %v1366_v49 = vadd.f32 %v1334_v55, %v1215_v29  ;;  %3809 = vmatpush.bf16.msrb.mxu3 %v5385_v42  ;;  %v5407_v19 = vld [vmem:[%s7806_s5 + $0x470] sm:$0xff] }
  0x82   :  { %v312_v36 = vadd.f32 %v280_v34, %v129_v44  ;;  %v582_v0 = vmul.f32 %v6534_v48, %v518_v27  ;;  %v820_v39 = vperm.slane %v6319_v20, 6  ;;  %v1335_v58 = vmul.f32 %v6607_v1, %v1271_v10  ;;  %3815 = vmatpush.bf16.msra.mxu0 %v5400_v43 }
  0x83   :  { %3782 = vmatpush.bf16.msrb.mxu1 %v5370_v25  ;;  %v914_v47 = vadd.f32 %v882_v21, %v763_v30  ;;  %v971_v6 = vperm.slane %v6345_v28, 6  ;;  %v1122_v56 = vperm.slane %v6355_v53, 6  ;;  %v1470_v5 = vadd.f32 %v1406_v7, %v1366_v49  ;;  %v5424_v25 = vld [vmem:[%s7806_s5 + $0x4f8] sm:$0xff]  ;;  %v5414_v30 = vld [vmem:[%s7806_s5 + $0x4a8] sm:$0xff] }
  0x84   :  { %3732 = vmatmul.bf16.vlgmr.msra.gmra.mxu1 %v1532_v40  ;;  %v463_v17 = vadd.f32 %v431_v41, %v312_v36  ;;  %v733_v3 = vmul.f32 %v6545_v54, %v669_v9  ;;  %v1273_v18 = vperm.slane %v6362_v59, 6  ;;  %3841 = vmatpush.bf16.msra.mxu2 %v5416_v35  ;;  %v884_v50 = vmul.f32 %v6551_v11, %v820_v39  ;;  %v6652_v9 = vld [vmem:[%s7801_s0 + $0x28] sm:$0xff] }
  0x85   :  { %v1065_v55 = vadd.f32 %v1033_v62, %v914_v47  ;;  %v1035_v57 = vmul.f32 %v6559_v8, %v971_v6  ;;  %v64_v21 = vperm.slane %v6278_v31, 5  ;;  %v1502_v24 = vmax.f32 %v1470_v5, 0.0  ;;  %v5415_v62 = vld [vmem:[%s7806_s5 + $0x4b0] sm:$0xff]  ;;  %v5398_v35 = vld [vmem:[%s7806_s5 + $0x428] sm:$0xff]  ;;  %v6681_v6 = vld [vmem:[%s7801_s0 + $0x58] sm:$0xff] }
  0x86   :  { %v614_v4 = vadd.f32 %v582_v0, %v463_v17  ;;  %v1186_v7 = vmul.f32 %v6569_v46, %v1122_v56  ;;  %v215_v10 = vperm.slane %v6280_v60, 5  ;;  %v366_v22 = vperm.slane %v6282_v26, 5  ;;  %3816 = vmatpush.bf16.msra.mxu0 %v5399_v23  ;;  %v6675_v47 = vld [vmem:[%s7801_s0 + $0x48] sm:$0xff] }
  0x87   :  { %3783 = vmatpush.bf16.msrb.mxu1 %v5369_v52  ;;  %v1216_v45 = vadd.f32 %v1184_v32, %v1065_v55  ;;  %v128_v63 = vmul.f32 %v6633_v14, %v64_v21  ;;  %v517_v38 = vperm.slane %v6298_v2, 5  ;;  %v1534_v27 = vpack.c.bf16 %v1502_v24, %v1502_v24  ;;  %v6644_v32 = vld [vmem:[%s7801_s0 + $0x18] sm:$0xff]  ;;  %v5406_v5 = vld [vmem:[%s7806_s5 + $0x468] sm:$0xff] }
  0x88   :  { %v765_v29 = vadd.f32 %v733_v3, %v614_v4  ;;  %v279_v33 = vmul.f32 %v6644_v32, %v215_v10  ;;  %v668_v42 = vperm.slane %v6317_v61, 5  ;;  %v1337_v34 = vmul.f32 %v6607_v1, %v1273_v18  ;;  %3842 = vmatpush.bf16.msra.mxu2 %v5415_v62  ;;  %v6665_v52 = vld [vmem:[%s7801_s0 + $0x38] sm:$0xff]  ;;  %v6695_v21 = vld [vmem:[%s7801_s0 + $0x68] sm:$0xff] }
  0x89   :  { %v1367_v44 = vadd.f32 %v1335_v58, %v1216_v45  ;;  %v430_v40 = vmul.f32 %v6652_v9, %v366_v22  ;;  %v819_v43 = vperm.slane %v6319_v20, 5  ;;  %3758 = vmatmul.bf16.vlgmr.msra.gmra.mxu3 %v1534_v27  ;;  %v581_v36 = vmul.f32 %v6665_v52, %v517_v38 }
  0x8a   :  { %v916_v41 = vadd.f32 %v884_v50, %v765_v29  ;;  %v311_v49 = vadd.f32 %v279_v33, %v128_v63  ;;  %v970_v0 = vperm.slane %v6345_v28, 5  ;;  %3854 = vmatpush.bf16.msra.mxu3 %v5424_v25  ;;  %v732_v58 = vmul.f32 %v6675_v47, %v668_v42  ;;  %3817 = vmatpush.bf16.msra.mxu0 %v5398_v35  ;;  %v5397_v63 = vld [vmem:[%s7806_s5 + $0x420] sm:$0xff] }
  0x8b   :  { %3828 = vmatpush.bf16.msra.mxu1 %v5408_v12  ;;  %v1471_v39 = vadd.f32 %v1407_v37, %v1367_v44  ;;  %v1409_v12 = vperm.slane %v6350_v13, 6  ;;  %v883_v56 = vmul.f32 %v6681_v6, %v819_v43  ;;  %v5423_v37 = vld [vmem:[%s7806_s5 + $0x4f0] sm:$0xff]  ;;  %v1121_v18 = vperm.slane %v6355_v53, 5  ;;  %v5412_v43 = vld [vmem:[%s7806_s5 + $0x498] sm:$0xff] }
  0x8c   :  { %v1067_v17 = vadd.f32 %v1035_v57, %v916_v41  ;;  %v462_v3 = vadd.f32 %v430_v40, %v311_v49  ;;  %v1272_v55 = vperm.slane %v6362_v59, 5  ;;  %v1034_v24 = vmul.f32 %v6695_v21, %v970_v0  ;;  %3843 = vmatpush.bf16.msra.mxu2 %v5414_v30  ;;  %v5413_v57 = vld [vmem:[%s7806_s5 + $0x4a0] sm:$0xff]  ;;  %v6747_v0 = vld [vmem:[%s7801_s0 + $0x88] sm:$0xff] }
  0x8d   :  { %v1503_v50 = vmax.f32 %v1471_v39, 0.0  ;;  %v1408_v4 = vperm.slane %v6350_v13, 5  ;;  %v66_v10 = vperm.slane %v6278_v31, 7  ;;  %v217_v25 = vperm.slane %v6280_v60, 7  ;;  %v5405_v60 = vld [vmem:[%s7806_s5 + $0x460] sm:$0xff] }
  0x8e   :  { %v1218_v23 = vadd.f32 %v1186_v7, %v1067_v17  ;;  %v613_v62 = vadd.f32 %v581_v36, %v462_v3  ;;  %v368_v45 = vperm.slane %v6282_v26, 7  ;;  %v519_v31 = vperm.slane %v6298_v2, 7  ;;  %3855 = vmatpush.bf16.msra.mxu3 %v5423_v37  ;;  %v5422_v7 = vld [vmem:[%s7806_s5 + $0x4e8] sm:$0xff]  ;;  %3818 = vmatpush.bf16.msra.mxu0 %v5397_v63  ;;  %v5404_v37 = vld [vmem:[%s7806_s5 + $0x458] sm:$0xff] }
  0x8f   :  { %3829 = vmatpush.bf16.msra.mxu1 %v5407_v19  ;;  %v1535_v22 = vpack.c.bf16 %v1503_v50, %v1503_v50  ;;  %v130_v38 = vmul.f32 %v6633_v14, %v66_v10  ;;  %v670_v19 = vperm.slane %v6317_v61, 7  ;;  %v281_v29 = vmul.f32 %v6644_v32, %v217_v25  ;;  %v4151_v2 = vld [vmem:[%s7804_s3 + $0x80] ss:$8 sm:$0xf] }
  0x90   :  { %v1369_v26 = vadd.f32 %v1337_v34, %v1218_v23  ;;  %v764_v27 = vadd.f32 %v732_v58, %v613_v62  ;;  %v432_v33 = vmul.f32 %v6652_v9, %v368_v45  ;;  %v6725_v61 = vld [vmem:[%s7801_s0 + $0x78] sm:$0xff]  ;;  %v583_v44 = vmul.f32 %v6665_v52, %v519_v31  ;;  %3844 = vmatpush.bf16.msra.mxu2 %v5413_v57  ;;  %v5411_v50 = vld [vmem:[%s7806_s5 + $0x490] sm:$0xff] }
  0x91   :  { %3771 = vmatmul.bf16.vlgmr.msrb.gmra.mxu0 %v1535_v22  ;;  %v1185_v42 = vmul.f32 %v6725_v61, %v1121_v18  ;;  %v821_v34 = vperm.slane %v6319_v20, 7  ;;  %v972_v40 = vperm.slane %v6345_v28, 7  ;;  %v4152_v35 = vld [vmem:[%s7804_s3 + $0x80] ss:$8 sm:$0xf0]  ;;  %v313_v49 = vadd.f32 %v281_v29, %v130_v38 }
  0x92   :  { %v1473_v30 = vadd.f32 %v1409_v12, %v1369_v26  ;;  %v915_v41 = vadd.f32 %v883_v56, %v764_v27  ;;  %v1123_v36 = vperm.slane %v6355_v53, 7  ;;  %v5396_v20 = vld [vmem:[%s7806_s5 + $0x418] sm:$0xff]  ;;  %v1336_v39 = vmul.f32 %v6747_v0, %v1272_v55  ;;  %3856 = vmatpush.bf16.msra.mxu3 %v5422_v7  ;;  %v5421_v56 = vld [vmem:[%s7806_s5 + $0x4e0] sm:$0xff]  ;;  %v5403_v27 = vld [vmem:[%s7806_s5 + $0x450] sm:$0xff] }
  0x93   :  { %3830 = vmatpush.bf16.msra.mxu1 %v5406_v5  ;;  %v4161_v28 = vld [vmem:[%s7804_s3 + $0x81] ss:$8 sm:$0xf]  ;;  %v734_v12 = vmul.f32 %v6675_v47, %v670_v19  ;;  %v885_v53 = vmul.f32 %v6681_v6, %v821_v34  ;;  %v1274_v58 = vperm.slane %v6362_v59, 7  ;;  %v464_v18 = vadd.f32 %v432_v33, %v313_v49  ;;  %3819 = vmatpush.bf16.msra.mxu0 %v5396_v20 }
  0x94   :  { %v4162_v5 = vld [vmem:[%s7804_s3 + $0x81] ss:$8 sm:$0xf0]  ;;  %v1505_v17 = vmax.f32 %v1473_v30, 0.0  ;;  %v1066_v3 = vadd.f32 %v1034_v24, %v915_v41  ;;  %v1410_v55 = vperm.slane %v6350_v13, 7  ;;  %v1036_v57 = vmul.f32 %v6695_v21, %v972_v40  ;;  %3845 = vmatpush.bf16.msra.mxu2 %v5412_v43 }
  0x95   :  { %v5395_v59 = vld [vmem:[%s7806_s5 + $0x410] sm:$0xff]  ;;  %v6774_v23 = vmul.f32 %v6725_v61, %v1123_v36  ;;  %v5420_v24 = vld [vmem:[%s7806_s5 + $0x4d8] sm:$0xff]  ;;  %v6779_v62 = vor.u32 %v4152_v35, %v4151_v2  ;;  %v6781_v25 = vor.u32 %v4162_v5, %v4161_v28  ;;  %v615_v31 = vadd.f32 %v583_v44, %v464_v18  ;;  %v5410_v41 = vld [vmem:[%s7806_s5 + $0x488] sm:$0xff] }
  0x96   :  { %v4171_v10 = vld [vmem:[%s7804_s3 + $0x82] ss:$8 sm:$0xf]  ;;  %v4181_v63 = vld [vmem:[%s7804_s3 + $0x83] ss:$8 sm:$0xf]  ;;  %v1537_v22 = vpack.c.bf16 %v1505_v17, %v1505_v17  ;;  %v1217_v38 = vadd.f32 %v1185_v42, %v1066_v3  ;;  %v6798_v26 = vmul.f32 %v6747_v0, %v1274_v58  ;;  %3857 = vmatpush.bf16.msra.mxu3 %v5421_v56 }
  0x97   :  { %3831 = vmatpush.bf16.msra.mxu1 %v5405_v60  ;;  %v4172_v45 = vld [vmem:[%s7804_s3 + $0x82] ss:$8 sm:$0xf0]  ;;  %v4182_v7 = vld [vmem:[%s7804_s3 + $0x83] ss:$8 sm:$0xf0]  ;;  %v766_v34 = vadd.f32 %v734_v12, %v615_v31  ;;  %3820 = vmatpush.bf16.msra.mxu0 %v5395_v59 }
  0x98   :  { %v6789_v19 = vor.u32 %v4172_v45, %v4171_v10  ;;  %v4191_v60 = vld [vmem:[%s7804_s3 + $0x84] ss:$8 sm:$0xf]  ;;  %v67_v29 = vperm.slane %v6779_v62, 0  ;;  %v218_v33 = vperm.slane %v6781_v25, 0  ;;  %v6805_v2 = vor.u32 %v4182_v7, %v4181_v63  ;;  %3797 = vmatmul.bf16.vlgmr.msrb.gmra.mxu2 %v1537_v22 }
  0x99   :  { %v4192_v42 = vld [vmem:[%s7804_s3 + $0x84] ss:$8 sm:$0xf0]  ;;  %v1368_v44 = vadd.f32 %v1336_v39, %v1217_v38  ;;  %v4201_v35 = vld [vmem:[%s7804_s3 + $0x85] ss:$8 sm:$0xf]  ;;  %3846 = vmatpush.bf16.msra.mxu2 %v5411_v50  ;;  %v917_v58 = vadd.f32 %v885_v53, %v766_v34 }
  0x9a   :  { %v369_v40 = vperm.slane %v6789_v19, 0  ;;  %v6811_v43 = vor.u32 %v4192_v42, %v4191_v60  ;;  %v5419_v30 = vld [vmem:[%s7806_s5 + $0x4d0] sm:$0xff]  ;;  %v131_v49 = vmul.f32 %v6502_v15, %v67_v29  ;;  %v282_v36 = vmul.f32 %v6509_v16, %v218_v33  ;;  %v5394_v56 = vld [vmem:[%s7806_s5 + $0x408] sm:$0xff]  ;;  %3858 = vmatpush.bf16.msra.mxu3 %v5420_v24  ;;  %v5393_v24 = vld [vmem:[%s7806_s5 + $0x400] sm:$0xff] }
  0x9b   :  { %3832 = vmatpush.bf16.msra.mxu1 %v5404_v37  ;;  %v520_v20 = vperm.slane %v6805_v2, 0  ;;  %v4202_v28 = vld [vmem:[%s7804_s3 + $0x85] ss:$8 sm:$0xf0]  ;;  %v69_v39 = vperm.slane %v6779_v62, 2  ;;  %v1472_v12 = vadd.f32 %v1408_v4, %v1368_v44  ;;  %v1068_v45 = vadd.f32 %v1036_v57, %v917_v58  ;;  %3821 = vmatpush.bf16.msra.mxu0 %v5394_v56 }
  0x9c   :  { %v5402_v37 = vld [vmem:[%s7806_s5 + $0x448] sm:$0xff]  ;;  %v433_v5 = vmul.f32 %v6515_v51, %v369_v40  ;;  %v671_v17 = vperm.slane %v6811_v43, 0  ;;  %v314_v4 = vadd.f32 %v282_v36, %v131_v49  ;;  %v6843_v18 = vor.u32 %v4202_v28, %v4201_v35  ;;  %v5409_v31 = vld [vmem:[%s7806_s5 + $0x480] sm:$0xff]  ;;  %v6872_v29 = vld [vmem:[%s7805_s4 + $0x10] sm:$0xff] }
  0x9d   :  { %v4211_v3 = vld [vmem:[%s7804_s3 + $0x86] ss:$8 sm:$0xf]  ;;  %v584_v53 = vmul.f32 %v6534_v48, %v520_v20  ;;  %v4221_v50 = vld [vmem:[%s7804_s3 + $0x87] ss:$8 sm:$0xf]  ;;  %3847 = vmatpush.bf16.msra.mxu2 %v5410_v41  ;;  %v133_v33 = vmul.f32 %v6502_v15, %v69_v39  ;;  %v1219_v44 = vadd.f32 %v6774_v23, %v1068_v45 }
  0x9e   :  { %v4212_v59 = vld [vmem:[%s7804_s3 + $0x86] ss:$8 sm:$0xf0]  ;;  %v1504_v10 = vmax.f32 %v1472_v12, 0.0  ;;  %v735_v63 = vmul.f32 %v6545_v54, %v671_v17  ;;  %v465_v7 = vadd.f32 %v433_v5, %v314_v4  ;;  %v822_v57 = vperm.slane %v6843_v18, 0  ;;  %3859 = vmatpush.bf16.msra.mxu3 %v5419_v30 }
  0x9f   :  { %3833 = vmatpush.bf16.msra.mxu1 %v5403_v27  ;;  %v6855_v22 = vor.u32 %v4212_v59, %v4211_v3  ;;  %v4222_v38 = vld [vmem:[%s7804_s3 + $0x87] ss:$8 sm:$0xf0]  ;;  %v4231_v27 = vld [vmem:[%s7804_s3 + $0x180] ss:$8 sm:$0xf]  ;;  %v1370_v12 = vadd.f32 %v6798_v26, %v1219_v44  ;;  %3822 = vmatpush.bf16.msra.mxu0 %v5393_v24 }
  0xa0   :  { %v6864_v60 = vor.u32 %v4222_v38, %v4221_v50  ;;  %v1536_v42 = vpack.c.bf16 %v1504_v10, %v1504_v10  ;;  %v5448_v34 = vld [vmem:[%s7806_s5 + $0x5b8] sm:$0xff]  ;;  %v220_v41 = vperm.slane %v6781_v25, 2  ;;  %v5418_v49 = vld [vmem:[%s7806_s5 + $0x4c8] sm:$0xff]  ;;  %v5401_v23 = vld [vmem:[%s7806_s5 + $0x440] sm:$0xff]  ;;  %v616_v36 = vadd.f32 %v584_v53, %v465_v7 }
  0xa1   :  { %v973_v40 = vperm.slane %v6855_v22, 0  ;;  %v4232_v35 = vld [vmem:[%s7804_s3 + $0x180] ss:$8 sm:$0xf0]  ;;  %v886_v20 = vmul.f32 %v6551_v11, %v822_v57  ;;  %v1411_v56 = vperm.slane %v6872_v29, 0  ;;  %v371_v5 = vperm.slane %v6789_v19, 2  ;;  %3848 = vmatpush.bf16.msra.mxu2 %v5409_v31 }
  0xa2   :  { %v1124_v28 = vperm.slane %v6864_v60, 0  ;;  %v6892_v39 = vor.u32 %v4232_v35, %v4231_v27  ;;  %3784 = vmatmul.bf16.vlgmr.msrb.gmra.mxu1 %v1536_v42  ;;  %v5432_v30 = vld [vmem:[%s7806_s5 + $0x538] sm:$0xff]  ;;  %v767_v17 = vadd.f32 %v735_v63, %v616_v36  ;;  %v522_v4 = vperm.slane %v6805_v2, 2  ;;  %3860 = vmatpush.bf16.msra.mxu3 %v5418_v49  ;;  %v5417_v45 = vld [vmem:[%s7806_s5 + $0x4c0] sm:$0xff] }
  0xa3   :  { %3834 = vmatpush.bf16.msra.mxu1 %v5402_v37  ;;  %v5440_v58 = vld [vmem:[%s7806_s5 + $0x578] sm:$0xff]  ;;  %v284_v37 = vmul.f32 %v6509_v16, %v220_v41  ;;  %v1037_v3 = vmul.f32 %v6559_v8, %v973_v40  ;;  %v1474_v53 = vadd.f32 %v1410_v55, %v1370_v12  ;;  %v435_v50 = vmul.f32 %v6515_v51, %v371_v5  ;;  %v5431_v12 = vld [vmem:[%s7806_s5 + $0x530] sm:$0xff] }
  0xa4   :  { %v1275_v26 = vperm.slane %v6892_v39, 0  ;;  %v673_v10 = vperm.slane %v6811_v43, 2  ;;  %v918_v63 = vadd.f32 %v886_v20, %v767_v17  ;;  %v1188_v38 = vmul.f32 %v6569_v46, %v1124_v28  ;;  %3867 = vmatpush.bf16.msrb.mxu0 %v5432_v30  ;;  %v5456_v27 = vld [vmem:[%s7806_s5 + $0x5f8] sm:$0xff]  ;;  %v5439_v30 = vld [vmem:[%s7806_s5 + $0x570] sm:$0xff] }
  0xa5   :  { %3893 = vmatpush.bf16.msrb.mxu2 %v5448_v34  ;;  %v316_v59 = vadd.f32 %v284_v37, %v133_v33  ;;  %v586_v31 = vmul.f32 %v6534_v48, %v522_v4  ;;  %v824_v13 = vperm.slane %v6843_v18, 2  ;;  %v1506_v55 = vmax.f32 %v1474_v53, 0.0 }
  0xa6   :  { %v737_v7 = vmul.f32 %v6545_v54, %v673_v10  ;;  %v975_v57 = vperm.slane %v6855_v22, 2  ;;  %v1069_v33 = vadd.f32 %v1037_v3, %v918_v63  ;;  %v1339_v42 = vmul.f32 %v6607_v1, %v1275_v26  ;;  %3861 = vmatpush.bf16.msra.mxu3 %v5417_v45  ;;  %v5430_v10 = vld [vmem:[%s7806_s5 + $0x528] sm:$0xff] }
  0xa7   :  { %3835 = vmatpush.bf16.msra.mxu1 %v5401_v23  ;;  %v467_v24 = vadd.f32 %v435_v50, %v316_v59  ;;  %v888_v44 = vmul.f32 %v6551_v11, %v824_v13  ;;  %v1126_v34 = vperm.slane %v6864_v60, 2  ;;  %v1538_v40 = vpack.c.bf16 %v1506_v55, %v1506_v55  ;;  %v5455_v50 = vld [vmem:[%s7806_s5 + $0x5f0] sm:$0xff]  ;;  %v5438_v13 = vld [vmem:[%s7806_s5 + $0x568] sm:$0xff] }
  0xa8   :  { %v1039_v41 = vmul.f32 %v6559_v8, %v975_v57  ;;  %v1277_v49 = vperm.slane %v6892_v39, 2  ;;  %v1220_v23 = vadd.f32 %v1188_v38, %v1069_v33  ;;  %v1413_v20 = vperm.slane %v6872_v29, 2  ;;  %3868 = vmatpush.bf16.msrb.mxu0 %v5431_v12 }
  0xa9   :  { %v618_v35 = vadd.f32 %v586_v31, %v467_v24  ;;  %v1190_v36 = vmul.f32 %v6569_v46, %v1126_v34  ;;  %v68_v28 = vperm.slane %v6779_v62, 1  ;;  %3810 = vmatmul.bf16.vlgmr.msrb.gmra.mxu3 %v1538_v40  ;;  %v219_v5 = vperm.slane %v6781_v25, 1 }
  0xaa   :  { %v370_v17 = vperm.slane %v6789_v19, 1  ;;  %v521_v3 = vperm.slane %v6805_v2, 1  ;;  %3906 = vmatpush.bf16.msrb.mxu3 %v5456_v27  ;;  %v1371_v26 = vadd.f32 %v1339_v42, %v1220_v23  ;;  %v672_v53 = vperm.slane %v6811_v43, 1  ;;  %v5446_v27 = vld [vmem:[%s7806_s5 + $0x5a8] sm:$0xff] }
  0xab   :  { %3880 = vmatpush.bf16.msrb.mxu1 %v5440_v58  ;;  %v5447_v58 = vld [vmem:[%s7806_s5 + $0x5b0] sm:$0xff]  ;;  %v769_v37 = vadd.f32 %v737_v7, %v618_v35  ;;  %v132_v4 = vmul.f32 %v6633_v14, %v68_v28  ;;  %v823_v59 = vperm.slane %v6843_v18, 1  ;;  %v1341_v63 = vmul.f32 %v6607_v1, %v1277_v49  ;;  %v5454_v23 = vld [vmem:[%s7806_s5 + $0x5e8] sm:$0xff] }
  0xac   :  { %v283_v38 = vmul.f32 %v6644_v32, %v219_v5  ;;  %v434_v31 = vmul.f32 %v6652_v9, %v370_v17  ;;  %v1475_v55 = vadd.f32 %v1411_v56, %v1371_v26  ;;  %v585_v24 = vmul.f32 %v6665_v52, %v521_v3  ;;  %3894 = vmatpush.bf16.msrb.mxu2 %v5447_v58  ;;  %v5429_v58 = vld [vmem:[%s7806_s5 + $0x520] sm:$0xff] }
  0xad   :  { %v920_v45 = vadd.f32 %v888_v44, %v769_v37  ;;  %v736_v7 = vmul.f32 %v6675_v47, %v672_v53  ;;  %v974_v57 = vperm.slane %v6855_v22, 1  ;;  %v887_v44 = vmul.f32 %v6681_v6, %v823_v59  ;;  %3869 = vmatpush.bf16.msrb.mxu0 %v5430_v10  ;;  %v5445_v26 = vld [vmem:[%s7806_s5 + $0x5a0] sm:$0xff] }
  0xae   :  { %v315_v42 = vadd.f32 %v283_v38, %v132_v4  ;;  %v1125_v34 = vperm.slane %v6864_v60, 1  ;;  %v1507_v40 = vmax.f32 %v1475_v55, 0.0  ;;  %v1276_v35 = vperm.slane %v6892_v39, 1  ;;  %3907 = vmatpush.bf16.msrb.mxu3 %v5455_v50 }
  0xaf   :  { %3881 = vmatpush.bf16.msrb.mxu1 %v5439_v30  ;;  %v1071_v33 = vadd.f32 %v1039_v41, %v920_v45  ;;  %v1038_v56 = vmul.f32 %v6695_v21, %v974_v57  ;;  %v70_v49 = vperm.slane %v6779_v62, 3  ;;  %v1412_v30 = vperm.slane %v6872_v29, 1 }
  0xb0   :  { %v466_v41 = vadd.f32 %v434_v31, %v315_v42  ;;  %v1189_v12 = vmul.f32 %v6725_v61, %v1125_v34  ;;  %v1539_v37 = vpack.c.bf16 %v1507_v40, %v1507_v40  ;;  %v221_v17 = vperm.slane %v6781_v25, 3  ;;  %3895 = vmatpush.bf16.msrb.mxu2 %v5446_v27  ;;  %v5428_v27 = vld [vmem:[%s7806_s5 + $0x518] sm:$0xff] }
  0xb1   :  { %v1222_v28 = vadd.f32 %v1190_v36, %v1071_v33  ;;  %v134_v5 = vmul.f32 %v6633_v14, %v70_v49  ;;  %v372_v3 = vperm.slane %v6789_v19, 3  ;;  %v5437_v36 = vld [vmem:[%s7806_s5 + $0x560] sm:$0xff]  ;;  %v523_v59 = vperm.slane %v6805_v2, 3  ;;  %3870 = vmatpush.bf16.msrb.mxu0 %v5429_v58 }
  0xb2   :  { %v617_v53 = vadd.f32 %v585_v24, %v466_v41  ;;  %v674_v50 = vperm.slane %v6811_v43, 3  ;;  %3823 = vmatmul.bf16.vlgmr.msra.gmra.mxu0 %v1539_v37  ;;  %v285_v10 = vmul.f32 %v6644_v32, %v221_v17  ;;  %v825_v38 = vperm.slane %v6843_v18, 3  ;;  %3908 = vmatpush.bf16.msrb.mxu3 %v5454_v23  ;;  %v5452_v37 = vld [vmem:[%s7806_s5 + $0x5d8] sm:$0xff] }
  0xb3   :  { %3882 = vmatpush.bf16.msrb.mxu1 %v5438_v13  ;;  %v1373_v4 = vadd.f32 %v1341_v63, %v1222_v28  ;;  %v436_v45 = vmul.f32 %v6652_v9, %v372_v3  ;;  %v976_v31 = vperm.slane %v6855_v22, 3  ;;  %v5453_v13 = vld [vmem:[%s7806_s5 + $0x5e0] sm:$0xff]  ;;  %v1340_v24 = vmul.f32 %v6747_v0, %v1276_v35 }
  0xb4   :  { %v768_v55 = vadd.f32 %v736_v7, %v617_v53  ;;  %v587_v57 = vmul.f32 %v6665_v52, %v523_v59  ;;  %v317_v33 = vadd.f32 %v285_v10, %v134_v5  ;;  %v738_v42 = vmul.f32 %v6675_v47, %v674_v50  ;;  %3896 = vmatpush.bf16.msrb.mxu2 %v5445_v26  ;;  %v5444_v7 = vld [vmem:[%s7806_s5 + $0x598] sm:$0xff]  ;;  %v5427_v26 = vld [vmem:[%s7806_s5 + $0x510] sm:$0xff] }
  0xb5   :  { %v1477_v63 = vadd.f32 %v1413_v20, %v1373_v4  ;;  %v889_v34 = vmul.f32 %v6681_v6, %v825_v38  ;;  %v1127_v40 = vperm.slane %v6864_v60, 3  ;;  %v5436_v20 = vld [vmem:[%s7806_s5 + $0x558] sm:$0xff]  ;;  %v1040_v23 = vmul.f32 %v6695_v21, %v976_v31  ;;  %3871 = vmatpush.bf16.msrb.mxu0 %v5428_v27  ;;  %v5435_v59 = vld [vmem:[%s7806_s5 + $0x550] sm:$0xff] }
  0xb6   :  { %v919_v49 = vadd.f32 %v887_v44, %v768_v55  ;;  %v1278_v28 = vperm.slane %v6892_v39, 3  ;;  %v468_v41 = vadd.f32 %v436_v45, %v317_v33  ;;  %v1414_v58 = vperm.slane %v6872_v29, 3  ;;  %3909 = vmatpush.bf16.msrb.mxu3 %v5453_v13 }
  0xb7   :  { %3883 = vmatpush.bf16.msrb.mxu1 %v5437_v36  ;;  %v1509_v35 = vmax.f32 %v1477_v63, 0.0  ;;  %v71_v5 = vperm.slane %v6779_v62, 4  ;;  %v222_v17 = vperm.slane %v6781_v25, 4  ;;  %v1191_v44 = vmul.f32 %v6725_v61, %v1127_v40 }
  0xb8   :  { %v1070_v36 = vadd.f32 %v1038_v56, %v919_v49  ;;  %v373_v4 = vperm.slane %v6789_v19, 4  ;;  %v619_v53 = vadd.f32 %v587_v57, %v468_v41  ;;  %3897 = vmatpush.bf16.msrb.mxu2 %v5444_v7  ;;  %v5443_v56 = vld [vmem:[%s7806_s5 + $0x590] sm:$0xff]  ;;  %v524_v45 = vperm.slane %v6805_v2, 4 }
  0xb9   :  { %v1541_v3 = vpack.c.bf16 %v1509_v35, %v1509_v35  ;;  %v135_v50 = vmul.f32 %v6502_v15, %v71_v5  ;;  %v286_v10 = vmul.f32 %v6509_v16, %v222_v17  ;;  %v675_v13 = vperm.slane %v6811_v43, 4  ;;  %v5451_v57 = vld [vmem:[%s7806_s5 + $0x5d0] sm:$0xff]  ;;  %3872 = vmatpush.bf16.msrb.mxu0 %v5427_v26 }
  0xba   :  { %v1221_v38 = vadd.f32 %v1189_v12, %v1070_v36  ;;  %v437_v31 = vmul.f32 %v6515_v51, %v373_v4  ;;  %v826_v63 = vperm.slane %v6843_v18, 4  ;;  %v770_v55 = vadd.f32 %v738_v42, %v619_v53  ;;  %3910 = vmatpush.bf16.msrb.mxu3 %v5452_v37  ;;  %v5426_v42 = vld [vmem:[%s7806_s5 + $0x508] sm:$0xff] }
  0xbb   :  { %3884 = vmatpush.bf16.msrb.mxu1 %v5436_v20  ;;  %3849 = vmatmul.bf16.vlgmr.msra.gmra.mxu2 %v1541_v3  ;;  %v318_v27 = vadd.f32 %v286_v10, %v135_v50  ;;  %v588_v33 = vmul.f32 %v6534_v48, %v524_v45  ;;  %v977_v40 = vperm.slane %v6855_v22, 4  ;;  %v7042_v20 = vpop.f32.mrf.mxu0  ;;  %v1342_v7 = vmul.f32 %v6747_v0, %v1278_v28  ;;  %v5434_v37 = vld [vmem:[%s7806_s5 + $0x548] sm:$0xff] }
  0xbc   :  { %v1372_v12 = vadd.f32 %v1340_v24, %v1221_v38  ;;  %v739_v35 = vmul.f32 %v6545_v54, %v675_v13  ;;  %v1128_v49 = vperm.slane %v6864_v60, 4  ;;  %v921_v41 = vadd.f32 %v889_v34, %v770_v55  ;;  %3898 = vmatpush.bf16.msrb.mxu2 %v5443_v56  ;;  %v5442_v24 = vld [vmem:[%s7806_s5 + $0x588] sm:$0xff]  ;;  %v5433_v13 = vld [vmem:[%s7806_s5 + $0x540] sm:$0xff] }
  0xbd   :  { %v469_v28 = vadd.f32 %v437_v31, %v318_v27  ;;  %v890_v5 = vmul.f32 %v6551_v11, %v826_v63  ;;  %v1279_v17 = vperm.slane %v6892_v39, 4  ;;  %v1041_v34 = vmul.f32 %v6559_v8, %v977_v40  ;;  %v5450_v53 = vld [vmem:[%s7806_s5 + $0x5c8] sm:$0xff]  ;;  %3873 = vmatpush.bf16.msrb.mxu0 %v5426_v42  ;;  %v5441_v63 = vld [vmem:[%s7806_s5 + $0x580] sm:$0xff] }
  0xbe   :  { %v1476_v3 = vadd.f32 %v1412_v30, %v1372_v12  ;;  %v1192_v36 = vmul.f32 %v6569_v46, %v1128_v49  ;;  %v73_v26 = vperm.slane %v6779_v62, 6  ;;  %v1072_v4 = vadd.f32 %v1040_v23, %v921_v41  ;;  %3911 = vmatpush.bf16.msrb.mxu3 %v5451_v57  ;;  %v5425_v30 = vld [vmem:[%s7806_s5 + $0x500] sm:$0xff]  ;;  %v5480_v49 = vld [vmem:[%s7806_s5 + $0x6b8] sm:$0xff] }
  0xbf   :  { %3885 = vmatpush.bf16.msrb.mxu1 %v5435_v59  ;;  %v620_v59 = vadd.f32 %v588_v33, %v469_v28  ;;  %v7067_v56 = vmul.f32 %v6607_v1, %v1279_v17  ;;  %v224_v50 = vperm.slane %v6781_v25, 6  ;;  %v375_v23 = vperm.slane %v6789_v19, 6  ;;  %v5472_v33 = vld [vmem:[%s7806_s5 + $0x678] sm:$0xff] }
  0xc0   :  { %v1508_v10 = vmax.f32 %v1476_v3, 0.0  ;;  %v137_v45 = vmul.f32 %v6502_v15, %v73_v26  ;;  %v526_v38 = vperm.slane %v6805_v2, 6  ;;  %v1223_v31 = vadd.f32 %v1191_v44, %v1072_v4  ;;  %3899 = vmatpush.bf16.msrb.mxu2 %v5442_v24  ;;  %v5464_v44 = vld [vmem:[%s7806_s5 + $0x638] sm:$0xff] }
  0xc1   :  { %v771_v55 = vadd.f32 %v739_v35, %v620_v59  ;;  %v288_v57 = vmul.f32 %v6509_v16, %v224_v50  ;;  %v677_v15 = vperm.slane %v6811_v43, 6  ;;  %v439_v40 = vmul.f32 %v6515_v51, %v375_v23  ;;  %v5449_v16 = vld [vmem:[%s7806_s5 + $0x5c0] sm:$0xff]  ;;  %3874 = vmatpush.bf16.msrb.mxu0 %v5425_v30  ;;  %v5488_v23 = vld [vmem:[%s7806_s5 + $0x6f8] sm:$0xff] }
  0xc2   :  { %v1540_v27 = vpack.c.bf16 %v1508_v10, %v1508_v10  ;;  %v590_v12 = vmul.f32 %v6534_v48, %v526_v38  ;;  %v828_v42 = vperm.slane %v6843_v18, 6  ;;  %v1374_v35 = vadd.f32 %v1342_v7, %v1223_v31  ;;  %3912 = vmatpush.bf16.msrb.mxu3 %v5450_v53  ;;  %v5525_v59 = vld [vmem:[%s7807_s6] ss:$0 sm:$0xff] }
  0xc3   :  { %3886 = vmatpush.bf16.msrb.mxu1 %v5434_v37  ;;  %v922_v41 = vadd.f32 %v890_v5, %v771_v55  ;;  %v320_v37 = vadd.f32 %v288_v57, %v137_v45  ;;  %v741_v24 = vmul.f32 %v6545_v54, %v677_v15  ;;  %v3618_v28 = vpop.f32.mrf.mxu0  ;;  %v979_v48 = vperm.slane %v6855_v22, 6  ;;  %v5479_v45 = vld [vmem:[%s7806_s5 + $0x6b0] sm:$0xff]  ;;  %v7133_v15 = vpop.f32.mrf.mxu2 }
  0xc4   :  { %3836 = vmatmul.bf16.vlgmr.msra.gmra.mxu1 %v1540_v27  ;;  %v892_v51 = vmul.f32 %v6551_v11, %v828_v42  ;;  %v1130_v7 = vperm.slane %v6864_v60, 6  ;;  %v1281_v17 = vperm.slane %v6892_v39, 6  ;;  %v1478_v3 = vadd.f32 %v1414_v58, %v1374_v35  ;;  %3900 = vmatpush.bf16.msrb.mxu2 %v5441_v63  ;;  %v5470_v35 = vld [vmem:[%s7806_s5 + $0x668] sm:$0xff] }
  0xc5   :  { %v1073_v5 = vadd.f32 %v1041_v34, %v922_v41  ;;  %v1415_v26 = vperm.slane %v6872_v29, 4  ;;  %v471_v54 = vadd.f32 %v439_v40, %v320_v37  ;;  %3919 = vmatpush.bf16.msra.mxu0 %v5464_v44  ;;  %v1043_v4 = vmul.f32 %v6559_v8, %v979_v48  ;;  %v5463_v8 = vld [vmem:[%s7806_s5 + $0x630] sm:$0xff]  ;;  %v5478_v37 = vld [vmem:[%s7806_s5 + $0x6a8] sm:$0xff] }
  0xc6   :  { %v1194_v11 = vmul.f32 %v6569_v46, %v1130_v7  ;;  %v1417_v53 = vperm.slane %v6872_v29, 6  ;;  %v72_v58 = vperm.slane %v6779_v62, 5  ;;  %v1510_v50 = vmax.f32 %v1478_v3, 0.0  ;;  %3913 = vmatpush.bf16.msrb.mxu3 %v5449_v16  ;;  %v5471_v46 = vld [vmem:[%s7806_s5 + $0x670] sm:$0xff]  ;;  %v7135_v27 = vpop.f32.mrf.mxu3 }
  0xc7   :  { %3887 = vmatpush.bf16.msrb.mxu1 %v5433_v13  ;;  %v1224_v34 = vadd.f32 %v1192_v36, %v1073_v5  ;;  %v622_v10 = vadd.f32 %v590_v12, %v471_v54  ;;  %v1345_v30 = vmul.f32 %v6607_v1, %v1281_v17  ;;  %v223_v1 = vperm.slane %v6781_v25, 5  ;;  %v7143_v42 = vpop.f32.mrf.mxu1 }
  0xc8   :  { %3945 = vmatpush.bf16.msra.mxu2 %v5480_v49  ;;  %v136_v36 = vmul.f32 %v6633_v14, %v72_v58  ;;  %v374_v38 = vperm.slane %v6789_v19, 5  ;;  %v525_v31 = vperm.slane %v6805_v2, 5  ;;  %v1542_v13 = vpack.c.bf16 %v1510_v50, %v1510_v50 }
  0xc9   :  { %v1375_v63 = vadd.f32 %v7067_v56, %v1224_v34  ;;  %v773_v55 = vadd.f32 %v741_v24, %v622_v10  ;;  %v676_v57 = vperm.slane %v6811_v43, 5  ;;  %v7138_v44 = vadd.f32 %v5525_v59, %v7042_v20  ;;  %3920 = vmatpush.bf16.msra.mxu0 %v5463_v8  ;;  %v5462_v56 = vld [vmem:[%s7806_s5 + $0x628] sm:$0xff]  ;;  %v5461_v34 = vld [vmem:[%s7806_s5 + $0x620] sm:$0xff] }
  0xca   :  { %v438_v40 = vmul.f32 %v6652_v9, %v374_v38  ;;  %v827_v12 = vperm.slane %v6843_v18, 5  ;;  %3862 = vmatmul.bf16.vlgmr.msra.gmra.mxu3 %v1542_v13  ;;  %v589_v49 = vmul.f32 %v6665_v52, %v525_v31  ;;  %v978_v41 = vperm.slane %v6855_v22, 5 }
  0xcb   :  { %3932 = vmatpush.bf16.msra.mxu1 %v5472_v33  ;;  %v287_v33 = vmul.f32 %v6644_v32, %v223_v1  ;;  %v1479_v20 = vadd.f32 %v1415_v26, %v1375_v63  ;;  %v924_v16 = vadd.f32 %v892_v51, %v773_v55  ;;  %3958 = vmatpush.bf16.msra.mxu3 %v5488_v23  ;;  %v1129_v7 = vperm.slane %v6864_v60, 5  ;;  %v5487_v51 = vld [vmem:[%s7806_s5 + $0x6f0] sm:$0xff]  ;;  %v3644_v63 = vpop.f32.mrf.mxu2 }
  0xcc   :  { %3946 = vmatpush.bf16.msra.mxu2 %v5479_v45  ;;  %v740_v28 = vmul.f32 %v6675_v47, %v676_v57  ;;  %v891_v48 = vmul.f32 %v6681_v6, %v827_v12  ;;  %v1042_v5 = vmul.f32 %v6695_v21, %v978_v41  ;;  %v1280_v26 = vperm.slane %v6892_v39, 5  ;;  %v5485_v12 = vld [vmem:[%s7806_s5 + $0x6e0] sm:$0xff] }
  0xcd   :  { %v319_v24 = vadd.f32 %v287_v33, %v136_v36  ;;  %v1511_v17 = vmax.f32 %v1479_v20, 0.0  ;;  %v1075_v3 = vadd.f32 %v1043_v4, %v924_v16  ;;  %v7165_v59 = vmul.f32 %v6725_v61, %v1129_v7  ;;  %3921 = vmatpush.bf16.msra.mxu0 %v5462_v56  ;;  %v5469_v4 = vld [vmem:[%s7806_s5 + $0x660] sm:$0xff]  ;;  %v5476_v56 = vld [vmem:[%s7806_s5 + $0x698] sm:$0xff]  ;;  %v5459_v16 = vld [vmem:[%s7806_s5 + $0x610] sm:$0xff] }
  0xce   :  { %v1416_v58 = vperm.slane %v6872_v29, 5  ;;  %v74_v50 = vperm.slane %v6779_v62, 7  ;;  %v376_v45 = vperm.slane %v6789_v19, 7  ;;  %v5477_v62 = vld [vmem:[%s7806_s5 + $0x6a0] sm:$0xff]  ;;  %v527_v1 = vperm.slane %v6805_v2, 7  ;;  %v3657_v55 = vpop.f32.mrf.mxu3 }
  0xcf   :  { %3933 = vmatpush.bf16.msra.mxu1 %v5471_v46  ;;  %v470_v54 = vadd.f32 %v438_v40, %v319_v24  ;;  %v1543_v10 = vpack.c.bf16 %v1511_v17, %v1511_v17  ;;  %v1226_v8 = vadd.f32 %v1194_v11, %v1075_v3  ;;  %v225_v46 = vperm.slane %v6781_v25, 7  ;;  %3959 = vmatpush.bf16.msra.mxu3 %v5487_v51  ;;  %v5486_v11 = vld [vmem:[%s7806_s5 + $0x6e8] sm:$0xff]  ;;  %v3631_v33 = vpop.f32.mrf.mxu1  ;;  %v5475_v24 = vld [vmem:[%s7806_s5 + $0x690] sm:$0xff] }
  0xd0   :  { %3947 = vmatpush.bf16.msra.mxu2 %v5478_v37  ;;  %v138_v36 = vmul.f32 %v6633_v14, %v74_v50  ;;  %v678_v38 = vperm.slane %v6811_v43, 7  ;;  %v440_v31 = vmul.f32 %v6652_v9, %v376_v45  ;;  %v829_v13 = vperm.slane %v6843_v18, 7  ;;  %v5468_v9 = vld [vmem:[%s7806_s5 + $0x658] sm:$0xff] }
  0xd1   :  { %v621_v23 = vadd.f32 %v589_v49, %v470_v54  ;;  %3875 = vmatmul.bf16.vlgmr.msrb.gmra.mxu0 %v1543_v10  ;;  %v1377_v25 = vadd.f32 %v1345_v30, %v1226_v8  ;;  %v289_v19 = vmul.f32 %v6644_v32, %v225_v46  ;;  %v1344_v2 = vmul.f32 %v6747_v0, %v1280_v26  ;;  %v5460_v32 = vld [vmem:[%s7806_s5 + $0x618] sm:$0xff]  ;;  %v5467_v49 = vld [vmem:[%s7806_s5 + $0x650] sm:$0xff] }
  0xd2   :  { %v591_v43 = vmul.f32 %v6665_v52, %v527_v1  ;;  %v980_v57 = vperm.slane %v6855_v22, 7  ;;  %3922 = vmatpush.bf16.msra.mxu0 %v5461_v34  ;;  %v4153_v18 = vld [vmem:[%s7804_s3 + $0xc0] ss:$8 sm:$0xf]  ;;  %v742_v22 = vmul.f32 %v6675_v47, %v678_v38  ;;  %v1131_v40 = vperm.slane %v6864_v60, 7 }
  0xd3   :  { %3934 = vmatpush.bf16.msra.mxu1 %v5470_v35  ;;  %v772_v14 = vadd.f32 %v740_v28, %v621_v23  ;;  %v1481_v52 = vadd.f32 %v1417_v53, %v1377_v25  ;;  %v321_v30 = vadd.f32 %v289_v19, %v138_v36  ;;  %v4154_v35 = vld [vmem:[%s7804_s3 + $0xc0] ss:$8 sm:$0xf0]  ;;  %v893_v53 = vmul.f32 %v6681_v6, %v829_v13  ;;  %v4163_v41 = vld [vmem:[%s7804_s3 + $0xc1] ss:$8 sm:$0xf] }
  0xd4   :  { %3948 = vmatpush.bf16.msra.mxu2 %v5477_v62  ;;  %v7216_v47 = vmul.f32 %v6695_v21, %v980_v57  ;;  %v1282_v60 = vperm.slane %v6892_v39, 7  ;;  %3960 = vmatpush.bf16.msra.mxu3 %v5486_v11  ;;  %v1418_v21 = vperm.slane %v6872_v29, 7  ;;  %v3630_v39 = vadd.f32 %v7143_v42, %v7138_v44  ;;  %v4164_v28 = vld [vmem:[%s7804_s3 + $0xc1] ss:$8 sm:$0xf0] }
  0xd5   :  { %v923_v20 = vadd.f32 %v891_v48, %v772_v14  ;;  %v1513_v37 = vmax.f32 %v1481_v52, 0.0  ;;  %v472_v6 = vadd.f32 %v440_v31, %v321_v30  ;;  %v7238_v7 = vmul.f32 %v6725_v61, %v1131_v40  ;;  %v4173_v44 = vld [vmem:[%s7804_s3 + $0xc2] ss:$8 sm:$0xf]  ;;  %v7273_v23 = vpop.f32.mrf.mxu2 }
  0xd6   :  { %3923 = vmatpush.bf16.msra.mxu0 %v5460_v32  ;;  %v7240_v51 = vor.u32 %v4154_v35, %v4153_v18  ;;  %v4174_v42 = vld [vmem:[%s7804_s3 + $0xc2] ss:$8 sm:$0xf0]  ;;  %v3643_v26 = vadd.f32 %v7133_v15, %v3630_v39  ;;  %v4183_v61 = vld [vmem:[%s7804_s3 + $0xc3] ss:$8 sm:$0xf]  ;;  %v7270_v45 = vmul.f32 %v6747_v0, %v1282_v60  ;;  %v3668_v62 = vpop.f32.mrf.mxu0 }
  0xd7   :  { %3935 = vmatpush.bf16.msra.mxu1 %v5469_v4  ;;  %v1074_v48 = vadd.f32 %v1042_v5, %v923_v20  ;;  %v1545_v17 = vpack.c.bf16 %v1513_v37, %v1513_v37  ;;  %v623_v3 = vadd.f32 %v591_v43, %v472_v6  ;;  %v7249_v5 = vor.u32 %v4164_v28, %v4163_v41  ;;  %v4184_v54 = vld [vmem:[%s7804_s3 + $0xc3] ss:$8 sm:$0xf0]  ;;  %v4193_v8 = vld [vmem:[%s7804_s3 + $0xc4] ss:$8 sm:$0xf] }
  0xd8   :  { %3949 = vmatpush.bf16.msra.mxu2 %v5476_v56  ;;  %3961 = vmatpush.bf16.msra.mxu3 %v5485_v12  ;;  %v5484_v34 = vld [vmem:[%s7806_s5 + $0x6d8] sm:$0xff]  ;;  %v75_v15 = vperm.slane %v7240_v51, 0  ;;  %v7262_v4 = vor.u32 %v4174_v42, %v4173_v44  ;;  %v7264_v10 = vor.u32 %v4184_v54, %v4183_v61  ;;  %v5458_v36 = vld [vmem:[%s7806_s5 + $0x608] sm:$0xff]  ;;  %v7294_v19 = vld [vmem:[%s7801_s0] sm:$0xff]  ;;  %v77_v39 = vperm.slane %v7240_v51, 2 }
  0xd9   :  { %v1225_v50 = vadd.f32 %v7165_v59, %v1074_v48  ;;  %3901 = vmatmul.bf16.vlgmr.msrb.gmra.mxu2 %v1545_v17  ;;  %v774_v46 = vadd.f32 %v742_v22, %v623_v3  ;;  %v3656_v59 = vadd.f32 %v7135_v27, %v3643_v26  ;;  %v5466_v1 = vld [vmem:[%s7806_s5 + $0x648] sm:$0xff]  ;;  %v226_v38 = vperm.slane %v7249_v5, 0  ;;  %v5483_v27 = vld [vmem:[%s7806_s5 + $0x6d0] sm:$0xff]  ;;  %v7323_v52 = vld [vmem:[%s7801_s0 + $0x20] sm:$0xff] }
  0xda   :  { %v4194_v0 = vld [vmem:[%s7804_s3 + $0xc4] ss:$8 sm:$0xf0]  ;;  %3924 = vmatpush.bf16.msra.mxu0 %v5459_v16  ;;  %v139_v31 = vmul.f32 %v7294_v19, %v75_v15  ;;  %v377_v13 = vperm.slane %v7262_v4, 0  ;;  %v528_v63 = vperm.slane %v7264_v10, 0  ;;  %vm4078_vm0 = vcmask 261120  }
  0xdb   :  { %3936 = vmatpush.bf16.msra.mxu1 %v5468_v9  ;;  %v1376_v11 = vadd.f32 %v1344_v2, %v1225_v50  ;;  %v5474_v25 = vld [vmem:[%s7806_s5 + $0x688] sm:$0xff]  ;;  %v925_v14 = vadd.f32 %v893_v53, %v774_v46  ;;  %v7302_v2 = vadd.f32 %v3668_v62, %v3656_v59  ;;  %v7307_v43 = vld [vmem:[%s7801_s0 + $0x10] sm:$0xff]  ;;  %v7310_v33 = vor.u32 %v4194_v0, %v4193_v8  ;;  %v5457_v20 = vld [vmem:[%s7806_s5 + $0x600] sm:$0xff] }
  0xdc   :  { %v4203_v55 = vld [vmem:[%s7804_s3 + $0xc5] ss:$8 sm:$0xf]  ;;  %3950 = vmatpush.bf16.msra.mxu2 %v5475_v24  ;;  %v290_v57 = vmul.f32 %v7307_v43, %v226_v38  ;;  %v4213_v9 = vld [vmem:[%s7804_s3 + $0xc6] ss:$8 sm:$0xf]  ;;  %3962 = vmatpush.bf16.msra.mxu3 %v5484_v34  ;;  %v441_v30 = vmul.f32 %v7323_v52, %v377_v13 }
  0xdd   :  { %v4204_v32 = vld [vmem:[%s7804_s3 + $0xc5] ss:$8 sm:$0xf0]  ;;  %v1480_v18 = vadd.f32 %v1416_v58, %v1376_v11  ;;  %v4214_v58 = vld [vmem:[%s7804_s3 + $0xc6] ss:$8 sm:$0xf0]  ;;  %v1076_v35 = vadd.f32 %v7216_v47, %v925_v14 }
  0xde   :  { %v7329_v22 = vld [vmem:[%s7801_s0 + $0x30] sm:$0xff]  ;;  %v7332_v12 = vor.u32 %v4204_v32, %v4203_v55  ;;  %v322_v53 = vadd.f32 %v290_v57, %v139_v31  ;;  %v679_v60 = vperm.slane %v7310_v33, 0  ;;  %v7345_v16 = vor.u32 %v4214_v58, %v4213_v9  ;;  %3925 = vmatpush.bf16.msra.mxu0 %v5458_v36  ;;  %v5465_v28 = vld [vmem:[%s7806_s5 + $0x640] sm:$0xff]  ;;  %v5482_v61 = vld [vmem:[%s7806_s5 + $0x6c8] sm:$0xff]  ;;  %v3670_v0 = vpop.f32.mrf.mxu0 }
  0xdf   :  { %3937 = vmatpush.bf16.msra.mxu1 %v5467_v49  ;;  %v592_v40 = vmul.f32 %v7329_v22, %v528_v63  ;;  %v4223_v56 = vld [vmem:[%s7804_s3 + $0xc7] ss:$8 sm:$0xf]  ;;  %v1512_v41 = vmax.f32 %v1480_v18, 0.0  ;;  %v1227_v24 = vadd.f32 %v7238_v7, %v1076_v35  ;;  %v228_v31 = vperm.slane %v7249_v5, 2 }
  0xe0   :  { %v4224_v49 = vld [vmem:[%s7804_s3 + $0xc7] ss:$8 sm:$0xf0]  ;;  %v830_v37 = vperm.slane %v7332_v12, 0  ;;  %3951 = vmatpush.bf16.msra.mxu2 %v5474_v25  ;;  %v473_v44 = vadd.f32 %v441_v30, %v322_v53  ;;  %v981_v3 = vperm.slane %v7345_v16, 0  ;;  %3963 = vmatpush.bf16.msra.mxu3 %v5483_v27  ;;  %v141_v25 = vmul.f32 %v7294_v19, %v77_v39 }
  0xe1   :  { %v7351_v6 = vor.u32 %v4224_v49, %v4223_v56  ;;  %v4233_v47 = vld [vmem:[%s7804_s3 + $0x1c0] ss:$8 sm:$0xf]  ;;  %v1544_v26 = vpack.c.bf16 %v1512_v41, %v1512_v41  ;;  %v1378_v8 = vadd.f32 %v7270_v45, %v1227_v24  ;;  %v3696_v45 = vpop.f32.mrf.mxu2  ;;  %v379_v13 = vperm.slane %v7262_v4, 2 }
  0xe2   :  { %v5473_v48 = vld [vmem:[%s7806_s5 + $0x680] sm:$0xff]  ;;  %v5496_v54 = vld [vmem:[%s7806_s5 + $0x738] sm:$0xff]  ;;  %v7383_v50 = vld [vmem:[%s7801_s0 + $0x50] sm:$0xff]  ;;  %v624_v62 = vadd.f32 %v592_v40, %v473_v44  ;;  %3926 = vmatpush.bf16.msra.mxu0 %v5457_v20  ;;  %v530_v14 = vperm.slane %v7264_v10, 2  ;;  %v681_v57 = vperm.slane %v7310_v33, 2  ;;  %v292_v9 = vmul.f32 %v7307_v43, %v228_v31 }
  0xe3   :  { %3938 = vmatpush.bf16.msra.mxu1 %v5466_v1  ;;  %v7367_v42 = vld [vmem:[%s7801_s0 + $0x40] sm:$0xff]  ;;  %v894_v34 = vmul.f32 %v7383_v50, %v830_v37  ;;  %v5504_v46 = vld [vmem:[%s7806_s5 + $0x778] sm:$0xff]  ;;  %v1132_v38 = vperm.slane %v7351_v6, 0  ;;  %v1482_v63 = vadd.f32 %v1418_v21, %v1378_v8  ;;  %v443_v18 = vmul.f32 %v7323_v52, %v379_v13  ;;  %v7424_v40 = vld [vmem:[%s7801_s0 + $0x70] sm:$0xff] }
  0xe4   :  { %v743_v17 = vmul.f32 %v7367_v42, %v679_v60  ;;  %v4234_v7 = vld [vmem:[%s7804_s3 + $0x1c0] ss:$8 sm:$0xf0]  ;;  %3888 = vmatmul.bf16.vlgmr.msrb.gmra.mxu1 %v1544_v26  ;;  %3952 = vmatpush.bf16.msra.mxu2 %v5473_v48  ;;  %v832_v29 = vperm.slane %v7332_v12, 2  ;;  %v324_v60 = vadd.f32 %v292_v9, %v141_v25  ;;  %v594_v49 = vmul.f32 %v7329_v22, %v530_v14 }
  0xe5   :  { %v7386_v15 = vor.u32 %v4234_v7, %v4233_v47  ;;  %v5512_v59 = vld [vmem:[%s7806_s5 + $0x7b8] sm:$0xff]  ;;  %v7398_v36 = vld [vmem:[%s7801_s0 + $0x60] sm:$0xff]  ;;  %3964 = vmatpush.bf16.msra.mxu3 %v5482_v61  ;;  %v1514_v21 = vmax.f32 %v1482_v63, 0.0  ;;  %v1196_v58 = vmul.f32 %v7424_v40, %v1132_v38  ;;  %v745_v41 = vmul.f32 %v7367_v42, %v681_v57  ;;  %v3707_v47 = vpop.f32.mrf.mxu3  ;;  %v3681_v48 = vpop.f32.mrf.mxu1  ;;  %v5495_v8 = vld [vmem:[%s7806_s5 + $0x730] sm:$0xff] }
  0xe6   :  { %v1045_v1 = vmul.f32 %v7398_v36, %v981_v3  ;;  %v7406_v27 = vld [vmem:[%s7805_s4 + $0x18] sm:$0xff]  ;;  %v775_v55 = vadd.f32 %v743_v17, %v624_v62  ;;  %v5481_v32 = vld [vmem:[%s7806_s5 + $0x6c0] sm:$0xff]  ;;  %3971 = vmatpush.bf16.msrb.mxu0 %v5496_v54  ;;  %v896_v24 = vmul.f32 %v7383_v50, %v832_v29  ;;  %v475_v44 = vadd.f32 %v443_v18, %v324_v60  ;;  %v5519_v45 = vld [vmem:[%s7806_s5 + $0x7f0] sm:$0xff] }
  0xe7   :  { %v1283_v11 = vperm.slane %v7386_v15, 0  ;;  %3939 = vmatpush.bf16.msra.mxu1 %v5465_v28  ;;  %v1419_v56 = vperm.slane %v7406_v27, 0  ;;  %v5520_v35 = vld [vmem:[%s7806_s5 + $0x7f8] sm:$0xff]  ;;  %v7434_v20 = vld [vmem:[%s7801_s0 + $0x80] sm:$0xff]  ;;  %v1546_v37 = vpack.c.bf16 %v1514_v21, %v1514_v21  ;;  %v983_v28 = vperm.slane %v7345_v16, 2  ;;  %v5510_v29 = vld [vmem:[%s7806_s5 + $0x7a8] sm:$0xff] }
  0xe8   :  { %3997 = vmatpush.bf16.msrb.mxu2 %v5512_v59  ;;  %v926_v30 = vadd.f32 %v894_v34, %v775_v55  ;;  %v1134_v17 = vperm.slane %v7351_v6, 2  ;;  %v1285_v3 = vperm.slane %v7386_v15, 2  ;;  %v76_v7 = vperm.slane %v7240_v51, 1  ;;  %v5511_v59 = vld [vmem:[%s7806_s5 + $0x7b0] sm:$0xff]  ;;  %v7471_v31 = vld [vmem:[%s7801_s0 + $0x18] sm:$0xff]  ;;  %v5494_v55 = vld [vmem:[%s7806_s5 + $0x728] sm:$0xff] }
  0xe9   :  { %v1347_v53 = vmul.f32 %v7434_v20, %v1283_v11  ;;  %3965 = vmatpush.bf16.msra.mxu3 %v5481_v32  ;;  %v3682_v26 = vadd.f32 %v3681_v48, %v7302_v2  ;;  %v1421_v54 = vperm.slane %v7406_v27, 2  ;;  %v227_v34 = vperm.slane %v7249_v5, 1  ;;  %v7459_v2 = vld [vmem:[%s7801_s0 + $0x8] sm:$0xff]  ;;  %v7515_v48 = vld [vmem:[%s7801_s0 + $0x58] sm:$0xff] }
  0xea   :  { %v1077_v39 = vadd.f32 %v1045_v1, %v926_v30  ;;  %3914 = vmatmul.bf16.vlgmr.msrb.gmra.mxu3 %v1546_v37  ;;  %v626_v62 = vadd.f32 %v594_v49, %v475_v44  ;;  %v140_v1 = vmul.f32 %v7459_v2, %v76_v7  ;;  %v378_v38 = vperm.slane %v7262_v4, 1  ;;  %3972 = vmatpush.bf16.msrb.mxu0 %v5495_v8  ;;  %v7485_v32 = vld [vmem:[%s7801_s0 + $0x28] sm:$0xff] }
  0xeb   :  { %3984 = vmatpush.bf16.msrb.mxu1 %v5504_v46  ;;  %v5503_v46 = vld [vmem:[%s7806_s5 + $0x770] sm:$0xff]  ;;  %v529_v0 = vperm.slane %v7264_v10, 1  ;;  %v3695_v11 = vadd.f32 %v7273_v23, %v3682_v26  ;;  %v291_v13 = vmul.f32 %v7471_v31, %v227_v34  ;;  %v680_v63 = vperm.slane %v7310_v33, 1  ;;  %v5502_v23 = vld [vmem:[%s7806_s5 + $0x768] sm:$0xff] }
  0xec   :  { %v1228_v61 = vadd.f32 %v1196_v58, %v1077_v39  ;;  %v777_v14 = vadd.f32 %v745_v41, %v626_v62  ;;  %v1047_v57 = vmul.f32 %v7398_v36, %v983_v28  ;;  %v442_v9 = vmul.f32 %v7485_v32, %v378_v38  ;;  %3998 = vmatpush.bf16.msrb.mxu2 %v5511_v59  ;;  %v7509_v28 = vld [vmem:[%s7801_s0 + $0x48] sm:$0xff]  ;;  %v5509_v59 = vld [vmem:[%s7806_s5 + $0x7a0] sm:$0xff] }
  0xed   :  { %4010 = vmatpush.bf16.msrb.mxu3 %v5520_v35  ;;  %v831_v18 = vperm.slane %v7332_v12, 1  ;;  %v7492_v21 = vadd.f32 %v3707_v47, %v3695_v11  ;;  %v323_v58 = vadd.f32 %v291_v13, %v140_v1  ;;  %v7497_v35 = vld [vmem:[%s7801_s0 + $0x38] sm:$0xff]  ;;  %v1198_v49 = vmul.f32 %v7424_v40, %v1134_v17  ;;  %v3709_v17 = vpop.f32.mrf.mxu3  ;;  %v3683_v8 = vpop.f32.mrf.mxu1  ;;  %v7533_v38 = vld [vmem:[%s7801_s0 + $0x68] sm:$0xff] }
  0xee   :  { %v1379_v25 = vadd.f32 %v1347_v53, %v1228_v61  ;;  %v593_v53 = vmul.f32 %v7497_v35, %v529_v0  ;;  %v928_v60 = vadd.f32 %v896_v24, %v777_v14  ;;  %v1349_v41 = vmul.f32 %v7434_v20, %v1285_v3  ;;  %3973 = vmatpush.bf16.msrb.mxu0 %v5494_v55  ;;  %v5501_v3 = vld [vmem:[%s7806_s5 + $0x760] sm:$0xff] }
  0xef   :  { %3985 = vmatpush.bf16.msrb.mxu1 %v5503_v46  ;;  %v982_v37 = vperm.slane %v7345_v16, 1  ;;  %v474_v39 = vadd.f32 %v442_v9, %v323_v58  ;;  %v744_v24 = vmul.f32 %v7509_v28, %v680_v63  ;;  %v895_v44 = vmul.f32 %v7515_v48, %v831_v18  ;;  %v5493_v46 = vld [vmem:[%s7806_s5 + $0x720] sm:$0xff] }
  0xf0   :  { %v1483_v30 = vadd.f32 %v1419_v56, %v1379_v25  ;;  %v5518_v56 = vld [vmem:[%s7806_s5 + $0x7e8] sm:$0xff]  ;;  %v1079_v7 = vadd.f32 %v1047_v57, %v928_v60  ;;  %v1133_v26 = vperm.slane %v7351_v6, 1  ;;  %v1284_v61 = vperm.slane %v7386_v15, 1  ;;  %3999 = vmatpush.bf16.msrb.mxu2 %v5510_v29  ;;  %v3720_v55 = vpop.f32.mrf.mxu0  ;;  %v5500_v29 = vld [vmem:[%s7806_s5 + $0x758] sm:$0xff] }
  0xf1   :  { %4011 = vmatpush.bf16.msrb.mxu3 %v5519_v45  ;;  %v78_v34 = vperm.slane %v7240_v51, 3  ;;  %v625_v1 = vadd.f32 %v593_v53, %v474_v39  ;;  %v1046_v0 = vmul.f32 %v7533_v38, %v982_v37  ;;  %v229_v45 = vperm.slane %v7249_v5, 3  ;;  %v5508_v37 = vld [vmem:[%s7806_s5 + $0x798] sm:$0xff] }
  0xf2   :  { %v1515_v47 = vmax.f32 %v1483_v30, 0.0  ;;  %v1230_v11 = vadd.f32 %v1198_v49, %v1079_v7  ;;  %v380_v13 = vperm.slane %v7262_v4, 3  ;;  %v531_v63 = vperm.slane %v7264_v10, 3  ;;  %3974 = vmatpush.bf16.msrb.mxu0 %v5493_v46  ;;  %v5492_v49 = vld [vmem:[%s7806_s5 + $0x718] sm:$0xff] }
  0xf3   :  { %3986 = vmatpush.bf16.msrb.mxu1 %v5502_v23  ;;  %v142_v25 = vmul.f32 %v7459_v2, %v78_v34  ;;  %v5517_v23 = vld [vmem:[%s7806_s5 + $0x7e0] sm:$0xff]  ;;  %v776_v14 = vadd.f32 %v744_v24, %v625_v1  ;;  %v293_v57 = vmul.f32 %v7471_v31, %v229_v45  ;;  %v682_v9 = vperm.slane %v7310_v33, 3 }
  0xf4   :  { %v1547_v62 = vpack.c.bf16 %v1515_v47, %v1515_v47  ;;  %v833_v18 = vperm.slane %v7332_v12, 3  ;;  %v1381_v30 = vadd.f32 %v1349_v41, %v1230_v11  ;;  %v1420_v58 = vperm.slane %v7406_v27, 1  ;;  %4000 = vmatpush.bf16.msrb.mxu2 %v5509_v59  ;;  %v7561_v41 = vld [vmem:[%s7801_s0 + $0x78] sm:$0xff] }
  0xf5   :  { %4012 = vmatpush.bf16.msrb.mxu3 %v5518_v56  ;;  %v444_v53 = vmul.f32 %v7485_v32, %v380_v13  ;;  %v984_v60 = vperm.slane %v7345_v16, 3  ;;  %v927_v56 = vadd.f32 %v895_v44, %v776_v14  ;;  %v1197_v47 = vmul.f32 %v7561_v41, %v1133_v26  ;;  %v5516_v26 = vld [vmem:[%s7806_s5 + $0x7d8] sm:$0xff]  ;;  %v5507_v13 = vld [vmem:[%s7806_s5 + $0x790] sm:$0xff] }
  0xf6   :  { %3927 = vmatmul.bf16.vlgmr.msra.gmra.mxu0 %v1547_v62  ;;  %v325_v39 = vadd.f32 %v293_v57, %v142_v25  ;;  %v595_v24 = vmul.f32 %v7497_v35, %v531_v63  ;;  %v1485_v17 = vadd.f32 %v1421_v54, %v1381_v30  ;;  %v746_v7 = vmul.f32 %v7509_v28, %v682_v9  ;;  %v5515_v14 = vld [vmem:[%s7806_s5 + $0x7d0] sm:$0xff] }
  0xf7   :  { %3987 = vmatpush.bf16.msrb.mxu1 %v5501_v3  ;;  %v7570_v3 = vld [vmem:[%s7801_s0 + $0x88] sm:$0xff]  ;;  %v897_v34 = vmul.f32 %v7515_v48, %v833_v18  ;;  %v1078_v8 = vadd.f32 %v1046_v0, %v927_v56  ;;  %v1048_v54 = vmul.f32 %v7533_v38, %v984_v60  ;;  %v7580_v59 = vadd.f32 %v3720_v55, %v7492_v21  ;;  %v5491_v0 = vld [vmem:[%s7806_s5 + $0x710] sm:$0xff] }
  0xf8   :  { %v1348_v44 = vmul.f32 %v7570_v3, %v1284_v61  ;;  %v476_v46 = vadd.f32 %v444_v53, %v325_v39  ;;  %v5499_v61 = vld [vmem:[%s7806_s5 + $0x750] sm:$0xff]  ;;  %v1517_v62 = vmax.f32 %v1485_v17, 0.0  ;;  %v1135_v1 = vperm.slane %v7351_v6, 3  ;;  %3975 = vmatpush.bf16.msrb.mxu0 %v5492_v49  ;;  %4001 = vmatpush.bf16.msrb.mxu2 %v5508_v37  ;;  %v5498_v60 = vld [vmem:[%s7806_s5 + $0x748] sm:$0xff] }
  0xf9   :  { %4013 = vmatpush.bf16.msrb.mxu3 %v5517_v23  ;;  %v1286_v45 = vperm.slane %v7386_v15, 3  ;;  %v79_v11 = vperm.slane %v7240_v51, 4  ;;  %v1229_v21 = vadd.f32 %v1197_v47, %v1078_v8  ;;  %v230_v63 = vperm.slane %v7249_v5, 4  ;;  %v5490_v39 = vld [vmem:[%s7806_s5 + $0x708] sm:$0xff] }
  0xfa   :  { %v627_v25 = vadd.f32 %v595_v24, %v476_v46  ;;  %v381_v55 = vperm.slane %v7262_v4, 4  ;;  %v1549_v23 = vpack.c.bf16 %v1517_v62, %v1517_v62  ;;  %v532_v9 = vperm.slane %v7264_v10, 4  ;;  %v5514_v62 = vld [vmem:[%s7806_s5 + $0x7c8] sm:$0xff] }
  0xfb   :  { %3988 = vmatpush.bf16.msrb.mxu1 %v5500_v29  ;;  %v143_v57 = vmul.f32 %v7294_v19, %v79_v11  ;;  %v683_v18 = vperm.slane %v7310_v33, 4  ;;  %v3722_v29 = vpop.f32.mrf.mxu0  ;;  %v1380_v30 = vadd.f32 %v1348_v44, %v1229_v21  ;;  %v294_v49 = vmul.f32 %v7307_v43, %v230_v63  ;;  %v5497_v63 = vld [vmem:[%s7806_s5 + $0x740] sm:$0xff] }
  0xfc   :  { %v778_v53 = vadd.f32 %v746_v7, %v627_v25  ;;  %v445_v37 = vmul.f32 %v7323_v52, %v381_v55  ;;  %3953 = vmatmul.bf16.vlgmr.msra.gmra.mxu2 %v1549_v23  ;;  %v1199_v56 = vmul.f32 %v7561_v41, %v1135_v1  ;;  %v1422_v47 = vperm.slane %v7406_v27, 3  ;;  %3976 = vmatpush.bf16.msrb.mxu0 %v5491_v0 }
  0xfd   :  { %4014 = vmatpush.bf16.msrb.mxu3 %v5516_v26  ;;  %v834_v24 = vperm.slane %v7332_v12, 4  ;;  %v985_v17 = vperm.slane %v7345_v16, 4  ;;  %v1484_v44 = vadd.f32 %v1420_v58, %v1380_v30  ;;  %4002 = vmatpush.bf16.msrb.mxu2 %v5507_v13  ;;  %v5506_v26 = vld [vmem:[%s7806_s5 + $0x788] sm:$0xff]  ;;  %v326_v8 = vadd.f32 %v294_v49, %v143_v57  ;;  %v3746_v21 = vpop.f32.mrf.mxu2 }
  0xfe   :  { %v929_v7 = vadd.f32 %v897_v34, %v778_v53  ;;  %v596_v46 = vmul.f32 %v7329_v22, %v532_v9  ;;  %v747_v1 = vmul.f32 %v7367_v42, %v683_v18  ;;  %v1136_v34 = vperm.slane %v7351_v6, 4  ;;  %v5505_v18 = vld [vmem:[%s7806_s5 + $0x780] sm:$0xff] }
  0xff   :  { %3989 = vmatpush.bf16.msrb.mxu1 %v5499_v61  ;;  %v1350_v61 = vmul.f32 %v7570_v3, %v1286_v45  ;;  %v898_v58 = vmul.f32 %v7383_v50, %v834_v24  ;;  %v1516_v0 = vmax.f32 %v1484_v44, 0.0  ;;  %v477_v25 = vadd.f32 %v445_v37, %v326_v8  ;;  %v5489_v45 = vld [vmem:[%s7806_s5 + $0x700] sm:$0xff] }
 0x100   :  { %v1080_v11 = vadd.f32 %v1048_v54, %v929_v7  ;;  %v1049_v13 = vmul.f32 %v7398_v36, %v985_v17  ;;  %3977 = vmatpush.bf16.msrb.mxu0 %v5490_v39  ;;  %v1287_v55 = vperm.slane %v7386_v15, 4  ;;  %v80_v23 = vperm.slane %v7240_v51, 5 }
 0x101   :  { %4015 = vmatpush.bf16.msrb.mxu3 %v5515_v14  ;;  %v231_v54 = vperm.slane %v7249_v5, 5  ;;  %v382_v14 = vperm.slane %v7262_v4, 5  ;;  %v1548_v57 = vpack.c.bf16 %v1516_v0, %v1516_v0  ;;  %4003 = vmatpush.bf16.msrb.mxu2 %v5506_v26  ;;  %v628_v29 = vadd.f32 %v596_v46, %v477_v25  ;;  %v3733_v53 = vpop.f32.mrf.mxu1 }
 0x102   :  { %v1231_v9 = vadd.f32 %v1199_v56, %v1080_v11  ;;  %v533_v30 = vperm.slane %v7264_v10, 5  ;;  %v144_v49 = vmul.f32 %v7459_v2, %v80_v23  ;;  %v684_v39 = vperm.slane %v7310_v33, 5 }
 0x103   :  { %3990 = vmatpush.bf16.msrb.mxu1 %v5498_v60  ;;  %v5513_v60 = vld [vmem:[%s7806_s5 + $0x7c0] sm:$0xff]  ;;  %v295_v37 = vmul.f32 %v7471_v31, %v231_v54  ;;  %v446_v56 = vmul.f32 %v7485_v32, %v382_v14  ;;  %v3734_v17 = vadd.f32 %v3733_v53, %v7580_v59  ;;  %v779_v44 = vadd.f32 %v747_v1, %v628_v29 }
 0x104   :  { %3940 = vmatmul.bf16.vlgmr.msra.gmra.mxu1 %v1548_v57  ;;  %v1382_v24 = vadd.f32 %v1350_v61, %v1231_v9  ;;  %v1423_v7 = vperm.slane %v7406_v27, 4  ;;  %3978 = vmatpush.bf16.msrb.mxu0 %v5489_v45  ;;  %v597_v8 = vmul.f32 %v7497_v35, %v533_v30  ;;  %v835_v46 = vperm.slane %v7332_v12, 5 }
 0x105   :  { %4016 = vmatpush.bf16.msrb.mxu3 %v5514_v62  ;;  %v327_v26 = vadd.f32 %v295_v37, %v144_v49  ;;  %v986_v62 = vperm.slane %v7345_v16, 5  ;;  %v3747_v11 = vadd.f32 %v3746_v21, %v3734_v17  ;;  %4004 = vmatpush.bf16.msrb.mxu2 %v5505_v18  ;;  %v930_v25 = vadd.f32 %v898_v58, %v779_v44 }
 0x106   :  { %v1486_v0 = vadd.f32 %v1422_v47, %v1382_v24  ;;  %v1200_v61 = vmul.f32 %v7424_v40, %v1136_v34  ;;  %v1351_v59 = vmul.f32 %v7434_v20, %v1287_v55  ;;  %v748_v45 = vmul.f32 %v7509_v28, %v684_v39  ;;  %v3748_v47 = vpop.f32.mrf.mxu2 }
 0x107   :  { %3991 = vmatpush.bf16.msrb.mxu1 %v5497_v63  ;;  %v478_v1 = vadd.f32 %v446_v56, %v327_v26  ;;  %v1137_v63 = vperm.slane %v7351_v6, 5  ;;  %v1081_v54 = vadd.f32 %v1049_v13, %v930_v25  ;;  %v899_v14 = vmul.f32 %v7515_v48, %v835_v46 }
 0x108   :  { %v1518_v23 = vmax.f32 %v1486_v0, 0.0  ;;  %v1050_v57 = vmul.f32 %v7533_v38, %v986_v62  ;;  %v1288_v58 = vperm.slane %v7386_v15, 5  ;;  %v81_v34 = vperm.slane %v7240_v51, 6 }
 0x109   :  { %4017 = vmatpush.bf16.msrb.mxu3 %v5513_v60  ;;  %v629_v21 = vadd.f32 %v597_v8, %v478_v1  ;;  %v232_v9 = vperm.slane %v7249_v5, 6  ;;  %v1232_v18 = vadd.f32 %v1200_v61, %v1081_v54  ;;  %v383_v29 = vperm.slane %v7262_v4, 6  ;;  %v3735_v37 = vpop.f32.mrf.mxu1 }
 0x10a   :  { %v1550_v55 = vpack.c.bf16 %v1518_v23, %v1518_v23  ;;  %v534_v30 = vperm.slane %v7264_v10, 6  ;;  %v145_v13 = vmul.f32 %v7294_v19, %v81_v34  ;;  %v685_v49 = vperm.slane %v7310_v33, 6 }
 0x10b   :  { %v780_v53 = vadd.f32 %v748_v45, %v629_v21  ;;  %v296_v60 = vmul.f32 %v7307_v43, %v232_v9  ;;  %v1383_v56 = vadd.f32 %v1351_v59, %v1232_v18  ;;  %v1201_v39 = vmul.f32 %v7561_v41, %v1137_v63 }
 0x10c   :  { %3966 = vmatmul.bf16.vlgmr.msra.gmra.mxu3 %v1550_v55  ;;  %v447_v24 = vmul.f32 %v7323_v52, %v383_v29  ;;  %v836_v17 = vperm.slane %v7332_v12, 6  ;;  %v598_v8 = vmul.f32 %v7329_v22, %v534_v30  ;;  %v987_v46 = vperm.slane %v7345_v16, 6  ;;  %v3759_v1 = vpop.f32.mrf.mxu3 }
 0x10d   :  { %v931_v44 = vadd.f32 %v899_v14, %v780_v53  ;;  %v328_v26 = vadd.f32 %v296_v60, %v145_v13  ;;  %v1487_v19 = vadd.f32 %v1423_v7, %v1383_v56  ;;  %v1352_v43 = vmul.f32 %v7570_v3, %v1288_v58  ;;  %v7717_v53 = vld [vmem:[%s7802_s1 + $0x10] sm:$0xff]  ;;  %v7722_v13 = vld [vmem:[%s7803_s2 + $0x18] sm:$0xff] }
 0x10e   :  { %v1424_v62 = vperm.slane %v7406_v27, 5  ;;  %v749_v0 = vmul.f32 %v7367_v42, %v685_v49  ;;  %v900_v59 = vmul.f32 %v7383_v50, %v836_v17  ;;  %v1138_v52 = vperm.slane %v7351_v6, 6  ;;  %v3772_v42 = vpop.f32.mrf.mxu0 }
 0x10f   :  { %v1082_v25 = vadd.f32 %v1050_v57, %v931_v44  ;;  %v479_v61 = vadd.f32 %v447_v24, %v328_v26  ;;  %v1519_v45 = vmax.f32 %v1487_v19, 0.0  ;;  %v1051_v63 = vmul.f32 %v7398_v36, %v987_v46 }
 0x110   :  { %v1289_v22 = vperm.slane %v7386_v15, 6  ;;  %v82_v7 = vperm.slane %v7240_v51, 7  ;;  %v3760_v23 = vadd.f32 %v3759_v1, %v3747_v11  ;;  %v233_v47 = vperm.slane %v7249_v5, 7 }
 0x111   :  { %v1233_v54 = vadd.f32 %v1201_v39, %v1082_v25  ;;  %v630_v14 = vadd.f32 %v598_v8, %v479_v61  ;;  %v1551_v57 = vpack.c.bf16 %v1519_v45, %v1519_v45  ;;  %v384_v50 = vperm.slane %v7262_v4, 7  ;;  %v7692_v4 = vld [vmem:[%s7802_s1] sm:$0xff] }
 0x112   :  { %v146_v21 = vmul.f32 %v7459_v2, %v82_v7  ;;  %v535_v58 = vperm.slane %v7264_v10, 7  ;;  %v297_v36 = vmul.f32 %v7471_v31, %v233_v47  ;;  %v686_v55 = vperm.slane %v7310_v33, 7  ;;  %v7698_v33 = vld [vmem:[%s7802_s1 + $0x8] sm:$0xff] }
 0x113   :  { %v1384_v34 = vadd.f32 %v1352_v43, %v1233_v54  ;;  %v781_v9 = vadd.f32 %v749_v0, %v630_v14  ;;  %3979 = vmatmul.bf16.vlgmr.msrb.gmra.mxu0 %v1551_v57  ;;  %v1202_v51 = vmul.f32 %v7424_v40, %v1138_v52  ;;  %v448_v11 = vmul.f32 %v7485_v32, %v384_v50 }
 0x114   :  { %v837_v5 = vperm.slane %v7332_v12, 7  ;;  %v988_v18 = vperm.slane %v7345_v16, 7  ;;  %v329_v29 = vadd.f32 %v297_v36, %v146_v21  ;;  %v599_v31 = vmul.f32 %v7497_v35, %v535_v58  ;;  %v7703_v12 = vld [vmem:[%s7803_s2] sm:$0xff]  ;;  %v7708_v16 = vld [vmem:[%s7803_s2 + $0x8] sm:$0xff]  ;;  %v3761_v17 = vpop.f32.mrf.mxu3 }
 0x115   :  { %v1488_v10 = vadd.f32 %v1424_v62, %v1384_v34  ;;  %v932_v2 = vadd.f32 %v900_v59, %v781_v9  ;;  %v1353_v40 = vmul.f32 %v7434_v20, %v1289_v22  ;;  %v1425_v32 = vperm.slane %v7406_v27, 6 }
 0x116   :  { %v750_v35 = vmul.f32 %v7509_v28, %v686_v55  ;;  %v901_v30 = vmul.f32 %v7515_v48, %v837_v5  ;;  %v480_v37 = vadd.f32 %v448_v11, %v329_v29  ;;  %v1139_v20 = vperm.slane %v7351_v6, 7  ;;  %v7728_v28 = vld [vmem:[%s7802_s1 + $0x18] sm:$0xff]  ;;  %v7733_v48 = vld [vmem:[%s7803_s2 + $0x10] sm:$0xff]  ;;  %v3774_v19 = vpop.f32.mrf.mxu0  ;;  %s5592_s1 = smov 32   ;;  %s5593_s2 = smov 96  }
 0x117   :  { %v1520_v60 = vmax.f32 %v1488_v10, 0.0  ;;  %v1083_v49 = vadd.f32 %v1051_v63, %v932_v2  ;;  %v1052_v56 = vmul.f32 %v7533_v38, %v988_v18  ;;  %v1290_v39 = vperm.slane %v7386_v15, 7 }
 0x118   :  { %v4045_v24 = vmul.f32 %v7708_v16, %v7692_v4  ;;  %v4046_v6 = vmul.f32 %v7698_v33, %v7703_v12  ;;  %v631_v8 = vadd.f32 %v599_v31, %v480_v37  ;;  %v4048_v46 = vmul.f32 %v7722_v13, %v7717_v53 }
 0x119   :  { %v1552_v44 = vpack.c.bf16 %v1520_v60, %v1520_v60  ;;  %v1234_v26 = vadd.f32 %v1202_v51, %v1083_v49  ;;  %v4050_v38 = vmul.f32 %v7733_v48, %v7728_v28  ;;  %v3773_v62 = vadd.f32 %v3772_v42, %v3760_v23 }
 0x11a   :  { %v4047_v43 = vadd.f32 %v4046_v6, %v4045_v24  ;;  %v4052_v15 = vmul.f32 %v7733_v48, %v7692_v4  ;;  %v782_v25 = vadd.f32 %v750_v35, %v631_v8  ;;  %v1203_v61 = vmul.f32 %v7561_v41, %v1139_v20 }
 0x11b   :  { %3992 = vmatmul.bf16.vlgmr.msrb.gmra.mxu1 %v1552_v44  ;;  %v1385_v0 = vadd.f32 %v1353_v40, %v1234_v26  ;;  %v4053_v59 = vmul.f32 %v7722_v13, %v7698_v33  ;;  %v4055_v1 = vmul.f32 %v7717_v53, %v7703_v12  ;;  %v4059_v45 = vmul.f32 %v7722_v13, %v7692_v4  ;;  %v3798_v42 = vpop.f32.mrf.mxu2 }
 0x11c   :  { %v4049_v52 = vadd.f32 %v4048_v46, %v4047_v43  ;;  %v4060_v63 = vmul.f32 %v7733_v48, %v7698_v33  ;;  %v933_v7 = vadd.f32 %v901_v30, %v782_v25  ;;  %v4062_v54 = vmul.f32 %v7708_v16, %v7717_v53 }
 0x11d   :  { %v1489_v22 = vadd.f32 %v1425_v32, %v1385_v0  ;;  %v4054_v23 = vsub.f32 %v4052_v15, %v4053_v59  ;;  %v4064_v47 = vmul.f32 %v7728_v28, %v7703_v12  ;;  %v1354_v50 = vmul.f32 %v7570_v3, %v1290_v39  ;;  %v4092_v59 = vld [vmem:[%s7808_s7 + $0x38] sm:$0xff] }
 0x11e   :  { %v4051_v41 = vsub.f32 %v4049_v52, %v4050_v38  ;;  %v4061_v14 = vadd.f32 %v4060_v63, %v4059_v45  ;;  %v1084_v21 = vadd.f32 %v1052_v56, %v933_v7  ;;  %v4057_v9 = vmul.f32 %v7708_v16, %v7728_v28  ;;  %4101 = vmatpush.xpose.msra.mxu0 %v4092_v59  ;;  %v4090_v63 = vld [vmem:[%s7808_s7 + $0x28] sm:$0xff]  ;;  %v4089_v7 = vld [vmem:[%s7808_s7 + $0x20] sm:$0xff] }
 0x11f   :  { %v1521_v57 = vmax.f32 %v1489_v22, 0.0  ;;  %v3785_v58 = vpop.f32.mrf.mxu1  ;;  %v4056_v34 = vadd.f32 %v4055_v1, %v4054_v23  ;;  %v1426_v11 = vperm.slane %v7406_v27, 7  ;;  %v4091_v1 = vld [vmem:[%s7808_s7 + $0x30] sm:$0xff]  ;;  %v4088_v23 = vld [vmem:[%s7808_s7 + $0x18] sm:$0xff]  ;;  %vm4080_vm1 = vcmask 523264  }
 0x120   :  { %4067 = vrot.lane.b32.xlu0 %v4051_v41, %s5592_s1  ;;  %v4063_v36 = vsub.f32 %v4061_v14, %v4062_v54  ;;  %v1235_v51 = vadd.f32 %v1203_v61, %v1084_v21  ;;  %v3786_v5 = vadd.f32 %v3785_v58, %v3773_v62  ;;  %v4087_v14 = vld [vmem:[%s7808_s7 + $0x10] sm:$0xff]  ;;  %v4086_v21 = vld [vmem:[%s7808_s7 + $0x8] sm:$0xff]  ;;  %vm4082_vm2 = vcmask 785408  }
 0x121   :  { %v1553_v55 = vpack.c.bf16 %v1521_v57, %v1521_v57  ;;  %v4058_v29 = vadd.f32 %v4057_v9, %v4056_v34  ;;  %v4085_v9 = vld [vmem:[%s7808_s7] sm:$0xff]  ;;  %s5595_s7 = smov [#allocation2]  }
 0x122   :  { %v4065_v18 = vadd.f32 %v4064_v47, %v4063_v36  ;;  %v1386_v10 = vadd.f32 %v1354_v50, %v1235_v51  ;;  %v3799_v2 = vadd.f32 %v3798_v42, %v3786_v5  ;;  %4102 = vmatpush.xpose.msra.mxu0 %v4091_v1  ;;  %s4138_s17 = sshll.u32 %s5595_s7, 4  ;;  %s4139_s17 = int_to_ptr.vmem [resolvable:$true] %s4138_s17 }
 0x123   :  { %4005 = vmatmul.bf16.vlgmr.msrb.gmra.mxu2 %v1553_v55  ;;  %v3800_v31 = vpop.f32.mrf.mxu2 }
 0x124   :  { %4075 = vrot.lane.b32.xlu1 %v4065_v18, %s5593_s2  ;;  %v1490_v3 = vadd.f32 %v1426_v11, %v1386_v10  ;;  %v4039_v18 = vmul.f32 %v7708_v16, %v7698_v33  ;;  %v4038_v10 = vmul.f32 %v7703_v12, %v7692_v4 }
 0x126   :  { %v1522_v40 = vmax.f32 %v1490_v3, 0.0  ;;  %4103 = vmatpush.xpose.msra.mxu0 %v4090_v63  ;;  %v4041_v3 = vmul.f32 %v7733_v48, %v7717_v53  ;;  %v4040_v31 = vsub.f32 %v4038_v10, %v4039_v18 }
 0x127   :  { %v3787_v32 = vpop.f32.mrf.mxu1 }
 0x128   :  { %4071 = vrot.lane.b32.xlu0 %v4058_v29, %s5594_s26  ;;  %v1554_v35 = vpack.c.bf16 %v1522_v40, %v1522_v40 }
 0x12a   :  { %4018 = vmatmul.bf16.vlgmr.msrb.gmra.mxu3 %v1554_v35  ;;  %4104 = vmatpush.xpose.msra.mxu0 %v4089_v7 }
 0x12c   :  { %v3811_v30 = vpop.f32.mrf.mxu3 }
 0x12d   :  { %v3812_v60 = vadd.f32 %v3811_v30, %v3799_v2  ;;  %v4043_v30 = vmul.f32 %v7722_v13, %v7728_v28 }
 0x12e   :  { %4105 = vmatpush.xpose.msra.mxu0 %v4088_v23 }
 0x12f   :  { %v3824_v49 = vpop.f32.mrf.mxu0 }
 0x130   :  { %v3825_v27 = vadd.f32 %v3824_v49, %v3812_v60  ;;  %v4042_v60 = vsub.f32 %v4040_v31, %v4041_v3 }
 0x132   :  { %4106 = vmatpush.xpose.msra.mxu0 %v4087_v14 }
 0x134   :  { %v3813_v37 = vpop.f32.mrf.mxu3 }
 0x135   :  { %v4044_v37 = vsub.f32 %v4042_v60, %v4043_v30 }
 0x136   :  { %4107 = vmatpush.xpose.msra.mxu0 %v4086_v21 }
 0x137   :  { %v3826_v20 = vpop.f32.mrf.mxu0 }
 0x13a   :  { %4108 = vmatpush.xpose.msra.mxu0 %v4085_v9 }
 0x13e   :  { %v3850_v56 = vpop.f32.mrf.mxu2 }
 0x141   :  { %v3837_v39 = vpop.f32.mrf.mxu1 }
 0x142   :  { %v3838_v24 = vadd.f32 %v3837_v39, %v3825_v27 }
 0x144   :  { %v3851_v6 = vadd.f32 %v3850_v56, %v3838_v24 }
 0x146   :  { %v3852_v17 = vpop.f32.mrf.mxu2 }
 0x149   :  { %v3839_v44 = vpop.f32.mrf.mxu1 }
 0x14d   :  { %v3863_v26 = vpop.f32.mrf.mxu3 }
 0x14e   :  { %v3876_v8 = vpop.f32.mrf.mxu0  ;;  %v3864_v46 = vadd.f32 %v3863_v26, %v3851_v6 }
 0x150   :  { %v3877_v19 = vadd.f32 %v3876_v8, %v3864_v46 }
 0x155   :  { %v3865_v43 = vpop.f32.mrf.mxu3 }
 0x156   :  { %v3878_v38 = vpop.f32.mrf.mxu0 }
 0x15c   :  { %v3902_v62 = vpop.f32.mrf.mxu2 }
 0x161   :  { %v3889_v15 = vpop.f32.mrf.mxu1 }
 0x162   :  { %v3890_v50 = vadd.f32 %v3889_v15, %v3877_v19 }
 0x164   :  { %v3904_v0 = vpop.f32.mrf.mxu2  ;;  %v3903_v34 = vadd.f32 %v3902_v62, %v3890_v50 }
 0x169   :  { %v3891_v25 = vpop.f32.mrf.mxu1 }
 0x16d   :  { %v3915_v61 = vpop.f32.mrf.mxu3 }
 0x16e   :  { %v3916_v36 = vadd.f32 %v3915_v61, %v3903_v34 }
 0x173   :  { %v3928_v52 = vpop.f32.mrf.mxu0 }
 0x174   :  { %v3929_v11 = vadd.f32 %v3928_v52, %v3916_v36 }
 0x175   :  { %v3917_v45 = vpop.f32.mrf.mxu3 }
 0x17b   :  { %v3930_v22 = vpop.f32.mrf.mxu0 }
 0x17f   :  { %v3954_v54 = vpop.f32.mrf.mxu2 }
 0x181   :  { %v3941_v41 = vpop.f32.mrf.mxu1 }
 0x182   :  { %v3942_v2 = vadd.f32 %v3941_v41, %v3929_v11 }
 0x184   :  { %v3955_v29 = vadd.f32 %v3954_v54, %v3942_v2 }
 0x187   :  { %v3956_v47 = vpop.f32.mrf.mxu2 }
 0x189   :  { %v3943_v42 = vpop.f32.mrf.mxu1 }
 0x18f   :  { %v3967_v57 = vpop.f32.mrf.mxu3 }
 0x190   :  { %v3980_v58 = vpop.f32.mrf.mxu0  ;;  %v3968_v35 = vadd.f32 %v3967_v57, %v3955_v29 }
 0x192   :  { %v4068_v32 = vpop.permute.xlu0 %4067  ;;  %v3981_v49 = vadd.f32 %v3980_v58, %v3968_v35 }
 0x193   :  { %v4079_v4 = vsel %vm4078_vm0, %v4044_v37, %v4068_v32 }
 0x196   :  { %v4076_v48 = vpop.permute.xlu1 %4075 }
 0x197   :  { %v3969_v55 = vpop.f32.mrf.mxu3 }
 0x198   :  { %v3993_v51 = vpop.f32.mrf.mxu1  ;;  %v3982_v5 = vpop.f32.mrf.mxu0 }
 0x199   :  { %v3994_v33 = vadd.f32 %v3993_v51, %v3981_v49 }
 0x19a   :  { %v4072_v12 = vpop.permute.xlu0 %4071 }
 0x19b   :  { %v4081_v53 = vsel %vm4080_vm1, %v4079_v4, %v4072_v12 }
 0x19c   :  { %v4083_v6 = vsel %vm4082_vm2, %v4081_v53, %v4076_v48 }
 0x1a0   :  { %v3995_v40 = vpop.f32.mrf.mxu1 }
 0x1a6   :  { %v4006_v27 = vpop.f32.mrf.mxu2 }
 0x1a7   :  { %v4007_v16 = vadd.f32 %v4006_v27, %v3994_v33 }
 0x1ad   :  { %v4019_v20 = vpop.f32.mrf.mxu3 }
 0x1ae   :  { %v4008_v56 = vpop.f32.mrf.mxu2  ;;  %v4020_v39 = vadd.f32 %v4019_v20, %v4007_v16 }
 0x1b0   :  { %v4023_v24 = vmax.f32 %v4020_v39, 0.0 }
 0x1b2   :  { %v4084_v13 = vmul.f32 %v4083_v6, %v4023_v24 }
 0x1b4   :  { %4109 = vmatmul.f32.vlgmr.msra.gmra.mxu0 %v4084_v13 }
 0x1b5   :  { %v4021_v28 = vpop.f32.mrf.mxu3 }
 0x231   :  { %v4110_v17 = vpop.f32.mrf.mxu0 }
 0x232   :  { %v4113_v44 = vsub.f32 0.0, %v4110_v17 }
 0x234   :  { %v4114_v26 = vmul.f32 1.442695, %v4113_v44 }
 0x236   :  { %5526 = vpow2.f32 %v4114_v26 }
 0x23c   :  { %v5527_v8 = vpop.eup %5526 }
 0x23d   :  { %v4116_v46 = vadd.f32 1.0, %v5527_v8 }
 0x23f   :  { %5528 = vrcp.f32 %v4116_v46  ;;  %v4128_v62 = vand.u32 2147483648, %v4116_v46  ;;  %v4126_v0 = vand.u32 2147483647, %v4116_v46  ;;  %vm4122_vm4 = vweird.f32 %v4116_v46 }
 0x241   :  { %v4129_v61 = vor.u32 1.1754944e-38, %v4128_v62  ;;  %vm4127_vm6 = vcmp.eq.f32.partialorder %v4126_v0, 8.507059e+37 }
 0x245   :  { %v5529_v19 = vpop.eup %5528 }
 0x246   :  { %v4118_v43 = vmul.f32 %v5529_v19, %v4116_v46  ;;  %vm4123_vm3 = vweird.f32 %v5529_v19 }
 0x247   :  { %vm4124_vm5 = vmor %vm4122_vm4, %vm4123_vm3 }
 0x248   :  { %v4119_v38 = vsub.f32 1.0, %v4118_v43 }
 0x24a   :  { %v4120_v15 = vmul.f32 %v5529_v19, %v4119_v38 }
 0x24c   :  { %v4121_v25 = vadd.f32 %v5529_v19, %v4120_v15 }
 0x24e   :  { %v4125_v59 = vsel %vm4124_vm5, %v5529_v19, %v4121_v25 }
 0x24f   :  { %v4130_v52 = vsel %vm4127_vm6, %v4129_v61, %v4125_v59 }
 0x250   :  { %4132 = vst.msk [vmem:[#allocation2] sm:$0xff] %vm4080_vm1, %v4130_v52 }
 0x251   :  { %4143 = dma.vmem_to_hbm [thread:$0]  %s4139_s17, 128, %s4141_s20, [#allocation3]  }
 0x252   :  { %5590 = dma.done.wait [#allocation3], 128  }
 0x253   :  { %5591 = vsyncadd [#allocation3], 4294967168 }
 0x254   :  { %4148 = vsyncpa [#allocation3], 1 }

</bundles_post_ra>
